<compile_context>
chip_gen: v7x
topology: tpu7x:2x2x1
jax: 0.10.0
libtpu: 0.0.40
codegen_flags: <defaults>
</compile_context>

<pallas_src>
import jax
import jax.numpy as jnp
from jax.experimental import pallas as pl
from jax.experimental.pallas import tpu as pltpu


# ----------------------------------------------------------------------------
# Pallas kernels
# ----------------------------------------------------------------------------
def _make_conv_kernel(has_add, pool_only, hw, tile):
    """Fused conv-as-matmul + bias + instance-norm + ReLU (+ add) (+ global pool).

    Grid = (B, HW // tile).  Per step:
      p_ref  : (1, tile, Kdim)  bf16 im2col patches for one HW tile of one sample
      w_ref  : (Kdim, Cpad)     bf16 flattened conv weights (lane-padded to 128)
      b_ref  : (1, Cpad)        f32 conv bias (lane-padded)
      add_ref: (1, HW, Cpad)    f32 additive term (pos-enc or residual), resident
      output : either (1, HW, Cpad) features, or (1, 1, Cpad) pooled features
      acc    : VMEM buffer holding the raw conv output for the whole sample
      sum/sq : VMEM (1, Cpad) running sum / sum-of-squares for the instance norm
    """
    inv_hw = 1.0 / float(hw)

    def kernel(*refs):
        i = 0
        p_ref, w_ref, b_ref = refs[0], refs[1], refs[2]
        i = 3
        add_ref = None
        if has_add:
            add_ref = refs[i]
            i += 1
        if pool_only:
            pool_ref = refs[i]
            i += 1
            acc_ref = refs[i]          # VMEM scratch (1, HW, Cpad); y3 never hits HBM
            i += 1
        else:
            pool_ref = None
            acc_ref = refs[i]          # the (1, HW, Cpad) output block (VMEM resident)
            i += 1
        sum_ref, sq_ref = refs[i], refs[i + 1]

        t = pl.program_id(1)
        nt = pl.num_programs(1)

        @pl.when(t == 0)
        def _init():
            sum_ref[...] = jnp.zeros_like(sum_ref)
            sq_ref[...] = jnp.zeros_like(sq_ref)

        # bf16 x bf16 MXU matmul with f32 accumulation; epilogue stays in f32.
        y = jnp.dot(p_ref[0], w_ref[...], preferred_element_type=jnp.float32)
        y = y + b_ref[...]
        # One-pass statistics: var = E[x^2] - mean^2.
        sum_ref[...] += jnp.sum(y, axis=0, keepdims=True)
        sq_ref[...] += jnp.sum(y * y, axis=0, keepdims=True)
        start = pl.multiple_of(t * tile, 8)
        acc_ref[0, pl.ds(start, tile), :] = y

        @pl.when(t == nt - 1)
        def _finalize():
            # TODO(synk): inn.blocks.conv_norm_act's exact norm variant is not
            # available without the inn library; per-sample/per-channel (instance)
            # norm over the point set, no learned affine, is used here.
            mean = sum_ref[...] * inv_hw
            var = sq_ref[...] * inv_hw - mean * mean
            inv_std = jax.lax.rsqrt(var + 1e-5)
            z = (acc_ref[0] - mean) * inv_std
            z = jnp.maximum(z, 0.0)
            if has_add:
                z = z + add_ref[0]
            if pool_only:
                pool_ref[0] = jnp.mean(z, axis=0, keepdims=True)
            else:
                acc_ref[0] = z

    return kernel


def _head_kernel(x_ref, w1_ref, b1_ref, w2_ref, b2_ref, o_ref):
    """Pooled features (whole batch at once) -> Linear(2C,128) -> ReLU -> Linear."""
    h = jnp.dot(x_ref[...], w1_ref[...], preferred_element_type=jnp.float32) + b1_ref[...]
    h = jnp.maximum(h, 0.0)
    o_ref[...] = jnp.dot(h, w2_ref[...], preferred_element_type=jnp.float32) + b2_ref[...]


# ----------------------------------------------------------------------------
# pallas_call wrappers
# ----------------------------------------------------------------------------
def _pick_tile(hw, max_tile=512):
    """Largest HW tile <= max_tile that divides HW (multiple of 8), else full HW."""
    if hw <= max_tile:
        return hw
    for cand in range(max_tile, 7, -8):
        if hw % cand == 0:
            return cand
    return hw


def conv_block(patches, w, b, add=None, pool=False, max_tile=512):
    """patches (B, HW, Kdim) bf16; w (Kdim, Cpad) bf16; b (1, Cpad) f32;
    add None | (1, HW, Cpad) | (B, HW, Cpad) f32.  Returns (B, HW, Cpad) features,
    or (B, 1, Cpad) pooled features if pool=True (full features stay in VMEM)."""
    B, HW, Kdim = patches.shape
    Cpad = w.shape[1]
    tile = _pick_tile(HW, max_tile)
    n_t = HW // tile

    in_specs = [
        pl.BlockSpec((1, tile, Kdim), lambda bi, ti: (bi, ti, 0)),
        pl.BlockSpec((Kdim, Cpad), lambda bi, ti: (0, 0)),
        pl.BlockSpec((1, Cpad), lambda bi, ti: (0, 0)),
    ]
    inputs = [patches, w, b]
    if add is not None:
        if add.shape[0] == 1:   # shared across batch (positional encoding)
            in_specs.append(pl.BlockSpec((1, HW, Cpad), lambda bi, ti: (0, 0, 0)))
        else:                   # per-sample residual
            in_specs.append(pl.BlockSpec((1, HW, Cpad), lambda bi, ti: (bi, 0, 0)))
        inputs.append(add)

    if pool:
        out_shape = jax.ShapeDtypeStruct((B, 1, Cpad), jnp.float32)
        out_specs = pl.BlockSpec((1, 1, Cpad), lambda bi, ti: (bi, 0, 0))
        scratch = [pltpu.VMEM((1, HW, Cpad), jnp.float32),
                   pltpu.VMEM((1, Cpad), jnp.float32),
                   pltpu.VMEM((1, Cpad), jnp.float32)]
    else:
        out_shape = jax.ShapeDtypeStruct((B, HW, Cpad), jnp.float32)
        out_specs = pl.BlockSpec((1, HW, Cpad), lambda bi, ti: (bi, 0, 0))
        scratch = [pltpu.VMEM((1, Cpad), jnp.float32),
                   pltpu.VMEM((1, Cpad), jnp.float32)]

    kernel = _make_conv_kernel(has_add=add is not None, pool_only=pool,
                               hw=HW, tile=tile)
    return pl.pallas_call(
        kernel,
        out_shape=out_shape,
        grid_spec=pltpu.PrefetchScalarGridSpec(
            num_scalar_prefetch=0,
            grid=(B, n_t),
            in_specs=in_specs,
            out_specs=out_specs,
            scratch_shapes=scratch),
        compiler_params=pltpu.CompilerParams(
            dimension_semantics=("parallel", "arbitrary"),
            vmem_limit_bytes=32 * 1024 * 1024),
    )(*inputs)


def mlp_head(pooled, w1, b1, w2, b2):
    """pooled (B, C2pad) f32 -> logits (B, Dopad); one grid step for the whole batch."""
    B, C2p = pooled.shape
    D1 = w1.shape[1]
    Dop = w2.shape[1]
    return pl.pallas_call(
        _head_kernel,
        out_shape=jax.ShapeDtypeStruct((B, Dop), jnp.float32),
        grid=(1,),
        in_specs=[
            pl.BlockSpec((B, C2p), lambda i: (0, 0)),
            pl.BlockSpec((C2p, D1), lambda i: (0, 0)),
            pl.BlockSpec((1, D1), lambda i: (0, 0)),
            pl.BlockSpec((D1, Dop), lambda i: (0, 0)),
            pl.BlockSpec((1, Dop), lambda i: (0, 0)),
        ],
        out_specs=pl.BlockSpec((B, Dop), lambda i: (0, 0)),
        compiler_params=pltpu.CompilerParams(dimension_semantics=("arbitrary",)),
    )(pooled, w1, b1, w2, b2)


# ----------------------------------------------------------------------------
# JAX glue (im2col, positional encoding, padding, parameter init)
# ----------------------------------------------------------------------------
def _im2col(x_nhwc, k, stride):
    """[B,H,W,C] -> patches [B, Ho*Wo, C*k*k] (channel-major feature order)."""
    # TODO(synk): im2col materializes patches in HBM (9x/25x read amplification);
    # building the patch tile in-kernel from an NHWC row-tile (shifted matmuls)
    # would remove this remaining bandwidth term.
    x_nchw = jnp.transpose(x_nhwc, (0, 3, 1, 2))
    p = jax.lax.conv_general_dilated_patches(
        x_nchw, filter_shape=(k, k), window_strides=(stride, stride), padding="SAME")
    B, F, Ho, Wo = p.shape
    p = jnp.transpose(p, (0, 2, 3, 1)).reshape(B, Ho * Wo, F)
    return p, Ho, Wo


def _positional_encoding(H, W, N):
    """Additive sinusoidal coordinate encoding with N frequencies -> [H*W, 4N]."""
    ys = jnp.linspace(-1.0, 1.0, H, dtype=jnp.float32)
    xs = jnp.linspace(-1.0, 1.0, W, dtype=jnp.float32)
    yy, xx = jnp.meshgrid(ys, xs, indexing="ij")
    coords = jnp.stack([yy.reshape(-1), xx.reshape(-1)], axis=-1)       # [HW, 2]
    freqs = (2.0 ** jnp.arange(N, dtype=jnp.float32)) * jnp.pi          # [N]
    ang = coords[:, :, None] * freqs[None, None, :]                     # [HW, 2, N]
    enc = jnp.concatenate([jnp.sin(ang), jnp.cos(ang)], axis=1)         # [HW, 4, N]
    return enc.reshape(H * W, 4 * N)


def _round_up(x, m):
    return ((x + m - 1) // m) * m


def _pad_last(x, to):
    pad = to - x.shape[-1]
    if pad <= 0:
        return x
    return jnp.pad(x, [(0, 0)] * (x.ndim - 1) + [(0, pad)])


def _kaiming_uniform(key, shape, fan_in):
    bound = (6.0 / fan_in) ** 0.5
    return jax.random.uniform(key, shape, jnp.float32, -bound, bound)


def init_params(key, in_channels, out_dims, C=32):
    ks = jax.random.split(key, 6)
    C2 = 2 * C
    return {
        "conv1_w": _kaiming_uniform(ks[0], (C, in_channels, 3, 3), in_channels * 9),
        "conv1_b": jnp.zeros((C,), jnp.float32),
        "conv2_w": _kaiming_uniform(ks[1], (C2, C, 5, 5), C * 25),
        "conv2_b": jnp.zeros((C2,), jnp.float32),
        "conv3_w": _kaiming_uniform(ks[2], (C2, C2, 5, 5), C2 * 25),
        "conv3_b": jnp.zeros((C2,), jnp.float32),
        # nn.init.kaiming_uniform_ + zero bias, per the module __init__:
        "fc1_w": _kaiming_uniform(ks[3], (128, C2), C2),
        "fc1_b": jnp.zeros((128,), jnp.float32),
        "fc2_w": _kaiming_uniform(ks[4], (out_dims, 128), 128),
        "fc2_b": jnp.zeros((out_dims,), jnp.float32),
    }


# ----------------------------------------------------------------------------
# Forward pass
# ----------------------------------------------------------------------------
def inr_cls_wide4_forward(x_nchw, params):
    x = jnp.transpose(x_nchw, (0, 2, 3, 1)).astype(jnp.float32)   # NHWC
    B = x.shape[0]
    C = params["conv1_w"].shape[0]
    C2 = 2 * C
    out_dims = params["fc2_w"].shape[0]
    Cpad = _round_up(C, 128)
    C2pad = _round_up(C2, 128)
    Dopad = _round_up(out_dims, 128)

    # layer 1: conv_norm_act(in_channels, C, 3x3 s1), fused with PositionalEncoding.
    p1, H1, W1 = _im2col(x.astype(jnp.bfloat16), 3, 1)
    w1 = _pad_last(jnp.transpose(params["conv1_w"].reshape(C, -1)), Cpad).astype(jnp.bfloat16)
    b1 = _pad_last(params["conv1_b"][None, :], Cpad)
    pe = _pad_last(_positional_encoding(H1, W1, C // 4), Cpad)[None]     # (1, HW1, Cpad)
    y1 = conv_block(p1, w1, b1, add=pe)                                  # (B, HW1, Cpad)

    # layer 3: conv_norm_act(C, 2C, 5x5, down_ratio=0.25 -> stride 2).
    y1r = y1[:, :, :C].astype(jnp.bfloat16).reshape(B, H1, W1, C)
    p2, H2, W2 = _im2col(y1r, 5, 2)
    w2 = _pad_last(jnp.transpose(params["conv2_w"].reshape(C2, -1)), C2pad).astype(jnp.bfloat16)
    b2 = _pad_last(params["conv2_b"][None, :], C2pad)
    y2 = conv_block(p2, w2, b2)                                          # (B, HW2, C2pad)

    # layer 4: ResConv(2C, 5x5 s1): x + ReLU(norm(conv(x))); global avg pool fused.
    y2r = y2[:, :, :C2].astype(jnp.bfloat16).reshape(B, H2, W2, C2)
    p3, _, _ = _im2col(y2r, 5, 1)
    w3 = _pad_last(jnp.transpose(params["conv3_w"].reshape(C2, -1)), C2pad).astype(jnp.bfloat16)
    b3 = _pad_last(params["conv3_b"][None, :], C2pad)
    pooled = conv_block(p3, w3, b3, add=y2, pool=True)[:, 0, :]          # (B, C2pad)

    # layer 5: GlobalAvgPoolSequence(Linear(2C,128), ReLU, Linear(128,out_dims)).
    fc1_w = jnp.pad(jnp.transpose(params["fc1_w"]), ((0, C2pad - C2), (0, 0)))  # (C2pad,128)
    fc1_b = params["fc1_b"][None, :]
    fc2_w = _pad_last(jnp.transpose(params["fc2_w"]), Dopad)             # (128, Dopad)
    fc2_b = _pad_last(params["fc2_b"][None, :], Dopad)
    logits = mlp_head(pooled, fc1_w, fc1_b, fc2_w, fc2_b)                # (B, Dopad)
    return logits[:, :out_dims]


if __name__ == "__main__":
    key = jax.random.PRNGKey(0)
    pkey, xkey = jax.random.split(key)

    B, in_channels, H, W = 2, 4, 16, 16
    C, out_dims = 32, 10

    params = init_params(pkey, in_channels, out_dims, C=C)
    x = jax.random.normal(xkey, (B, in_channels, H, W), jnp.float32)

    fwd = jax.jit(inr_cls_wide4_forward)
    out = jax.block_until_ready(fwd(x, params))

    assert out.shape == (B, out_dims), out.shape
    assert out.dtype == jnp.float32
    assert bool(jnp.all(jnp.isfinite(out)))
    print("KERNEL_OK")
</pallas_src>

<mosaic_0001>
module attributes {stable_mosaic.version = 11 : i64} {
  func.func @kernel(%arg0: i32, %arg1: i32, %arg2: memref<1x256x36xbf16, #tpu.memory_space<vmem>>, %arg3: memref<36x128xbf16, #tpu.memory_space<vmem>>, %arg4: memref<1x128xf32, #tpu.memory_space<vmem>>, %arg5: memref<1x256x128xf32, #tpu.memory_space<vmem>>, %arg6: memref<1x256x128xf32, #tpu.memory_space<vmem>>, %arg7: memref<1x128xf32, #tpu.memory_space<vmem>>, %arg8: memref<1x128xf32, #tpu.memory_space<vmem>>) attributes {dimension_semantics = [#tpu.dimension_semantics<parallel>, #tpu.dimension_semantics<arbitrary>], iteration_bounds = array<i64: 2, 1>, scalar_prefetch = 0 : i64, scratch_operands = 2 : i64, tpu.core_type = #tpu.core_type<tc>, window_params = [{transform_indices = @transform_0, window_bounds = array<i64: 1, 256, 36>}, {pipeline_mode = #tpu.pipeline_mode<synchronous>, transform_indices = @transform_1, window_bounds = array<i64: 36, 128>}, {pipeline_mode = #tpu.pipeline_mode<synchronous>, transform_indices = @transform_2, window_bounds = array<i64: 1, 128>}, {pipeline_mode = #tpu.pipeline_mode<synchronous>, transform_indices = @transform_3, window_bounds = array<i64: 1, 256, 128>}, {transform_indices = @transform_4, window_bounds = array<i64: 1, 256, 128>}]} {
    %c0_i32 = arith.constant 0 : i32
    %0 = arith.cmpi eq, %arg1, %c0_i32 : i32
    %1 = arith.extui %0 : i1 to i32
    %c0_i32_0 = arith.constant 0 : i32
    %2 = arith.cmpi ne, %1, %c0_i32_0 : i32
    scf.if %2 {
      %cst_21 = arith.constant 0.000000e+00 : f32
      %30 = vector.broadcast %cst_21 : f32 to vector<1x128xf32>
      %c0_22 = arith.constant 0 : index
      %c0_23 = arith.constant 0 : index
      %31 = vector.load %arg7[%c0_22, %c0_23] : memref<1x128xf32, #tpu.memory_space<vmem>>, vector<1x128xf32>
      tpu.vector_store %arg7[%c0_22, %c0_23], %30 {strides = array<i32>} : memref<1x128xf32, #tpu.memory_space<vmem>>, vector<1x128xf32>,
      %cst_24 = arith.constant 0.000000e+00 : f32
      %32 = vector.broadcast %cst_24 : f32 to vector<1x128xf32>
      %c0_25 = arith.constant 0 : index
      %c0_26 = arith.constant 0 : index
      %33 = vector.load %arg8[%c0_25, %c0_26] : memref<1x128xf32, #tpu.memory_space<vmem>>, vector<1x128xf32>
      tpu.vector_store %arg8[%c0_25, %c0_26], %32 {strides = array<i32>} : memref<1x128xf32, #tpu.memory_space<vmem>>, vector<1x128xf32>,
    } else {
    }
    %c0 = arith.constant 0 : index
    %c0_1 = arith.constant 0 : index
    %c0_2 = arith.constant 0 : index
    %3 = vector.load %arg2[%c0, %c0_1, %c0_2] : memref<1x256x36xbf16, #tpu.memory_space<vmem>>, vector<1x256x36xbf16>
    %4 = vector.shape_cast %3 : vector<1x256x36xbf16> to vector<256x36xbf16>
    %c0_3 = arith.constant 0 : index
    %c0_4 = arith.constant 0 : index
    %5 = vector.load %arg3[%c0_3, %c0_4] : memref<36x128xbf16, #tpu.memory_space<vmem>>, vector<36x128xbf16>
    %cst = arith.constant dense<0.000000e+00> : vector<256x128xf32>
    %6 = tpu.matmul %4, %5, %cst {dimension_numbers = #tpu.dot_dimension_numbers<[1], [0], [0], [1], [0, 0, 1, 1], [], []>} : vector<256x36xbf16>, vector<36x128xbf16>, vector<256x128xf32> -> vector<256x128xf32>
    %c0_5 = arith.constant 0 : index
    %c0_6 = arith.constant 0 : index
    %7 = vector.load %arg4[%c0_5, %c0_6] : memref<1x128xf32, #tpu.memory_space<vmem>>, vector<1x128xf32>
    %8 = vector.broadcast %7 : vector<1x128xf32> to vector<256x128xf32>
    %9 = arith.addf %6, %8 : vector<256x128xf32>
    %c0_7 = arith.constant 0 : index
    %c0_8 = arith.constant 0 : index
    %10 = vector.load %arg7[%c0_7, %c0_8] : memref<1x128xf32, #tpu.memory_space<vmem>>, vector<1x128xf32>
    %cst_9 = arith.constant dense<0.000000e+00> : vector<128xf32>
    %11 = vector.multi_reduction <add>, %9, %cst_9 [0] : vector<256x128xf32> to vector<128xf32>
    %12 = vector.shape_cast %11 : vector<128xf32> to vector<1x128xf32>
    %13 = arith.addf %10, %12 : vector<1x128xf32>
    %c0_10 = arith.constant 0 : index
    %c0_11 = arith.constant 0 : index
    %14 = vector.load %arg7[%c0_10, %c0_11] : memref<1x128xf32, #tpu.memory_space<vmem>>, vector<1x128xf32>
    tpu.vector_store %arg7[%c0_10, %c0_11], %13 {strides = array<i32>} : memref<1x128xf32, #tpu.memory_space<vmem>>, vector<1x128xf32>,
    %c0_12 = arith.constant 0 : index
    %c0_13 = arith.constant 0 : index
    %15 = vector.load %arg8[%c0_12, %c0_13] : memref<1x128xf32, #tpu.memory_space<vmem>>, vector<1x128xf32>
    %16 = arith.mulf %9, %9 : vector<256x128xf32>
    %cst_14 = arith.constant dense<0.000000e+00> : vector<128xf32>
    %17 = vector.multi_reduction <add>, %16, %cst_14 [0] : vector<256x128xf32> to vector<128xf32>
    %18 = vector.shape_cast %17 : vector<128xf32> to vector<1x128xf32>
    %19 = arith.addf %15, %18 : vector<1x128xf32>
    %c0_15 = arith.constant 0 : index
    %c0_16 = arith.constant 0 : index
    %20 = vector.load %arg8[%c0_15, %c0_16] : memref<1x128xf32, #tpu.memory_space<vmem>>, vector<1x128xf32>
    tpu.vector_store %arg8[%c0_15, %c0_16], %19 {strides = array<i32>} : memref<1x128xf32, #tpu.memory_space<vmem>>, vector<1x128xf32>,
    %c256_i32 = arith.constant 256 : i32
    %21 = arith.muli %arg1, %c256_i32 : i32
    %22 = tpu.assume_multiple %21, 8 : i32
    %c0_17 = arith.constant 0 : index
    %23 = arith.index_cast %22 : i32 to index
    %c0_18 = arith.constant 0 : index
    %24 = vector.load %arg6[%c0_17, %23, %c0_18] : memref<1x256x128xf32, #tpu.memory_space<vmem>>, vector<1x256x128xf32>
    %25 = vector.shape_cast %24 : vector<1x256x128xf32> to vector<256x128xf32>
    %26 = vector.shape_cast %9 : vector<256x128xf32> to vector<1x256x128xf32>
    tpu.vector_store %arg6[%c0_17, %23, %c0_18], %26 {strides = array<i32>} : memref<1x256x128xf32, #tpu.memory_space<vmem>>, vector<1x256x128xf32>,
    %c0_i32_19 = arith.constant 0 : i32
    %27 = arith.cmpi eq, %arg1, %c0_i32_19 : i32
    %28 = arith.extui %27 : i1 to i32
    %c0_i32_20 = arith.constant 0 : i32
    %29 = arith.cmpi ne, %28, %c0_i32_20 : i32
    scf.if %29 {
      %c0_21 = arith.constant 0 : index
      %c0_22 = arith.constant 0 : index
      %30 = vector.load %arg7[%c0_21, %c0_22] : memref<1x128xf32, #tpu.memory_space<vmem>>, vector<1x128xf32>
      %cst_23 = arith.constant 3.906250e-03 : f32
      %31 = vector.broadcast %cst_23 : f32 to vector<1x128xf32>
      %32 = arith.mulf %30, %31 : vector<1x128xf32>
      %c0_24 = arith.constant 0 : index
      %c0_25 = arith.constant 0 : index
      %33 = vector.load %arg8[%c0_24, %c0_25] : memref<1x128xf32, #tpu.memory_space<vmem>>, vector<1x128xf32>
      %cst_26 = arith.constant 3.906250e-03 : f32
      %34 = vector.broadcast %cst_26 : f32 to vector<1x128xf32>
      %35 = arith.mulf %33, %34 : vector<1x128xf32>
      %36 = arith.mulf %32, %32 : vector<1x128xf32>
      %37 = arith.subf %35, %36 : vector<1x128xf32>
      %cst_27 = arith.constant 9.99999974E-6 : f32
      %38 = vector.broadcast %cst_27 : f32 to vector<1x128xf32>
      %39 = arith.addf %37, %38 : vector<1x128xf32>
      %40 = math.rsqrt %39 : vector<1x128xf32>
      %c0_28 = arith.constant 0 : index
      %c0_29 = arith.constant 0 : index
      %c0_30 = arith.constant 0 : index
      %41 = vector.load %arg6[%c0_28, %c0_29, %c0_30] : memref<1x256x128xf32, #tpu.memory_space<vmem>>, vector<1x256x128xf32>
      %42 = vector.shape_cast %41 : vector<1x256x128xf32> to vector<256x128xf32>
      %43 = vector.broadcast %32 : vector<1x128xf32> to vector<256x128xf32>
      %44 = arith.subf %42, %43 : vector<256x128xf32>
      %45 = vector.broadcast %40 : vector<1x128xf32> to vector<256x128xf32>
      %46 = arith.mulf %44, %45 : vector<256x128xf32>
      %cst_31 = arith.constant 0.000000e+00 : f32
      %47 = vector.broadcast %cst_31 : f32 to vector<256x128xf32>
      %48 = arith.maximumf %46, %47 : vector<256x128xf32>
      %c0_32 = arith.constant 0 : index
      %c0_33 = arith.constant 0 : index
      %c0_34 = arith.constant 0 : index
      %49 = vector.load %arg5[%c0_32, %c0_33, %c0_34] : memref<1x256x128xf32, #tpu.memory_space<vmem>>, vector<1x256x128xf32>
      %50 = vector.shape_cast %49 : vector<1x256x128xf32> to vector<256x128xf32>
      %51 = arith.addf %48, %50 : vector<256x128xf32>
      %c0_35 = arith.constant 0 : index
      %c0_36 = arith.constant 0 : index
      %c0_37 = arith.constant 0 : index
      %52 = vector.load %arg6[%c0_35, %c0_36, %c0_37] : memref<1x256x128xf32, #tpu.memory_space<vmem>>, vector<1x256x128xf32>
      %53 = vector.shape_cast %52 : vector<1x256x128xf32> to vector<256x128xf32>
      %54 = vector.shape_cast %51 : vector<256x128xf32> to vector<1x256x128xf32>
      tpu.vector_store %arg6[%c0_35, %c0_36, %c0_37], %54 {strides = array<i32>} : memref<1x256x128xf32, #tpu.memory_space<vmem>>, vector<1x256x128xf32>,
    } else {
    }
    return
  }
  func.func @transform_0(%arg0: i32, %arg1: i32) -> (i32, i32, i32) {
    %c0_i32 = arith.constant 0 : i32
    %c0_i32_0 = arith.constant 0 : i32
    return %arg0, %arg1, %c0_i32 : i32, i32, i32
  }
  func.func @transform_1(%arg0: i32, %arg1: i32) -> (i32, i32) {
    %c0_i32 = arith.constant 0 : i32
    %c0_i32_0 = arith.constant 0 : i32
    %c0_i32_1 = arith.constant 0 : i32
    return %c0_i32, %c0_i32_0 : i32, i32
  }
  func.func @transform_2(%arg0: i32, %arg1: i32) -> (i32, i32) {
    %c0_i32 = arith.constant 0 : i32
    %c0_i32_0 = arith.constant 0 : i32
    %c0_i32_1 = arith.constant 0 : i32
    return %c0_i32, %c0_i32_0 : i32, i32
  }
  func.func @transform_3(%arg0: i32, %arg1: i32) -> (i32, i32, i32) {
    %c0_i32 = arith.constant 0 : i32
    %c0_i32_0 = arith.constant 0 : i32
    %c0_i32_1 = arith.constant 0 : i32
    %c0_i32_2 = arith.constant 0 : i32
    return %c0_i32, %c0_i32_0, %c0_i32_1 : i32, i32, i32
  }
  func.func @transform_4(%arg0: i32, %arg1: i32) -> (i32, i32, i32) {
    %c0_i32 = arith.constant 0 : i32
    %c0_i32_0 = arith.constant 0 : i32
    %c0_i32_1 = arith.constant 0 : i32
    return %arg0, %c0_i32, %c0_i32_0 : i32, i32, i32
  }
}

module attributes {stable_mosaic.version = 11 : i64} {
  func.func @kernel(%arg0: i32, %arg1: i32, %arg2: memref<1x64x800xbf16, #tpu.memory_space<vmem>>, %arg3: memref<800x128xbf16, #tpu.memory_space<vmem>>, %arg4: memref<1x128xf32, #tpu.memory_space<vmem>>, %arg5: memref<1x64x128xf32, #tpu.memory_space<vmem>>, %arg6: memref<1x128xf32, #tpu.memory_space<vmem>>, %arg7: memref<1x128xf32, #tpu.memory_space<vmem>>) attributes {dimension_semantics = [#tpu.dimension_semantics<parallel>, #tpu.dimension_semantics<arbitrary>], iteration_bounds = array<i64: 2, 1>, scalar_prefetch = 0 : i64, scratch_operands = 2 : i64, tpu.core_type = #tpu.core_type<tc>, window_params = [{transform_indices = @transform_0, window_bounds = array<i64: 1, 64, 800>}, {pipeline_mode = #tpu.pipeline_mode<synchronous>, transform_indices = @transform_1, window_bounds = array<i64: 800, 128>}, {pipeline_mode = #tpu.pipeline_mode<synchronous>, transform_indices = @transform_2, window_bounds = array<i64: 1, 128>}, {transform_indices = @transform_3, window_bounds = array<i64: 1, 64, 128>}]} {
    %c0_i32 = arith.constant 0 : i32
    %0 = arith.cmpi eq, %arg1, %c0_i32 : i32
    %1 = arith.extui %0 : i1 to i32
    %c0_i32_0 = arith.constant 0 : i32
    %2 = arith.cmpi ne, %1, %c0_i32_0 : i32
    scf.if %2 {
      %cst_21 = arith.constant 0.000000e+00 : f32
      %30 = vector.broadcast %cst_21 : f32 to vector<1x128xf32>
      %c0_22 = arith.constant 0 : index
      %c0_23 = arith.constant 0 : index
      %31 = vector.load %arg6[%c0_22, %c0_23] : memref<1x128xf32, #tpu.memory_space<vmem>>, vector<1x128xf32>
      tpu.vector_store %arg6[%c0_22, %c0_23], %30 {strides = array<i32>} : memref<1x128xf32, #tpu.memory_space<vmem>>, vector<1x128xf32>,
      %cst_24 = arith.constant 0.000000e+00 : f32
      %32 = vector.broadcast %cst_24 : f32 to vector<1x128xf32>
      %c0_25 = arith.constant 0 : index
      %c0_26 = arith.constant 0 : index
      %33 = vector.load %arg7[%c0_25, %c0_26] : memref<1x128xf32, #tpu.memory_space<vmem>>, vector<1x128xf32>
      tpu.vector_store %arg7[%c0_25, %c0_26], %32 {strides = array<i32>} : memref<1x128xf32, #tpu.memory_space<vmem>>, vector<1x128xf32>,
    } else {
    }
    %c0 = arith.constant 0 : index
    %c0_1 = arith.constant 0 : index
    %c0_2 = arith.constant 0 : index
    %3 = vector.load %arg2[%c0, %c0_1, %c0_2] : memref<1x64x800xbf16, #tpu.memory_space<vmem>>, vector<1x64x800xbf16>
    %4 = vector.shape_cast %3 : vector<1x64x800xbf16> to vector<64x800xbf16>
    %c0_3 = arith.constant 0 : index
    %c0_4 = arith.constant 0 : index
    %5 = vector.load %arg3[%c0_3, %c0_4] : memref<800x128xbf16, #tpu.memory_space<vmem>>, vector<800x128xbf16>
    %cst = arith.constant dense<0.000000e+00> : vector<64x128xf32>
    %6 = tpu.matmul %4, %5, %cst {dimension_numbers = #tpu.dot_dimension_numbers<[1], [0], [0], [1], [0, 0, 1, 1], [], []>} : vector<64x800xbf16>, vector<800x128xbf16>, vector<64x128xf32> -> vector<64x128xf32>
    %c0_5 = arith.constant 0 : index
    %c0_6 = arith.constant 0 : index
    %7 = vector.load %arg4[%c0_5, %c0_6] : memref<1x128xf32, #tpu.memory_space<vmem>>, vector<1x128xf32>
    %8 = vector.broadcast %7 : vector<1x128xf32> to vector<64x128xf32>
    %9 = arith.addf %6, %8 : vector<64x128xf32>
    %c0_7 = arith.constant 0 : index
    %c0_8 = arith.constant 0 : index
    %10 = vector.load %arg6[%c0_7, %c0_8] : memref<1x128xf32, #tpu.memory_space<vmem>>, vector<1x128xf32>
    %cst_9 = arith.constant dense<0.000000e+00> : vector<128xf32>
    %11 = vector.multi_reduction <add>, %9, %cst_9 [0] : vector<64x128xf32> to vector<128xf32>
    %12 = vector.shape_cast %11 : vector<128xf32> to vector<1x128xf32>
    %13 = arith.addf %10, %12 : vector<1x128xf32>
    %c0_10 = arith.constant 0 : index
    %c0_11 = arith.constant 0 : index
    %14 = vector.load %arg6[%c0_10, %c0_11] : memref<1x128xf32, #tpu.memory_space<vmem>>, vector<1x128xf32>
    tpu.vector_store %arg6[%c0_10, %c0_11], %13 {strides = array<i32>} : memref<1x128xf32, #tpu.memory_space<vmem>>, vector<1x128xf32>,
    %c0_12 = arith.constant 0 : index
    %c0_13 = arith.constant 0 : index
    %15 = vector.load %arg7[%c0_12, %c0_13] : memref<1x128xf32, #tpu.memory_space<vmem>>, vector<1x128xf32>
    %16 = arith.mulf %9, %9 : vector<64x128xf32>
    %cst_14 = arith.constant dense<0.000000e+00> : vector<128xf32>
    %17 = vector.multi_reduction <add>, %16, %cst_14 [0] : vector<64x128xf32> to vector<128xf32>
    %18 = vector.shape_cast %17 : vector<128xf32> to vector<1x128xf32>
    %19 = arith.addf %15, %18 : vector<1x128xf32>
    %c0_15 = arith.constant 0 : index
    %c0_16 = arith.constant 0 : index
    %20 = vector.load %arg7[%c0_15, %c0_16] : memref<1x128xf32, #tpu.memory_space<vmem>>, vector<1x128xf32>
    tpu.vector_store %arg7[%c0_15, %c0_16], %19 {strides = array<i32>} : memref<1x128xf32, #tpu.memory_space<vmem>>, vector<1x128xf32>,
    %c64_i32 = arith.constant 64 : i32
    %21 = arith.muli %arg1, %c64_i32 : i32
    %22 = tpu.assume_multiple %21, 8 : i32
    %c0_17 = arith.constant 0 : index
    %23 = arith.index_cast %22 : i32 to index
    %c0_18 = arith.constant 0 : index
    %24 = vector.load %arg5[%c0_17, %23, %c0_18] : memref<1x64x128xf32, #tpu.memory_space<vmem>>, vector<1x64x128xf32>
    %25 = vector.shape_cast %24 : vector<1x64x128xf32> to vector<64x128xf32>
    %26 = vector.shape_cast %9 : vector<64x128xf32> to vector<1x64x128xf32>
    tpu.vector_store %arg5[%c0_17, %23, %c0_18], %26 {strides = array<i32>} : memref<1x64x128xf32, #tpu.memory_space<vmem>>, vector<1x64x128xf32>,
    %c0_i32_19 = arith.constant 0 : i32
    %27 = arith.cmpi eq, %arg1, %c0_i32_19 : i32
    %28 = arith.extui %27 : i1 to i32
    %c0_i32_20 = arith.constant 0 : i32
    %29 = arith.cmpi ne, %28, %c0_i32_20 : i32
    scf.if %29 {
      %c0_21 = arith.constant 0 : index
      %c0_22 = arith.constant 0 : index
      %30 = vector.load %arg6[%c0_21, %c0_22] : memref<1x128xf32, #tpu.memory_space<vmem>>, vector<1x128xf32>
      %cst_23 = arith.constant 1.562500e-02 : f32
      %31 = vector.broadcast %cst_23 : f32 to vector<1x128xf32>
      %32 = arith.mulf %30, %31 : vector<1x128xf32>
      %c0_24 = arith.constant 0 : index
      %c0_25 = arith.constant 0 : index
      %33 = vector.load %arg7[%c0_24, %c0_25] : memref<1x128xf32, #tpu.memory_space<vmem>>, vector<1x128xf32>
      %cst_26 = arith.constant 1.562500e-02 : f32
      %34 = vector.broadcast %cst_26 : f32 to vector<1x128xf32>
      %35 = arith.mulf %33, %34 : vector<1x128xf32>
      %36 = arith.mulf %32, %32 : vector<1x128xf32>
      %37 = arith.subf %35, %36 : vector<1x128xf32>
      %cst_27 = arith.constant 9.99999974E-6 : f32
      %38 = vector.broadcast %cst_27 : f32 to vector<1x128xf32>
      %39 = arith.addf %37, %38 : vector<1x128xf32>
      %40 = math.rsqrt %39 : vector<1x128xf32>
      %c0_28 = arith.constant 0 : index
      %c0_29 = arith.constant 0 : index
      %c0_30 = arith.constant 0 : index
      %41 = vector.load %arg5[%c0_28, %c0_29, %c0_30] : memref<1x64x128xf32, #tpu.memory_space<vmem>>, vector<1x64x128xf32>
      %42 = vector.shape_cast %41 : vector<1x64x128xf32> to vector<64x128xf32>
      %43 = vector.broadcast %32 : vector<1x128xf32> to vector<64x128xf32>
      %44 = arith.subf %42, %43 : vector<64x128xf32>
      %45 = vector.broadcast %40 : vector<1x128xf32> to vector<64x128xf32>
      %46 = arith.mulf %44, %45 : vector<64x128xf32>
      %cst_31 = arith.constant 0.000000e+00 : f32
      %47 = vector.broadcast %cst_31 : f32 to vector<64x128xf32>
      %48 = arith.maximumf %46, %47 : vector<64x128xf32>
      %c0_32 = arith.constant 0 : index
      %c0_33 = arith.constant 0 : index
      %c0_34 = arith.constant 0 : index
      %49 = vector.load %arg5[%c0_32, %c0_33, %c0_34] : memref<1x64x128xf32, #tpu.memory_space<vmem>>, vector<1x64x128xf32>
      %50 = vector.shape_cast %49 : vector<1x64x128xf32> to vector<64x128xf32>
      %51 = vector.shape_cast %48 : vector<64x128xf32> to vector<1x64x128xf32>
      tpu.vector_store %arg5[%c0_32, %c0_33, %c0_34], %51 {strides = array<i32>} : memref<1x64x128xf32, #tpu.memory_space<vmem>>, vector<1x64x128xf32>,
    } else {
    }
    return
  }
  func.func @transform_0(%arg0: i32, %arg1: i32) -> (i32, i32, i32) {
    %c0_i32 = arith.constant 0 : i32
    %c0_i32_0 = arith.constant 0 : i32
    return %arg0, %arg1, %c0_i32 : i32, i32, i32
  }
  func.func @transform_1(%arg0: i32, %arg1: i32) -> (i32, i32) {
    %c0_i32 = arith.constant 0 : i32
    %c0_i32_0 = arith.constant 0 : i32
    %c0_i32_1 = arith.constant 0 : i32
    return %c0_i32, %c0_i32_0 : i32, i32
  }
  func.func @transform_2(%arg0: i32, %arg1: i32) -> (i32, i32) {
    %c0_i32 = arith.constant 0 : i32
    %c0_i32_0 = arith.constant 0 : i32
    %c0_i32_1 = arith.constant 0 : i32
    return %c0_i32, %c0_i32_0 : i32, i32
  }
  func.func @transform_3(%arg0: i32, %arg1: i32) -> (i32, i32, i32) {
    %c0_i32 = arith.constant 0 : i32
    %c0_i32_0 = arith.constant 0 : i32
    %c0_i32_1 = arith.constant 0 : i32
    return %arg0, %c0_i32, %c0_i32_0 : i32, i32, i32
  }
}

module attributes {stable_mosaic.version = 11 : i64} {
  func.func @kernel(%arg0: i32, %arg1: i32, %arg2: memref<1x64x1600xbf16, #tpu.memory_space<vmem>>, %arg3: memref<1600x128xbf16, #tpu.memory_space<vmem>>, %arg4: memref<1x128xf32, #tpu.memory_space<vmem>>, %arg5: memref<1x64x128xf32, #tpu.memory_space<vmem>>, %arg6: memref<1x1x128xf32, #tpu.memory_space<vmem>>, %arg7: memref<1x64x128xf32, #tpu.memory_space<vmem>>, %arg8: memref<1x128xf32, #tpu.memory_space<vmem>>, %arg9: memref<1x128xf32, #tpu.memory_space<vmem>>) attributes {dimension_semantics = [#tpu.dimension_semantics<parallel>, #tpu.dimension_semantics<arbitrary>], iteration_bounds = array<i64: 2, 1>, scalar_prefetch = 0 : i64, scratch_operands = 3 : i64, tpu.core_type = #tpu.core_type<tc>, window_params = [{transform_indices = @transform_0, window_bounds = array<i64: 1, 64, 1600>}, {pipeline_mode = #tpu.pipeline_mode<synchronous>, transform_indices = @transform_1, window_bounds = array<i64: 1600, 128>}, {pipeline_mode = #tpu.pipeline_mode<synchronous>, transform_indices = @transform_2, window_bounds = array<i64: 1, 128>}, {transform_indices = @transform_3, window_bounds = array<i64: 1, 64, 128>}, {transform_indices = @transform_4, window_bounds = array<i64: 1, 1, 128>}]} {
    %c0_i32 = arith.constant 0 : i32
    %0 = arith.cmpi eq, %arg1, %c0_i32 : i32
    %1 = arith.extui %0 : i1 to i32
    %c0_i32_0 = arith.constant 0 : i32
    %2 = arith.cmpi ne, %1, %c0_i32_0 : i32
    scf.if %2 {
      %cst_21 = arith.constant 0.000000e+00 : f32
      %30 = vector.broadcast %cst_21 : f32 to vector<1x128xf32>
      %c0_22 = arith.constant 0 : index
      %c0_23 = arith.constant 0 : index
      %31 = vector.load %arg8[%c0_22, %c0_23] : memref<1x128xf32, #tpu.memory_space<vmem>>, vector<1x128xf32>
      tpu.vector_store %arg8[%c0_22, %c0_23], %30 {strides = array<i32>} : memref<1x128xf32, #tpu.memory_space<vmem>>, vector<1x128xf32>,
      %cst_24 = arith.constant 0.000000e+00 : f32
      %32 = vector.broadcast %cst_24 : f32 to vector<1x128xf32>
      %c0_25 = arith.constant 0 : index
      %c0_26 = arith.constant 0 : index
      %33 = vector.load %arg9[%c0_25, %c0_26] : memref<1x128xf32, #tpu.memory_space<vmem>>, vector<1x128xf32>
      tpu.vector_store %arg9[%c0_25, %c0_26], %32 {strides = array<i32>} : memref<1x128xf32, #tpu.memory_space<vmem>>, vector<1x128xf32>,
    } else {
    }
    %c0 = arith.constant 0 : index
    %c0_1 = arith.constant 0 : index
    %c0_2 = arith.constant 0 : index
    %3 = vector.load %arg2[%c0, %c0_1, %c0_2] : memref<1x64x1600xbf16, #tpu.memory_space<vmem>>, vector<1x64x1600xbf16>
    %4 = vector.shape_cast %3 : vector<1x64x1600xbf16> to vector<64x1600xbf16>
    %c0_3 = arith.constant 0 : index
    %c0_4 = arith.constant 0 : index
    %5 = vector.load %arg3[%c0_3, %c0_4] : memref<1600x128xbf16, #tpu.memory_space<vmem>>, vector<1600x128xbf16>
    %cst = arith.constant dense<0.000000e+00> : vector<64x128xf32>
    %6 = tpu.matmul %4, %5, %cst {dimension_numbers = #tpu.dot_dimension_numbers<[1], [0], [0], [1], [0, 0, 1, 1], [], []>} : vector<64x1600xbf16>, vector<1600x128xbf16>, vector<64x128xf32> -> vector<64x128xf32>
    %c0_5 = arith.constant 0 : index
    %c0_6 = arith.constant 0 : index
    %7 = vector.load %arg4[%c0_5, %c0_6] : memref<1x128xf32, #tpu.memory_space<vmem>>, vector<1x128xf32>
    %8 = vector.broadcast %7 : vector<1x128xf32> to vector<64x128xf32>
    %9 = arith.addf %6, %8 : vector<64x128xf32>
    %c0_7 = arith.constant 0 : index
    %c0_8 = arith.constant 0 : index
    %10 = vector.load %arg8[%c0_7, %c0_8] : memref<1x128xf32, #tpu.memory_space<vmem>>, vector<1x128xf32>
    %cst_9 = arith.constant dense<0.000000e+00> : vector<128xf32>
    %11 = vector.multi_reduction <add>, %9, %cst_9 [0] : vector<64x128xf32> to vector<128xf32>
    %12 = vector.shape_cast %11 : vector<128xf32> to vector<1x128xf32>
    %13 = arith.addf %10, %12 : vector<1x128xf32>
    %c0_10 = arith.constant 0 : index
    %c0_11 = arith.constant 0 : index
    %14 = vector.load %arg8[%c0_10, %c0_11] : memref<1x128xf32, #tpu.memory_space<vmem>>, vector<1x128xf32>
    tpu.vector_store %arg8[%c0_10, %c0_11], %13 {strides = array<i32>} : memref<1x128xf32, #tpu.memory_space<vmem>>, vector<1x128xf32>,
    %c0_12 = arith.constant 0 : index
    %c0_13 = arith.constant 0 : index
    %15 = vector.load %arg9[%c0_12, %c0_13] : memref<1x128xf32, #tpu.memory_space<vmem>>, vector<1x128xf32>
    %16 = arith.mulf %9, %9 : vector<64x128xf32>
    %cst_14 = arith.constant dense<0.000000e+00> : vector<128xf32>
    %17 = vector.multi_reduction <add>, %16, %cst_14 [0] : vector<64x128xf32> to vector<128xf32>
    %18 = vector.shape_cast %17 : vector<128xf32> to vector<1x128xf32>
    %19 = arith.addf %15, %18 : vector<1x128xf32>
    %c0_15 = arith.constant 0 : index
    %c0_16 = arith.constant 0 : index
    %20 = vector.load %arg9[%c0_15, %c0_16] : memref<1x128xf32, #tpu.memory_space<vmem>>, vector<1x128xf32>
    tpu.vector_store %arg9[%c0_15, %c0_16], %19 {strides = array<i32>} : memref<1x128xf32, #tpu.memory_space<vmem>>, vector<1x128xf32>,
    %c64_i32 = arith.constant 64 : i32
    %21 = arith.muli %arg1, %c64_i32 : i32
    %22 = tpu.assume_multiple %21, 8 : i32
    %c0_17 = arith.constant 0 : index
    %23 = arith.index_cast %22 : i32 to index
    %c0_18 = arith.constant 0 : index
    %24 = vector.load %arg7[%c0_17, %23, %c0_18] : memref<1x64x128xf32, #tpu.memory_space<vmem>>, vector<1x64x128xf32>
    %25 = vector.shape_cast %24 : vector<1x64x128xf32> to vector<64x128xf32>
    %26 = vector.shape_cast %9 : vector<64x128xf32> to vector<1x64x128xf32>
    tpu.vector_store %arg7[%c0_17, %23, %c0_18], %26 {strides = array<i32>} : memref<1x64x128xf32, #tpu.memory_space<vmem>>, vector<1x64x128xf32>,
    %c0_i32_19 = arith.constant 0 : i32
    %27 = arith.cmpi eq, %arg1, %c0_i32_19 : i32
    %28 = arith.extui %27 : i1 to i32
    %c0_i32_20 = arith.constant 0 : i32
    %29 = arith.cmpi ne, %28, %c0_i32_20 : i32
    scf.if %29 {
      %c0_21 = arith.constant 0 : index
      %c0_22 = arith.constant 0 : index
      %30 = vector.load %arg8[%c0_21, %c0_22] : memref<1x128xf32, #tpu.memory_space<vmem>>, vector<1x128xf32>
      %cst_23 = arith.constant 1.562500e-02 : f32
      %31 = vector.broadcast %cst_23 : f32 to vector<1x128xf32>
      %32 = arith.mulf %30, %31 : vector<1x128xf32>
      %c0_24 = arith.constant 0 : index
      %c0_25 = arith.constant 0 : index
      %33 = vector.load %arg9[%c0_24, %c0_25] : memref<1x128xf32, #tpu.memory_space<vmem>>, vector<1x128xf32>
      %cst_26 = arith.constant 1.562500e-02 : f32
      %34 = vector.broadcast %cst_26 : f32 to vector<1x128xf32>
      %35 = arith.mulf %33, %34 : vector<1x128xf32>
      %36 = arith.mulf %32, %32 : vector<1x128xf32>
      %37 = arith.subf %35, %36 : vector<1x128xf32>
      %cst_27 = arith.constant 9.99999974E-6 : f32
      %38 = vector.broadcast %cst_27 : f32 to vector<1x128xf32>
      %39 = arith.addf %37, %38 : vector<1x128xf32>
      %40 = math.rsqrt %39 : vector<1x128xf32>
      %c0_28 = arith.constant 0 : index
      %c0_29 = arith.constant 0 : index
      %c0_30 = arith.constant 0 : index
      %41 = vector.load %arg7[%c0_28, %c0_29, %c0_30] : memref<1x64x128xf32, #tpu.memory_space<vmem>>, vector<1x64x128xf32>
      %42 = vector.shape_cast %41 : vector<1x64x128xf32> to vector<64x128xf32>
      %43 = vector.broadcast %32 : vector<1x128xf32> to vector<64x128xf32>
      %44 = arith.subf %42, %43 : vector<64x128xf32>
      %45 = vector.broadcast %40 : vector<1x128xf32> to vector<64x128xf32>
      %46 = arith.mulf %44, %45 : vector<64x128xf32>
      %cst_31 = arith.constant 0.000000e+00 : f32
      %47 = vector.broadcast %cst_31 : f32 to vector<64x128xf32>
      %48 = arith.maximumf %46, %47 : vector<64x128xf32>
      %c0_32 = arith.constant 0 : index
      %c0_33 = arith.constant 0 : index
      %c0_34 = arith.constant 0 : index
      %49 = vector.load %arg5[%c0_32, %c0_33, %c0_34] : memref<1x64x128xf32, #tpu.memory_space<vmem>>, vector<1x64x128xf32>
      %50 = vector.shape_cast %49 : vector<1x64x128xf32> to vector<64x128xf32>
      %51 = arith.addf %48, %50 : vector<64x128xf32>
      %cst_35 = arith.constant dense<0.000000e+00> : vector<128xf32>
      %52 = vector.multi_reduction <add>, %51, %cst_35 [0] : vector<64x128xf32> to vector<128xf32>
      %53 = vector.shape_cast %52 : vector<128xf32> to vector<1x128xf32>
      %cst_36 = arith.constant 6.400000e+01 : f32
      %54 = vector.broadcast %cst_36 : f32 to vector<1x128xf32>
      %55 = arith.divf %53, %54 : vector<1x128xf32>
      %c0_37 = arith.constant 0 : index
      %c0_38 = arith.constant 0 : index
      %c0_39 = arith.constant 0 : index
      %56 = vector.load %arg6[%c0_37, %c0_38, %c0_39] : memref<1x1x128xf32, #tpu.memory_space<vmem>>, vector<1x1x128xf32>
      %57 = vector.shape_cast %56 : vector<1x1x128xf32> to vector<1x128xf32>
      %58 = vector.shape_cast %55 : vector<1x128xf32> to vector<1x1x128xf32>
      tpu.vector_store %arg6[%c0_37, %c0_38, %c0_39], %58 {strides = array<i32>} : memref<1x1x128xf32, #tpu.memory_space<vmem>>, vector<1x1x128xf32>,
    } else {
    }
    return
  }
  func.func @transform_0(%arg0: i32, %arg1: i32) -> (i32, i32, i32) {
    %c0_i32 = arith.constant 0 : i32
    %c0_i32_0 = arith.constant 0 : i32
    return %arg0, %arg1, %c0_i32 : i32, i32, i32
  }
  func.func @transform_1(%arg0: i32, %arg1: i32) -> (i32, i32) {
    %c0_i32 = arith.constant 0 : i32
    %c0_i32_0 = arith.constant 0 : i32
    %c0_i32_1 = arith.constant 0 : i32
    return %c0_i32, %c0_i32_0 : i32, i32
  }
  func.func @transform_2(%arg0: i32, %arg1: i32) -> (i32, i32) {
    %c0_i32 = arith.constant 0 : i32
    %c0_i32_0 = arith.constant 0 : i32
    %c0_i32_1 = arith.constant 0 : i32
    return %c0_i32, %c0_i32_0 : i32, i32
  }
  func.func @transform_3(%arg0: i32, %arg1: i32) -> (i32, i32, i32) {
    %c0_i32 = arith.constant 0 : i32
    %c0_i32_0 = arith.constant 0 : i32
    %c0_i32_1 = arith.constant 0 : i32
    return %arg0, %c0_i32, %c0_i32_0 : i32, i32, i32
  }
  func.func @transform_4(%arg0: i32, %arg1: i32) -> (i32, i32, i32) {
    %c0_i32 = arith.constant 0 : i32
    %c0_i32_0 = arith.constant 0 : i32
    %c0_i32_1 = arith.constant 0 : i32
    return %arg0, %c0_i32, %c0_i32_0 : i32, i32, i32
  }
}

module attributes {stable_mosaic.version = 11 : i64} {
  func.func @_head_kernel(%arg0: i32, %arg1: memref<2x128xf32, #tpu.memory_space<vmem>>, %arg2: memref<128x128xf32, #tpu.memory_space<vmem>>, %arg3: memref<1x128xf32, #tpu.memory_space<vmem>>, %arg4: memref<128x128xf32, #tpu.memory_space<vmem>>, %arg5: memref<1x128xf32, #tpu.memory_space<vmem>>, %arg6: memref<2x128xf32, #tpu.memory_space<vmem>>) attributes {dimension_semantics = [#tpu.dimension_semantics<arbitrary>], iteration_bounds = array<i64: 1>, scalar_prefetch = 0 : i64, scratch_operands = 0 : i64, tpu.core_type = #tpu.core_type<tc>, window_params = [{pipeline_mode = #tpu.pipeline_mode<synchronous>, transform_indices = @transform_0, window_bounds = array<i64: 2, 128>}, {pipeline_mode = #tpu.pipeline_mode<synchronous>, transform_indices = @transform_1, window_bounds = array<i64: 128, 128>}, {pipeline_mode = #tpu.pipeline_mode<synchronous>, transform_indices = @transform_2, window_bounds = array<i64: 1, 128>}, {pipeline_mode = #tpu.pipeline_mode<synchronous>, transform_indices = @transform_3, window_bounds = array<i64: 128, 128>}, {pipeline_mode = #tpu.pipeline_mode<synchronous>, transform_indices = @transform_4, window_bounds = array<i64: 1, 128>}, {pipeline_mode = #tpu.pipeline_mode<synchronous>, transform_indices = @transform_5, window_bounds = array<i64: 2, 128>}]} {
    %c0 = arith.constant 0 : index
    %c0_0 = arith.constant 0 : index
    %0 = vector.load %arg1[%c0, %c0_0] : memref<2x128xf32, #tpu.memory_space<vmem>>, vector<2x128xf32>
    %c0_1 = arith.constant 0 : index
    %c0_2 = arith.constant 0 : index
    %1 = vector.load %arg2[%c0_1, %c0_2] : memref<128x128xf32, #tpu.memory_space<vmem>>, vector<128x128xf32>
    %cst = arith.constant dense<0.000000e+00> : vector<2x128xf32>
    %2 = tpu.matmul %0, %1, %cst {dimension_numbers = #tpu.dot_dimension_numbers<[1], [0], [0], [1], [0, 0, 1, 1], [], []>} : vector<2x128xf32>, vector<128x128xf32>, vector<2x128xf32> -> vector<2x128xf32>
    %c0_3 = arith.constant 0 : index
    %c0_4 = arith.constant 0 : index
    %3 = vector.load %arg3[%c0_3, %c0_4] : memref<1x128xf32, #tpu.memory_space<vmem>>, vector<1x128xf32>
    %4 = vector.broadcast %3 : vector<1x128xf32> to vector<2x128xf32>
    %5 = arith.addf %2, %4 : vector<2x128xf32>
    %cst_5 = arith.constant 0.000000e+00 : f32
    %6 = vector.broadcast %cst_5 : f32 to vector<2x128xf32>
    %7 = arith.maximumf %5, %6 : vector<2x128xf32>
    %c0_6 = arith.constant 0 : index
    %c0_7 = arith.constant 0 : index
    %8 = vector.load %arg4[%c0_6, %c0_7] : memref<128x128xf32, #tpu.memory_space<vmem>>, vector<128x128xf32>
    %cst_8 = arith.constant dense<0.000000e+00> : vector<2x128xf32>
    %9 = tpu.matmul %7, %8, %cst_8 {dimension_numbers = #tpu.dot_dimension_numbers<[1], [0], [0], [1], [0, 0, 1, 1], [], []>} : vector<2x128xf32>, vector<128x128xf32>, vector<2x128xf32> -> vector<2x128xf32>
    %c0_9 = arith.constant 0 : index
    %c0_10 = arith.constant 0 : index
    %10 = vector.load %arg5[%c0_9, %c0_10] : memref<1x128xf32, #tpu.memory_space<vmem>>, vector<1x128xf32>
    %11 = vector.broadcast %10 : vector<1x128xf32> to vector<2x128xf32>
    %12 = arith.addf %9, %11 : vector<2x128xf32>
    %c0_11 = arith.constant 0 : index
    %c0_12 = arith.constant 0 : index
    %13 = vector.load %arg6[%c0_11, %c0_12] : memref<2x128xf32, #tpu.memory_space<vmem>>, vector<2x128xf32>
    tpu.vector_store %arg6[%c0_11, %c0_12], %12 {strides = array<i32>} : memref<2x128xf32, #tpu.memory_space<vmem>>, vector<2x128xf32>,
    return
  }
  func.func @transform_0(%arg0: i32) -> (i32, i32) {
    %c0_i32 = arith.constant 0 : i32
    %c0_i32_0 = arith.constant 0 : i32
    %c0_i32_1 = arith.constant 0 : i32
    return %c0_i32, %c0_i32_0 : i32, i32
  }
  func.func @transform_1(%arg0: i32) -> (i32, i32) {
    %c0_i32 = arith.constant 0 : i32
    %c0_i32_0 = arith.constant 0 : i32
    %c0_i32_1 = arith.constant 0 : i32
    return %c0_i32, %c0_i32_0 : i32, i32
  }
  func.func @transform_2(%arg0: i32) -> (i32, i32) {
    %c0_i32 = arith.constant 0 : i32
    %c0_i32_0 = arith.constant 0 : i32
    %c0_i32_1 = arith.constant 0 : i32
    return %c0_i32, %c0_i32_0 : i32, i32
  }
  func.func @transform_3(%arg0: i32) -> (i32, i32) {
    %c0_i32 = arith.constant 0 : i32
    %c0_i32_0 = arith.constant 0 : i32
    %c0_i32_1 = arith.constant 0 : i32
    return %c0_i32, %c0_i32_0 : i32, i32
  }
  func.func @transform_4(%arg0: i32) -> (i32, i32) {
    %c0_i32 = arith.constant 0 : i32
    %c0_i32_0 = arith.constant 0 : i32
    %c0_i32_1 = arith.constant 0 : i32
    return %c0_i32, %c0_i32_0 : i32, i32
  }
  func.func @transform_5(%arg0: i32) -> (i32, i32) {
    %c0_i32 = arith.constant 0 : i32
    %c0_i32_0 = arith.constant 0 : i32
    %c0_i32_1 = arith.constant 0 : i32
    return %c0_i32, %c0_i32_0 : i32, i32
  }
}

</mosaic_0001>

<bundles_post_ra>
// kernel: inr_cls_wide4_forward.4
= control target key start
LH: loop header
LB: loop body
LE: loop exit
PB: predicated region body
PF: predicated region fallthrough
CT: control target
= control target key end

     0   :  { %s1260_s15 = smov 0   ;;  %s1262_s16 = smov 0   ;;  %s1910_s0 = inlined_call_operand.vmem [shape: bf16[2,256,36], index: 0, kind: input, shape index: {}]   ;;  %s1911_s1 = inlined_call_operand.vmem [shape: bf16[36,128], index: 1, kind: input, shape index: {}]   ;;  %s1912_s2 = inlined_call_operand.vmem [shape: f32[1,128], index: 2, kind: input, shape index: {}]   ;;  %s1913_s3 = inlined_call_operand.vmem [shape: f32[1,256,128], index: 3, kind: input, shape index: {}]   ;;  %s1914_s4 = inlined_call_operand.vmem [shape: f32[2,256,128], index: 4, kind: output, shape index: {}]  }
   0x1   :  { %s1264_s17 = smov 0  }
   0x2 LB: > { %s26_s18 = sadd.s32 1, %s1228_s16  ;;  %p1054_p0 = scmp.ge.s32.totalorder %s1232_s17, 1  ;;  %s1232_s17 = sphi %s1264_s17, %s14_s17   ;;  %s1228_s16 = sphi %s1262_s16, %s1932_s16   ;;  %s1224_s15 = sphi %s1260_s15, %s1931_s15  }
   0x3   : > { %p28_p1 = scmp.ge.s32.totalorder %s26_s18, 2  ;;  %p181_p2 = scmp.lt.s32.totalorder %s1232_s17, 3 }
   0x5   : > { %s1934_s18 = smov (%p28_p1, %s26_s18), 0  ;;  %p182_p3 = pnand %p1054_p0, %p181_p2 }
   0x6   : > { %v1189_v0 = vld [vmem:[%s1911_s1] sm:$0xff] (!%p182_p3)   ;;  %v1190_v1 = vld [vmem:[%s1911_s1 + $0x8] sm:$0xff] (!%p182_p3)   ;;  %p212_p4 = scmp.lt.s32.totalorder (!%p182_p3), %s1224_s15, 1  ;;  %v1191_v2 = vld [vmem:[%s1911_s1 + $0x10] ss:$0 sps:$4 sm:$0x33] (!%p182_p3)  }
   0x7   : > { %185 = sbr.rel (%p182_p3) target bundleno = 372 (0x174), region = 36  ;;  %1118 = vmatprep.subr.bf16.mxu0 (!%p182_p3), %v1189_v0  ;;  %1156 = vmatprep.subr.bf16.mxu1 (!%p182_p3), %v1189_v0  ;;  %vm421_vm0 = vcmask (!%p182_p3), 1041408   ;;  %vm372_vm1 = vcmask (!%p182_p3), 293888   ;;  %v1234_v20 = vmov (!%p182_p3), 0.0   ;;  %v1330_v21 = vld [vmem:[%s1912_s2] ss:$0 sm:$0xff] (!%p182_p3) }
   0x8   : > { %1119 = vmatpush3.bf16.msra.mxu0 (!%p182_p3), %v1189_v0  ;;  %1159 = vmatpush3.bf16.msra.mxu1 (!%p182_p3), %v1189_v0  ;;  %v423_v4 = vsel (!%p182_p3), %vm421_vm0, %v1191_v2, 0  ;;  %231 = vst [vmem:[#allocation2] sm:$0x1] (!%p182_p3), %v1234_v20  ;;  %232 = vst [vmem:[#allocation3] sm:$0x1] (!%p182_p3), %v1234_v20 }
   0x9   : > { %1120 = vmatprep.subr.bf16.mxu0 (!%p182_p3), %v1190_v1  ;;  %1157 = vmatprep.subr.bf16.mxu1 (!%p182_p3), %v1190_v1 }
   0xc   : > { %1121 = vmatpush3.bf16.msra.mxu0 (!%p182_p3), %v1190_v1  ;;  %1160 = vmatpush3.bf16.msra.mxu1 (!%p182_p3), %v1190_v1 }
   0xd   : > { %1162 = vmatprep.subr.msk.bf16.mxu0 (!%p182_p3), %vm421_vm0, %v1191_v2  ;;  %1163 = vmatprep.subr.msk.bf16.mxu1 (!%p182_p3), %vm421_vm0, %v1191_v2 }
   0xe   : > { %s1936_s15 = smov (!%p212_p4, %s1224_s15), 1 }
   0xf   : > { %s1097_s25 = sshll.u32 %s1936_s15, 7  ;;  %s1098_s5 = sshll.u32 %s1936_s15, 8 }
  0x10   : > { %s1293_s28 = scalar_lea.vmem %s1910_s0, %s1097_s25  ;;  %1123 = vmatpush3.bf16.msra.mxu0 %v423_v4  ;;  %1161 = vmatpush3.bf16.msra.mxu1 %v423_v4  ;;  %s1772_s21 = scalar_lea.vmem %s1914_s4, %s1098_s5 }
  0x11   : > { %v1192_v3 = vld [vmem:[%s1293_s28] sm:$0xff]   ;;  %v1193_v5 = vld [vmem:[%s1293_s28 + $0x8] sm:$0xff]   ;;  %v1194_v6 = vld [vmem:[%s1293_s28 + $0x10] sm:$0xff]  }
  0x12   : > { %1124 = vmatprep.mubr.msk.bf16.mxu0 %vm372_vm1, %v1192_v3  ;;  %v1200_v7 = vld [vmem:[%s1293_s28 + $0x40] sm:$0xff]   ;;  %v1201_v8 = vld [vmem:[%s1293_s28 + $0x48] sm:$0xff]   ;;  %v1202_v9 = vld [vmem:[%s1293_s28 + $0x50] sm:$0xff]  }
  0x13   : > { %1125 = vmatmul.mubr.msk.bf16.vlgmr.msra.gmra.mrb[0].mxu0 %vm372_vm1, %v1193_v5  ;;  %1140 = vmatprep.mubr.msk.bf16.mxu1 %vm372_vm1, %v1200_v7  ;;  %v1195_v10 = vld [vmem:[%s1293_s28 + $0x18] sm:$0xff]   ;;  %v1196_v11 = vld [vmem:[%s1293_s28 + $0x20] sm:$0xff]   ;;  %v1197_v14 = vld [vmem:[%s1293_s28 + $0x28] sm:$0xff]  }
  0x14   : > { %1128 = vmatprep.mubr.msk.bf16.mxu0 %vm372_vm1, %v1194_v6  ;;  %1141 = vmatmul.mubr.msk.bf16.vlgmr.msra.gmra.mrb[0].mxu1 %vm372_vm1, %v1201_v8  ;;  %v1203_v12 = vld [vmem:[%s1293_s28 + $0x58] sm:$0xff]   ;;  %v1204_v13 = vld [vmem:[%s1293_s28 + $0x60] sm:$0xff]   ;;  %v1198_v15 = vld [vmem:[%s1293_s28 + $0x30] sm:$0xff]  }
  0x15   : > { %1144 = vmatprep.mubr.msk.bf16.mxu1 %vm372_vm1, %v1202_v9  ;;  %v1205_v16 = vld [vmem:[%s1293_s28 + $0x68] sm:$0xff]   ;;  %v1206_v17 = vld [vmem:[%s1293_s28 + $0x70] sm:$0xff]   ;;  %v1199_v18 = vld [vmem:[%s1293_s28 + $0x38] sm:$0xff]  }
  0x16   : > { %v1207_v19 = vld [vmem:[%s1293_s28 + $0x78] sm:$0xff]  }
  0x1b   : > { %1129 = vmatmul.mubr.msk.bf16.gmra.mrb[4].mxu0 %vm372_vm1, %v1195_v10 }
  0x1c   : > { %1132 = vmatprep.mubr.msk.bf16.mxu0 %vm372_vm1, %v1196_v11  ;;  %1145 = vmatmul.mubr.msk.bf16.gmra.mrb[4].mxu1 %vm372_vm1, %v1203_v12 }
  0x1d   : > { %1148 = vmatprep.mubr.msk.bf16.mxu1 %vm372_vm1, %v1204_v13 }
  0x23   : > { %1133 = vmatmul.mubr.msk.bf16.gmra.mrb[8].mxu0 %vm372_vm1, %v1197_v14 }
  0x24   : > { %1136 = vmatprep.mubr.msk.bf16.mxu0 %vm372_vm1, %v1198_v15  ;;  %1149 = vmatmul.mubr.msk.bf16.gmra.mrb[8].mxu1 %vm372_vm1, %v1205_v16 }
  0x25   : > { %1152 = vmatprep.mubr.msk.bf16.mxu1 %vm372_vm1, %v1206_v17 }
  0x2b   : > { %1137 = vmatmul.mubr.msk.bf16.gmra.mrb[12].mxu0 %vm372_vm1, %v1199_v18 }
  0x2c   : > { %1153 = vmatmul.mubr.msk.bf16.gmra.mrb[12].mxu1 %vm372_vm1, %v1207_v19 }
  0xe6   : > { %v1126_v22 = vpop.f32.mrb[0].mxu0 }
  0xe7   : > { %v459_v23 = vpop.f32.mrb[1].mxu0  ;;  %v1336_v27 = vadd.f32 %v1126_v22, %v1330_v21  ;;  %v1341_v29 = vpop.f32.mrb[0].mxu1 }
  0xe8   : > { %v1333_v24 = vadd.f32 %v1330_v21, %v459_v23  ;;  %v1127_v25 = vpop.f32.mrb[2].mxu0  ;;  %v1343_v30 = vpop.f32.mrb[1].mxu1 }
  0xe9   : > { %v462_v26 = vpop.f32.mrb[3].mxu0  ;;  %v1348_v32 = vadd.f32 %v1127_v25, %v1330_v21  ;;  %v1354_v35 = vpop.f32.mrb[2].mxu1  ;;  %v629_v37 = vmul.f32 %v1336_v27, %v1336_v27 }
  0xea   : > { %v1339_v28 = vadd.f32 %v1330_v21, %v462_v26  ;;  %v627_v31 = vmul.f32 %v1333_v24, %v1333_v24  ;;  %v1356_v36 = vpop.f32.mrb[3].mxu1 }
  0xeb   : > { %v630_v42 = vmul.f32 %v1348_v32, %v1348_v32 }
  0xec   : > { %v587_v33 = vadd.f32 %v1339_v28, %v1333_v24  ;;  %v628_v34 = vmul.f32 %v1339_v28, %v1339_v28 }
  0xee   : > { %v588_v38 = vadd.f32 %v587_v33, %v1336_v27  ;;  %v659_v39 = vadd.f32 %v628_v34, %v627_v31  ;;  %v1130_v40 = vpop.f32.mrb[4].mxu0 }
  0xef   : > { %v475_v41 = vpop.f32.mrb[5].mxu0  ;;  %v1368_v47 = vadd.f32 %v1130_v40, %v1330_v21  ;;  %v1376_v53 = vpop.f32.mrb[4].mxu1 }
  0xf0   : > { %v660_v43 = vadd.f32 %v659_v39, %v629_v37  ;;  %v1364_v44 = vadd.f32 %v1330_v21, %v475_v41  ;;  %v589_v45 = vadd.f32 %v588_v38, %v1348_v32  ;;  %v1131_v46 = vpop.f32.mrb[6].mxu0  ;;  %v1378_v54 = vpop.f32.mrb[5].mxu1 }
  0xf1   : > { %v478_v48 = vpop.f32.mrb[7].mxu0  ;;  %v1381_v56 = vadd.f32 %v1131_v46, %v1330_v21  ;;  %v1386_v59 = vpop.f32.mrb[6].mxu1  ;;  %v633_v61 = vmul.f32 %v1368_v47, %v1368_v47 }
  0xf2   : > { %v590_v49 = vadd.f32 %v589_v45, %v1364_v44  ;;  %v631_v50 = vmul.f32 %v1364_v44, %v1364_v44  ;;  %v661_v51 = vadd.f32 %v660_v43, %v630_v42  ;;  %v1374_v52 = vadd.f32 %v1330_v21, %v478_v48  ;;  %v1388_v60 = vpop.f32.mrb[7].mxu1 }
  0xf3   : > { %v634_v2 = vmul.f32 %v1381_v56, %v1381_v56 }
  0xf4   : > { %v662_v55 = vadd.f32 %v661_v51, %v631_v50  ;;  %v591_v57 = vadd.f32 %v590_v49, %v1374_v52  ;;  %v632_v58 = vmul.f32 %v1374_v52, %v1374_v52  ;;  %v1444_v49 = vadd.f32 %v1330_v21, %v1343_v30 }
  0xf6   : > { %v592_v62 = vadd.f32 %v591_v57, %v1368_v47  ;;  %v663_v63 = vadd.f32 %v662_v55, %v632_v58  ;;  %v1134_v0 = vpop.f32.mrb[8].mxu0  ;;  %v643_v30 = vmul.f32 %v1444_v49, %v1444_v49 }
  0xf7   : > { %v491_v1 = vpop.f32.mrb[9].mxu0  ;;  %v1400_v7 = vadd.f32 %v1134_v0, %v1330_v21  ;;  %v1408_v13 = vpop.f32.mrb[8].mxu1 }
  0xf8   : > { %v664_v3 = vadd.f32 %v663_v63, %v633_v61  ;;  %v1396_v4 = vadd.f32 %v1330_v21, %v491_v1  ;;  %v593_v5 = vadd.f32 %v592_v62, %v1381_v56  ;;  %v1135_v6 = vpop.f32.mrb[10].mxu0  ;;  %v1410_v14 = vpop.f32.mrb[9].mxu1 }
  0xf9   : > { %v494_v8 = vpop.f32.mrb[11].mxu0  ;;  %v1413_v16 = vadd.f32 %v1135_v6, %v1330_v21  ;;  %v1418_v19 = vpop.f32.mrb[10].mxu1  ;;  %v637_v22 = vmul.f32 %v1400_v7, %v1400_v7  ;;  %v1462_v6 = vadd.f32 %v1330_v21, %v1356_v36  ;;  %v1478_v36 = vadd.f32 %v1330_v21, %v1378_v54 }
  0xfa   : > { %v594_v9 = vadd.f32 %v593_v5, %v1396_v4  ;;  %v635_v10 = vmul.f32 %v1396_v4, %v1396_v4  ;;  %v665_v11 = vadd.f32 %v664_v3, %v634_v2  ;;  %v1406_v12 = vadd.f32 %v1330_v21, %v494_v8  ;;  %v1420_v20 = vpop.f32.mrb[11].mxu1 }
  0xfb   : > { %v638_v33 = vmul.f32 %v1413_v16, %v1413_v16  ;;  %v1466_v8 = vadd.f32 %v1341_v29, %v1330_v21  ;;  %v1494_v54 = vadd.f32 %v1376_v53, %v1330_v21 }
  0xfc   : > { %v666_v15 = vadd.f32 %v665_v11, %v635_v10  ;;  %v595_v17 = vadd.f32 %v594_v9, %v1406_v12  ;;  %v636_v18 = vmul.f32 %v1406_v12, %v1406_v12  ;;  %v1471_v11 = vadd.f32 %v1354_v35, %v1330_v21 }
  0xfd   : > { %v645_v29 = vmul.f32 %v1466_v8, %v1466_v8  ;;  %v649_v53 = vmul.f32 %v1494_v54, %v1494_v54 }
  0xfe   : > { %v596_v23 = vadd.f32 %v595_v17, %v1400_v7  ;;  %v667_v25 = vadd.f32 %v666_v15, %v636_v18  ;;  %v1138_v26 = vpop.f32.mrb[12].mxu0  ;;  %v644_v18 = vmul.f32 %v1462_v6, %v1462_v6  ;;  %v646_v35 = vmul.f32 %v1471_v11, %v1471_v11 }
  0xff   : > { %v507_v31 = vpop.f32.mrb[13].mxu0  ;;  %v1432_v40 = vadd.f32 %v1138_v26, %v1330_v21  ;;  %v1440_v48 = vpop.f32.mrb[12].mxu1 }
 0x100   : > { %v668_v34 = vadd.f32 %v667_v25, %v637_v22  ;;  %v1428_v37 = vadd.f32 %v1330_v21, %v507_v31  ;;  %v597_v38 = vadd.f32 %v596_v23, %v1413_v16  ;;  %v1139_v39 = vpop.f32.mrb[14].mxu0  ;;  %v571_v50 = vpop.f32.mrb[13].mxu1  ;;  %v647_v31 = vmul.f32 %v1478_v36, %v1478_v36 }
 0x101   : > { %v510_v41 = vpop.f32.mrb[15].mxu0  ;;  %v1447_v55 = vadd.f32 %v1139_v39, %v1330_v21  ;;  %v1155_v61 = vpop.f32.mrb[14].mxu1  ;;  %v641_v63 = vmul.f32 %v1432_v40, %v1432_v40  ;;  %v1499_v39 = vadd.f32 %v1386_v59, %v1330_v21 }
 0x102   : > { %v598_v42 = vadd.f32 %v597_v38, %v1428_v37  ;;  %v639_v43 = vmul.f32 %v1428_v37, %v1428_v37  ;;  %v669_v45 = vadd.f32 %v668_v34, %v638_v33  ;;  %v1438_v46 = vadd.f32 %v1330_v21, %v510_v41  ;;  %v574_v62 = vpop.f32.mrb[15].mxu1 }
 0x103   : > { %v642_v2 = vmul.f32 %v1447_v55, %v1447_v55  ;;  %v1490_v33 = vadd.f32 %v1330_v21, %v1388_v60  ;;  %v1506_v60 = vadd.f32 %v1330_v21, %v1410_v14  ;;  %v650_v59 = vmul.f32 %v1499_v39, %v1499_v39 }
 0x104   : > { %v670_v51 = vadd.f32 %v669_v45, %v639_v43  ;;  %v599_v57 = vadd.f32 %v598_v42, %v1438_v46  ;;  %v640_v58 = vmul.f32 %v1438_v46, %v1438_v46  ;;  %v1522_v14 = vadd.f32 %v1408_v13, %v1330_v21 }
 0x105   : > { %v648_v43 = vmul.f32 %v1490_v33, %v1490_v33 }
 0x106   : > { %v600_v0 = vadd.f32 %v599_v57, %v1432_v40  ;;  %v671_v1 = vadd.f32 %v670_v51, %v640_v58  ;;  %v653_v13 = vmul.f32 %v1522_v14, %v1522_v14 }
 0x108   : > { %v672_v3 = vadd.f32 %v671_v1, %v641_v63  ;;  %v601_v5 = vadd.f32 %v600_v0, %v1447_v55  ;;  %v651_v63 = vmul.f32 %v1506_v60, %v1506_v60  ;;  %v1518_v0 = vadd.f32 %v1330_v21, %v1420_v20 }
 0x109   : > { %v1533_v20 = vadd.f32 %v1330_v21, %v571_v50  ;;  %v1548_v50 = vadd.f32 %v1440_v48, %v1330_v21 }
 0x10a   : > { %v602_v9 = vadd.f32 %v601_v5, %v1444_v49  ;;  %v673_v10 = vadd.f32 %v672_v3, %v642_v2  ;;  %v1527_v2 = vadd.f32 %v1418_v19, %v1330_v21 }
 0x10c   : > { %v674_v15 = vadd.f32 %v673_v10, %v643_v30  ;;  %v603_v17 = vadd.f32 %v602_v9, %v1462_v6  ;;  %v652_v9 = vmul.f32 %v1518_v0, %v1518_v0 }
 0x10e   : > { %v604_v22 = vadd.f32 %v603_v17, %v1466_v8  ;;  %v675_v23 = vadd.f32 %v674_v15, %v644_v18  ;;  %v654_v17 = vmul.f32 %v1527_v2, %v1527_v2 }
 0x110   : > { %v676_v25 = vadd.f32 %v675_v23, %v645_v29  ;;  %v605_v26 = vadd.f32 %v604_v22, %v1471_v11  ;;  %v655_v29 = vmul.f32 %v1533_v20, %v1533_v20  ;;  %v1544_v22 = vadd.f32 %v1330_v21, %v574_v62 }
 0x111   : > { %v657_v62 = vmul.f32 %v1548_v50, %v1548_v50 }
 0x112   : > { %v606_v34 = vadd.f32 %v605_v26, %v1478_v36  ;;  %v677_v38 = vadd.f32 %v676_v25, %v646_v35  ;;  %v1552_v26 = vadd.f32 %v1155_v61, %v1330_v21 }
 0x114   : > { %v678_v41 = vadd.f32 %v677_v38, %v647_v31  ;;  %v607_v42 = vadd.f32 %v606_v34, %v1490_v33  ;;  %v656_v34 = vmul.f32 %v1544_v22, %v1544_v22  ;;  %v658_v48 = vmul.f32 %v1552_v26, %v1552_v26 }
 0x116   : > { %v608_v45 = vadd.f32 %v607_v42, %v1494_v54  ;;  %v679_v51 = vadd.f32 %v678_v41, %v648_v43 }
 0x118   : > { %v680_v57 = vadd.f32 %v679_v51, %v649_v53  ;;  %v609_v58 = vadd.f32 %v608_v45, %v1499_v39 }
 0x11a   : > { %v610_v1 = vadd.f32 %v609_v58, %v1506_v60  ;;  %v681_v30 = vadd.f32 %v680_v57, %v650_v59 }
 0x11c   : > { %v682_v3 = vadd.f32 %v681_v30, %v651_v63  ;;  %v611_v5 = vadd.f32 %v610_v1, %v1518_v0  ;;  %v586_v30 = vld [vmem:[#allocation2] sm:$0x1] }
 0x11e   : > { %v612_v10 = vadd.f32 %v611_v5, %v1522_v14  ;;  %v683_v15 = vadd.f32 %v682_v3, %v652_v9  ;;  %v626_v9 = vld [vmem:[#allocation3] sm:$0x1] }
 0x120   : > { %v684_v19 = vadd.f32 %v683_v15, %v653_v13  ;;  %v613_v18 = vadd.f32 %v612_v10, %v1527_v2 }
 0x122   : > { %v614_v23 = vadd.f32 %v613_v18, %v1533_v20  ;;  %v685_v35 = vadd.f32 %v684_v19, %v654_v17  ;;  %v776_v17 = vlaneseq }
 0x124   : > { %v686_v25 = vadd.f32 %v685_v35, %v655_v29  ;;  %v615_v31 = vadd.f32 %v614_v23, %v1544_v22  ;;  %v777_v29 = vshrl.u32 %v776_v17, 7 }
 0x126   : > { %v616_v38 = vadd.f32 %v615_v31, %v1548_v50  ;;  %v687_v41 = vadd.f32 %v686_v25, %v656_v34  ;;  %v778_v34 = vsub.s32 0, %v777_v29 }
 0x128   : > { %v617_v42 = vadd.f32 %v616_v38, %v1552_v26  ;;  %v688_v43 = vadd.f32 %v687_v41, %v657_v62 }
 0x12a   : > { %v618_v53 = vrot.slane %v617_v42, 4  ;;  %v689_v21 = vadd.f32 %v688_v43, %v658_v48 }
 0x12c   : > { %v619_v61 = vadd.f32 %v618_v53, %v617_v42  ;;  %v690_v45 = vrot.slane %v689_v21, 4 }
 0x12e   : > { %v620_v51 = vrot.slane %v619_v61, 2  ;;  %v691_v59 = vadd.f32 %v690_v45, %v689_v21 }
 0x130   : > { %v621_v57 = vadd.f32 %v620_v51, %v619_v61  ;;  %v692_v58 = vrot.slane %v691_v59, 2 }
 0x132   : > { %v622_v63 = vrot.slane %v621_v57, 1  ;;  %v693_v1 = vadd.f32 %v692_v58, %v691_v59 }
 0x134   : > { %v623_v3 = vadd.f32 %v622_v63, %v621_v57  ;;  %v694_v5 = vrot.slane %v693_v1, 1 }
 0x136   : > { %v624_v13 = vadd.f32 %v623_v3, %v586_v30  ;;  %v695_v10 = vadd.f32 %v694_v5, %v693_v1 }
 0x138   : > { %625 = vst [vmem:[#allocation2] sm:$0x1] %v624_v13  ;;  %v696_v15 = vadd.f32 %v695_v10, %v626_v9 }
 0x13a   : > { %697 = vst [vmem:[#allocation3] sm:$0x1] %v696_v15 }
 0x13f   : > { %v735_v19 = vld [vmem:[#allocation2] sm:$0x1] }
 0x140   : > { %v736_v18 = vmul.f32 0.00390625, %v735_v19 }
 0x141   : > { %v737_v23 = vld [vmem:[#allocation3] sm:$0x1] }
 0x142   : > { %v738_v35 = vmul.f32 0.00390625, %v737_v23  ;;  %v739_v25 = vmul.f32 %v736_v18, %v736_v18  ;;  %v1563_v38 = vrot.slane %v736_v18, %v778_v34 }
 0x144   : > { %v740_v31 = vsub.f32 %v738_v35, %v739_v25  ;;  %v781_v41 = vsub.f32 %v1333_v24, %v1563_v38  ;;  %v782_v48 = vsub.f32 %v1339_v28, %v1563_v38  ;;  %v783_v42 = vsub.f32 %v1336_v27, %v1563_v38 }
 0x145   : > { %v784_v43 = vsub.f32 %v1348_v32, %v1563_v38  ;;  %v785_v53 = vsub.f32 %v1364_v44, %v1563_v38  ;;  %v786_v21 = vsub.f32 %v1374_v52, %v1563_v38  ;;  %v787_v61 = vsub.f32 %v1368_v47, %v1563_v38 }
 0x146   : > { %v741_v62 = vadd.f32 1e-05, %v740_v31  ;;  %v788_v24 = vsub.f32 %v1381_v56, %v1563_v38  ;;  %v789_v28 = vsub.f32 %v1396_v4, %v1563_v38  ;;  %v790_v27 = vsub.f32 %v1406_v12, %v1563_v38 }
 0x147   : > { %v791_v32 = vsub.f32 %v1400_v7, %v1563_v38  ;;  %v792_v44 = vsub.f32 %v1413_v16, %v1563_v38  ;;  %v793_v52 = vsub.f32 %v1428_v37, %v1563_v38  ;;  %v794_v47 = vsub.f32 %v1438_v46, %v1563_v38 }
 0x148   : > { %1208 = vrsqrt.f32 %v741_v62  ;;  %v795_v56 = vsub.f32 %v1432_v40, %v1563_v38  ;;  %v796_v4 = vsub.f32 %v1447_v55, %v1563_v38  ;;  %v797_v12 = vsub.f32 %v1444_v49, %v1563_v38 }
 0x149   : > { %v798_v7 = vsub.f32 %v1462_v6, %v1563_v38  ;;  %v799_v16 = vsub.f32 %v1466_v8, %v1563_v38  ;;  %v800_v37 = vsub.f32 %v1471_v11, %v1563_v38  ;;  %v801_v46 = vsub.f32 %v1478_v36, %v1563_v38 }
 0x14a   : > { %v802_v40 = vsub.f32 %v1490_v33, %v1563_v38  ;;  %v803_v55 = vsub.f32 %v1494_v54, %v1563_v38  ;;  %v804_v49 = vsub.f32 %v1499_v39, %v1563_v38  ;;  %v805_v6 = vsub.f32 %v1506_v60, %v1563_v38 }
 0x14b   : > { %v806_v8 = vsub.f32 %v1518_v0, %v1563_v38  ;;  %v807_v11 = vsub.f32 %v1522_v14, %v1563_v38  ;;  %v808_v36 = vsub.f32 %v1527_v2, %v1563_v38  ;;  %v809_v33 = vsub.f32 %v1533_v20, %v1563_v38 }
 0x14c   : > { %v810_v54 = vsub.f32 %v1544_v22, %v1563_v38  ;;  %v811_v39 = vsub.f32 %v1548_v50, %v1563_v38  ;;  %v812_v60 = vsub.f32 %v1552_v26, %v1563_v38 }
 0x152   : > { %v1209_v45 = vpop.eup %1208 }
 0x153   : > { %v817_v51 = vrot.slane %v1209_v45, %v778_v34  ;;  %v886_v45 = vld [vmem:[%s1913_s3 + $0x18] sm:$0xff] }
 0x155   : > { %v1629_v0 = vmul.f32 %v817_v51, %v781_v41  ;;  %v1631_v59 = vmul.f32 %v817_v51, %v782_v48  ;;  %v1633_v14 = vmul.f32 %v817_v51, %v783_v42  ;;  %v1635_v2 = vmul.f32 %v817_v51, %v784_v43 }
 0x156   : > { %v1637_v57 = vmul.f32 %v817_v51, %v785_v53  ;;  %v1639_v20 = vmul.f32 %v817_v51, %v786_v21  ;;  %v1641_v58 = vmul.f32 %v817_v51, %v787_v61  ;;  %v1643_v22 = vmul.f32 %v817_v51, %v788_v24 }
 0x157   : > { %v1645_v50 = vmul.f32 %v817_v51, %v789_v28  ;;  %v1647_v63 = vmul.f32 %v817_v51, %v790_v27  ;;  %v1649_v26 = vmul.f32 %v817_v51, %v791_v32  ;;  %v1651_v1 = vmul.f32 %v817_v51, %v792_v44 }
 0x158   : > { %v1653_v30 = vmul.f32 %v817_v51, %v793_v52  ;;  %v1655_v3 = vmul.f32 %v817_v51, %v794_v47  ;;  %v1657_v5 = vmul.f32 %v817_v51, %v795_v56  ;;  %v1659_v9 = vmul.f32 %v817_v51, %v796_v4 }
 0x159   : > { %v1661_v13 = vmul.f32 %v817_v51, %v797_v12  ;;  %v1663_v10 = vmul.f32 %v817_v51, %v798_v7  ;;  %v1665_v15 = vmul.f32 %v817_v51, %v799_v16  ;;  %v1667_v17 = vmul.f32 %v817_v51, %v800_v37  ;;  %v883_v16 = vld [vmem:[%s1913_s3] sm:$0xff]  ;;  %v884_v37 = vld [vmem:[%s1913_s3 + $0x8] sm:$0xff] }
 0x15a   : > { %v1669_v19 = vmul.f32 %v817_v51, %v801_v46  ;;  %v1671_v18 = vmul.f32 %v817_v51, %v802_v40  ;;  %v1673_v29 = vmul.f32 %v817_v51, %v803_v55  ;;  %v1675_v23 = vmul.f32 %v817_v51, %v804_v49  ;;  %v885_v46 = vld [vmem:[%s1913_s3 + $0x10] sm:$0xff]  ;;  %v904_v49 = vld [vmem:[%s1913_s3 + $0xa8] sm:$0xff] }
 0x15b   : > { %v1677_v35 = vmul.f32 %v817_v51, %v805_v6  ;;  %v1679_v25 = vmul.f32 %v817_v51, %v806_v8  ;;  %v1681_v31 = vmul.f32 %v817_v51, %v807_v11  ;;  %v1683_v34 = vmul.f32 %v817_v51, %v808_v36  ;;  %v887_v8 = vld [vmem:[%s1913_s3 + $0x20] sm:$0xff]  ;;  %v888_v11 = vld [vmem:[%s1913_s3 + $0x28] sm:$0xff]  ;;  %v889_v36 = vld [vmem:[%s1913_s3 + $0x30] sm:$0xff] }
 0x15c   : > { %v1685_v62 = vmul.f32 %v817_v51, %v809_v33  ;;  %v1687_v38 = vmul.f32 %v817_v51, %v810_v54  ;;  %v1689_v41 = vmul.f32 %v817_v51, %v811_v39  ;;  %v1691_v48 = vmul.f32 %v817_v51, %v812_v60  ;;  %v890_v51 = vld [vmem:[%s1913_s3 + $0x38] sm:$0xff]  ;;  %v899_v60 = vld [vmem:[%s1913_s3 + $0x80] sm:$0xff]  ;;  %v900_v39 = vld [vmem:[%s1913_s3 + $0x88] sm:$0xff] }
 0x15d   : > { %v851_v42 = vmax.f32 %v1629_v0, 0.0  ;;  %v852_v43 = vmax.f32 %v1631_v59, 0.0  ;;  %v853_v53 = vmax.f32 %v1633_v14, 0.0  ;;  %v854_v21 = vmax.f32 %v1635_v2, 0.0  ;;  %v891_v0 = vld [vmem:[%s1913_s3 + $0x40] sm:$0xff]  ;;  %v892_v59 = vld [vmem:[%s1913_s3 + $0x48] sm:$0xff] }
 0x15e   : > { %v855_v61 = vmax.f32 %v1637_v57, 0.0  ;;  %v856_v24 = vmax.f32 %v1639_v20, 0.0  ;;  %v857_v28 = vmax.f32 %v1641_v58, 0.0  ;;  %v858_v27 = vmax.f32 %v1643_v22, 0.0  ;;  %v893_v14 = vld [vmem:[%s1913_s3 + $0x50] sm:$0xff]  ;;  %v894_v2 = vld [vmem:[%s1913_s3 + $0x58] sm:$0xff] }
 0x15f   : > { %v859_v32 = vmax.f32 %v1645_v50, 0.0  ;;  %v860_v44 = vmax.f32 %v1647_v63, 0.0  ;;  %v861_v52 = vmax.f32 %v1649_v26, 0.0  ;;  %v862_v47 = vmax.f32 %v1651_v1, 0.0  ;;  %v895_v50 = vld [vmem:[%s1913_s3 + $0x60] sm:$0xff]  ;;  %v896_v63 = vld [vmem:[%s1913_s3 + $0x68] sm:$0xff] }
 0x160   : > { %v863_v56 = vmax.f32 %v1653_v30, 0.0  ;;  %v864_v4 = vmax.f32 %v1655_v3, 0.0  ;;  %v865_v12 = vmax.f32 %v1657_v5, 0.0  ;;  %v866_v7 = vmax.f32 %v1659_v9, 0.0  ;;  %v897_v26 = vld [vmem:[%s1913_s3 + $0x70] sm:$0xff]  ;;  %v898_v57 = vld [vmem:[%s1913_s3 + $0x78] sm:$0xff] }
 0x161   : > { %v901_v22 = vld [vmem:[%s1913_s3 + $0x90] sm:$0xff]  ;;  %v902_v20 = vld [vmem:[%s1913_s3 + $0x98] sm:$0xff]  ;;  %v915_v58 = vadd.f32 %v883_v16, %v851_v42  ;;  %v916_v1 = vadd.f32 %v884_v37, %v852_v43  ;;  %v917_v54 = vadd.f32 %v885_v46, %v853_v53  ;;  %v918_v33 = vadd.f32 %v886_v45, %v854_v21  ;;  %v903_v6 = vld [vmem:[%s1913_s3 + $0xa0] sm:$0xff] }
 0x162   : > { %v905_v55 = vld [vmem:[%s1913_s3 + $0xb0] sm:$0xff]  ;;  %v919_v42 = vadd.f32 %v887_v8, %v855_v61  ;;  %v920_v43 = vadd.f32 %v888_v11, %v856_v24  ;;  %v921_v53 = vadd.f32 %v889_v36, %v857_v28  ;;  %v922_v16 = vadd.f32 %v890_v51, %v858_v27  ;;  %v906_v21 = vld [vmem:[%s1913_s3 + $0xb8] sm:$0xff]  ;;  %v907_v37 = vld [vmem:[%s1913_s3 + $0xc0] sm:$0xff] }
 0x163   : > { %v908_v46 = vld [vmem:[%s1913_s3 + $0xc8] sm:$0xff]  ;;  %v923_v45 = vadd.f32 %v891_v0, %v859_v32  ;;  %v924_v40 = vadd.f32 %v892_v59, %v860_v44  ;;  %v925_v61 = vadd.f32 %v893_v14, %v861_v52  ;;  %v926_v24 = vadd.f32 %v894_v2, %v862_v47  ;;  %947 = vst [vmem:[%s1772_s21] sm:$0xff] %v915_v58  ;;  %v909_v28 = vld [vmem:[%s1913_s3 + $0xd0] sm:$0xff]  ;;  %v910_v27 = vld [vmem:[%s1913_s3 + $0xd8] sm:$0xff] }
 0x164   : > { %948 = vst [vmem:[%s1772_s21 + $0x8] sm:$0xff] %v916_v1  ;;  %949 = vst [vmem:[%s1772_s21 + $0x10] sm:$0xff] %v917_v54  ;;  %v911_v32 = vld [vmem:[%s1913_s3 + $0xe0] sm:$0xff]  ;;  %v927_v44 = vadd.f32 %v895_v50, %v863_v56  ;;  %v928_v52 = vadd.f32 %v896_v63, %v864_v4  ;;  %v929_v47 = vadd.f32 %v897_v26, %v865_v12  ;;  %v912_v30 = vld [vmem:[%s1913_s3 + $0xe8] sm:$0xff]  ;;  %v1915_v9 = vmax.f32 %v1661_v13, 0.0 }
 0x165   : > { %950 = vst [vmem:[%s1772_s21 + $0x18] sm:$0xff] %v918_v33  ;;  %v930_v8 = vadd.f32 %v898_v57, %v866_v7  ;;  %951 = vst [vmem:[%s1772_s21 + $0x20] sm:$0xff] %v919_v42  ;;  %v913_v3 = vld [vmem:[%s1913_s3 + $0xf0] sm:$0xff]  ;;  %v914_v5 = vld [vmem:[%s1913_s3 + $0xf8] sm:$0xff]  ;;  %v1916_v4 = vmax.f32 %v1663_v10, 0.0  ;;  %v1917_v7 = vmax.f32 %v1665_v15, 0.0 }
 0x166   : > { %952 = vst [vmem:[%s1772_s21 + $0x28] sm:$0xff] %v920_v43  ;;  %953 = vst [vmem:[%s1772_s21 + $0x30] sm:$0xff] %v921_v53  ;;  %v931_v56 = vadd.f32 %v899_v60, %v1915_v9  ;;  %v1918_v36 = vmax.f32 %v1667_v17, 0.0  ;;  %v1919_v13 = vmax.f32 %v1669_v19, 0.0  ;;  %v1920_v10 = vmax.f32 %v1671_v18, 0.0 }
 0x167   : > { %954 = vst [vmem:[%s1772_s21 + $0x38] sm:$0xff] %v922_v16  ;;  %v932_v12 = vadd.f32 %v900_v39, %v1916_v4  ;;  %v933_v11 = vadd.f32 %v901_v22, %v1917_v7  ;;  %955 = vst [vmem:[%s1772_s21 + $0x40] sm:$0xff] %v923_v45  ;;  %v1921_v15 = vmax.f32 %v1673_v29, 0.0  ;;  %v1922_v17 = vmax.f32 %v1675_v23, 0.0 }
 0x168   : > { %v934_v51 = vadd.f32 %v902_v20, %v1918_v36  ;;  %956 = vst [vmem:[%s1772_s21 + $0x48] sm:$0xff] %v924_v40  ;;  %957 = vst [vmem:[%s1772_s21 + $0x50] sm:$0xff] %v925_v61  ;;  %v935_v33 = vadd.f32 %v903_v6, %v1919_v13  ;;  %v936_v54 = vadd.f32 %v904_v49, %v1920_v10  ;;  %v1923_v19 = vmax.f32 %v1677_v35, 0.0 }
 0x169   : > { %958 = vst [vmem:[%s1772_s21 + $0x58] sm:$0xff] %v926_v24  ;;  %v937_v39 = vadd.f32 %v905_v55, %v1921_v15  ;;  %v938_v60 = vadd.f32 %v906_v21, %v1922_v17  ;;  %959 = vst [vmem:[%s1772_s21 + $0x60] sm:$0xff] %v927_v44  ;;  %v1924_v18 = vmax.f32 %v1679_v25, 0.0  ;;  %v1925_v29 = vmax.f32 %v1681_v31, 0.0 }
 0x16a   : > { %960 = vst [vmem:[%s1772_s21 + $0x68] sm:$0xff] %v928_v52  ;;  %961 = vst [vmem:[%s1772_s21 + $0x70] sm:$0xff] %v929_v47  ;;  %v939_v40 = vadd.f32 %v907_v37, %v1923_v19  ;;  %v1926_v55 = vmax.f32 %v1683_v34, 0.0  ;;  %v1927_v35 = vmax.f32 %v1685_v62, 0.0  ;;  %v1928_v31 = vmax.f32 %v1687_v38, 0.0 }
 0x16b   : > { %962 = vst [vmem:[%s1772_s21 + $0x78] sm:$0xff] %v930_v8  ;;  %v940_v49 = vadd.f32 %v908_v46, %v1924_v18  ;;  %v941_v23 = vadd.f32 %v909_v28, %v1925_v29  ;;  %963 = vst [vmem:[%s1772_s21 + $0x80] sm:$0xff] %v931_v56  ;;  %v1929_v59 = vmax.f32 %v1689_v41, 0.0  ;;  %v1930_v14 = vmax.f32 %v1691_v48, 0.0 }
 0x16c   : > { %v942_v6 = vadd.f32 %v910_v27, %v1926_v55  ;;  %964 = vst [vmem:[%s1772_s21 + $0x88] sm:$0xff] %v932_v12  ;;  %965 = vst [vmem:[%s1772_s21 + $0x90] sm:$0xff] %v933_v11  ;;  %v943_v25 = vadd.f32 %v911_v32, %v1927_v35  ;;  %v944_v0 = vadd.f32 %v912_v30, %v1928_v31 }
 0x16d   : > { %966 = vst [vmem:[%s1772_s21 + $0x98] sm:$0xff] %v934_v51  ;;  %v945_v34 = vadd.f32 %v913_v3, %v1929_v59  ;;  %v946_v2 = vadd.f32 %v914_v5, %v1930_v14  ;;  %967 = vst [vmem:[%s1772_s21 + $0xa0] sm:$0xff] %v935_v33 }
 0x16e   : > { %968 = vst [vmem:[%s1772_s21 + $0xa8] sm:$0xff] %v936_v54  ;;  %969 = vst [vmem:[%s1772_s21 + $0xb0] sm:$0xff] %v937_v39 }
 0x16f   : > { %970 = vst [vmem:[%s1772_s21 + $0xb8] sm:$0xff] %v938_v60  ;;  %971 = vst [vmem:[%s1772_s21 + $0xc0] sm:$0xff] %v939_v40 }
 0x170   : > { %972 = vst [vmem:[%s1772_s21 + $0xc8] sm:$0xff] %v940_v49  ;;  %973 = vst [vmem:[%s1772_s21 + $0xd0] sm:$0xff] %v941_v23 }
 0x171   : > { %974 = vst [vmem:[%s1772_s21 + $0xd8] sm:$0xff] %v942_v6  ;;  %975 = vst [vmem:[%s1772_s21 + $0xe0] sm:$0xff] %v943_v25 }
 0x172   : > { %976 = vst [vmem:[%s1772_s21 + $0xe8] sm:$0xff] %v944_v0  ;;  %977 = vst [vmem:[%s1772_s21 + $0xf0] sm:$0xff] %v945_v34 }
 0x173   : > { %978 = vst [vmem:[%s1772_s21 + $0xf8] sm:$0xff] %v946_v2 }
 0x174 PF: > { %s14_s17 = sadd.s32 1, %s1232_s17   ;;  %s1931_s15 = smov %s1228_s16 }
 0x175   : > { %p11_p5 = scmp.ge.s32.totalorder %s14_s17, 4   ;;  %s1932_s16 = smov %s1934_s18 }
 0x177   :  { %13 = sbr.rel (!%p11_p5) target bundleno = 2 (0x2), region = 75 }

// kernel: inr_cls_wide4_forward.5
= control target key start
LH: loop header
LB: loop body
LE: loop exit
PB: predicated region body
PF: predicated region fallthrough
CT: control target
= control target key end

     0   :  { %s1659_s12 = smov 0   ;;  %s1661_s13 = smov 0   ;;  %s1935_s0 = inlined_call_operand.vmem [shape: bf16[2,64,800], index: 0, kind: input, shape index: {}]   ;;  %s1936_s1 = inlined_call_operand.vmem [shape: bf16[800,128], index: 1, kind: input, shape index: {}]   ;;  %s1937_s2 = inlined_call_operand.vmem [shape: f32[1,128], index: 2, kind: input, shape index: {}]   ;;  %s1938_s3 = inlined_call_operand.vmem [shape: f32[2,64,128], index: 3, kind: output, shape index: {}]  }
   0x1   :  { %s1663_s14 = smov 0  }
   0x2 LB: > { %s25_s15 = sadd.s32 1, %s1632_s13  ;;  %p1252_p0 = scmp.ge.s32.totalorder %s1636_s14, 1  ;;  %s1636_s14 = sphi %s1663_s14, %s13_s14   ;;  %s1632_s13 = sphi %s1661_s13, %s1940_s13   ;;  %s1628_s12 = sphi %s1659_s12, %s1939_s12  }
   0x3   : > { %p27_p1 = scmp.ge.s32.totalorder %s25_s15, 2  ;;  %p157_p2 = scmp.lt.s32.totalorder %s1636_s14, 3 }
   0x5   : > { %s1942_s15 = smov (%p27_p1, %s25_s15), 0  ;;  %p158_p3 = pnand %p1252_p0, %p157_p2 }
   0x6   : > { %v1522_v0 = vld [vmem:[%s1936_s1 + $0x40] sm:$0xff] (!%p158_p3)   ;;  %v1526_v4 = vld [vmem:[%s1936_s1 + $0x48] sm:$0xff] (!%p158_p3)   ;;  %v1530_v8 = vld [vmem:[%s1936_s1 + $0x50] sm:$0xff] (!%p158_p3)   ;;  %p187_p4 = scmp.lt.s32.totalorder (!%p158_p3), %s1628_s12, 1  ;;  %vm788_vm0 = vcmask (!%p158_p3), 261120  }
   0x7   : > { %161 = sbr.rel (%p158_p3) target bundleno = 367 (0x16f), region = 32  ;;  %v1523_v1 = vld [vmem:[%s1936_s1 + $0xc0] sm:$0xff] (!%p158_p3)   ;;  %1342 = vmatprep.subr.bf16.mxu0 (!%p158_p3), %v1522_v0  ;;  %v1527_v5 = vld [vmem:[%s1936_s1 + $0xc8] sm:$0xff] (!%p158_p3)   ;;  %v1531_v9 = vld [vmem:[%s1936_s1 + $0xd0] sm:$0xff] (!%p158_p3)  }
   0x8   : > { %v1524_v2 = vld [vmem:[%s1936_s1] sm:$0xff] (!%p158_p3)   ;;  %1382 = vmatprep.subr.bf16.mxu1 (!%p158_p3), %v1523_v1  ;;  %v1528_v6 = vld [vmem:[%s1936_s1 + $0x8] sm:$0xff] (!%p158_p3)   ;;  %v1532_v10 = vld [vmem:[%s1936_s1 + $0x10] sm:$0xff] (!%p158_p3)  }
   0x9   : > { %v1525_v3 = vld [vmem:[%s1936_s1 + $0x80] sm:$0xff] (!%p158_p3)   ;;  %1343 = vmatpush3.bf16.msra.mxu0 (!%p158_p3), %v1524_v2  ;;  %v1529_v7 = vld [vmem:[%s1936_s1 + $0x88] sm:$0xff] (!%p158_p3)   ;;  %v1533_v11 = vld [vmem:[%s1936_s1 + $0x90] sm:$0xff] (!%p158_p3)  }
   0xa   : > { %1383 = vmatpush3.bf16.msra.mxu1 (!%p158_p3), %v1525_v3  ;;  %1344 = vmatprep.subr.bf16.mxu0 (!%p158_p3), %v1526_v4  ;;  %v1534_v12 = vld [vmem:[%s1936_s1 + $0x58] sm:$0xff] (!%p158_p3)   ;;  %v1538_v16 = vld [vmem:[%s1936_s1 + $0x60] sm:$0xff] (!%p158_p3)   ;;  %v1542_v20 = vld [vmem:[%s1936_s1 + $0x68] sm:$0xff] (!%p158_p3)  }
   0xb   : > { %1384 = vmatprep.subr.bf16.mxu1 (!%p158_p3), %v1527_v5  ;;  %v1535_v13 = vld [vmem:[%s1936_s1 + $0xd8] sm:$0xff] (!%p158_p3)   ;;  %v1539_v17 = vld [vmem:[%s1936_s1 + $0xe0] sm:$0xff] (!%p158_p3)   ;;  %v1543_v21 = vld [vmem:[%s1936_s1 + $0xe8] sm:$0xff] (!%p158_p3)  }
   0xc   : > { %v1536_v14 = vld [vmem:[%s1936_s1 + $0x18] sm:$0xff] (!%p158_p3)   ;;  %v1540_v18 = vld [vmem:[%s1936_s1 + $0x20] sm:$0xff] (!%p158_p3)   ;;  %v1544_v22 = vld [vmem:[%s1936_s1 + $0x28] sm:$0xff] (!%p158_p3)  }
   0xd   : > { %1345 = vmatpush3.bf16.msra.mxu0 (!%p158_p3), %v1528_v6  ;;  %v1537_v15 = vld [vmem:[%s1936_s1 + $0x98] sm:$0xff] (!%p158_p3)   ;;  %v1541_v19 = vld [vmem:[%s1936_s1 + $0xa0] sm:$0xff] (!%p158_p3)   ;;  %v1545_v23 = vld [vmem:[%s1936_s1 + $0xa8] sm:$0xff] (!%p158_p3)  }
   0xe   : > { %1385 = vmatpush3.bf16.msra.mxu1 %v1529_v7  ;;  %1346 = vmatprep.subr.bf16.mxu0 %v1530_v8  ;;  %s1944_s12 = smov (!%p187_p4, %s1628_s12), 1  ;;  %v1546_v24 = vld [vmem:[%s1936_s1 + $0x70] sm:$0xff]   ;;  %v1550_v28 = vld [vmem:[%s1936_s1 + $0x78] sm:$0xff]   ;;  %v1560_v36 = vld [vmem:[%s1936_s1 + $0x140] sm:$0xff]  }
   0xf   : > { %1386 = vmatprep.subr.bf16.mxu1 %v1531_v9  ;;  %v1547_v25 = vld [vmem:[%s1936_s1 + $0xf0] sm:$0xff]   ;;  %s1496_s22 = smul.u32 224, %s1944_s12  ;;  %v1551_v29 = vld [vmem:[%s1936_s1 + $0xf8] sm:$0xff]   ;;  %v1561_v37 = vld [vmem:[%s1936_s1 + $0x100] sm:$0xff]  }
  0x10   : > { %v1548_v26 = vld [vmem:[%s1936_s1 + $0x30] sm:$0xff]   ;;  %v1552_v30 = vld [vmem:[%s1936_s1 + $0x38] sm:$0xff]   ;;  %v1562_v38 = vld [vmem:[%s1936_s1 + $0x148] sm:$0xff]  }
  0x11   : > { %1347 = vmatpush3.bf16.msra.mxu0 %v1532_v10  ;;  %v1549_v27 = vld [vmem:[%s1936_s1 + $0xb0] sm:$0xff]   ;;  %s1777_s6 = scalar_lea.vmem %s1935_s0, %s1496_s22  ;;  %v1553_v31 = vld [vmem:[%s1936_s1 + $0xb8] sm:$0xff]   ;;  %v1563_v39 = vld [vmem:[%s1936_s1 + $0x108] sm:$0xff]  }
  0x12   : > { %1387 = vmatpush3.bf16.msra.mxu1 %v1533_v11  ;;  %1348 = vmatprep.subr.bf16.mxu0 %v1534_v12  ;;  %v1554_v32 = vld [vmem:[%s1777_s6] ss:$28 sps:$4 sm:$0xff]   ;;  %v1557_v34 = vld [vmem:[%s1777_s6 + $0x8] ss:$28 sps:$4 sm:$0xff]   ;;  %v1568_v42 = vld [vmem:[%s1777_s6 + $0x38] ss:$28 sps:$4 sm:$0xff]  }
  0x13   : > { %1388 = vmatprep.subr.bf16.mxu1 %v1535_v13  ;;  %v1556_v33 = vld [vmem:[%s1777_s6 + $0x4] ss:$28 sps:$4 sm:$0xff]   ;;  %v1559_v35 = vld [vmem:[%s1777_s6 + $0xc] ss:$28 sps:$4 sm:$0xff]   ;;  %v1564_v40 = vld [vmem:[%s1777_s6 + $0x3c] ss:$28 sps:$4 sm:$0xff]  }
  0x14   : > { %833 = vmatprep.mubr.bf16.mxu0 %v1556_v33  ;;  %898 = vmatprep.mubr.bf16.mxu1 %v1559_v35  ;;  %v1566_v41 = vld [vmem:[%s1777_s6 + $0x44] ss:$28 sps:$4 sm:$0xff]   ;;  %v1570_v44 = vld [vmem:[%s1936_s1 + $0x150] sm:$0xff]   ;;  %v1572_v46 = vld [vmem:[%s1936_s1 + $0x158] sm:$0xff]  }
  0x15   : > { %1349 = vmatpush3.bf16.msra.mxu0 %v1536_v14  ;;  %v1569_v43 = vld [vmem:[%s1777_s6 + $0x40] ss:$28 sps:$4 sm:$0xff]   ;;  %v1571_v45 = vld [vmem:[%s1936_s1 + $0x110] sm:$0xff]   ;;  %v1582_v54 = vld [vmem:[%s1936_s1 + $0x168] sm:$0xff]   ;;  %v1638_v14 = vmov 0.0  }
  0x16   : > { %1389 = vmatpush3.bf16.msra.mxu1 %v1537_v15  ;;  %1350 = vmatprep.subr.bf16.mxu0 %v1538_v16  ;;  %v1573_v47 = vld [vmem:[%s1936_s1 + $0x118] sm:$0xff]   ;;  %v1574_v48 = vld [vmem:[%s1777_s6 + $0x74] ss:$28 sps:$4 sm:$0xff]   ;;  %v1580_v51 = vld [vmem:[%s1936_s1 + $0x160] sm:$0xff]   ;;  %207 = vst [vmem:[#allocation2] sm:$0x1] %v1638_v14 }
  0x17   : > { %1390 = vmatprep.subr.bf16.mxu1 %v1539_v17  ;;  %v1576_v49 = vld [vmem:[%s1777_s6 + $0x7c] ss:$28 sps:$4 sm:$0xff]   ;;  %v1578_v50 = vld [vmem:[%s1777_s6 + $0x70] ss:$28 sps:$4 sm:$0xff]   ;;  %v1581_v53 = vld [vmem:[%s1936_s1 + $0x120] sm:$0xff]  }
  0x18   : > { %v1579_v52 = vld [vmem:[%s1777_s6 + $0x78] ss:$28 sps:$4 sm:$0xff]   ;;  %v1584_v55 = vld [vmem:[%s1777_s6 + $0xac] ss:$28 sps:$4 sm:$0xff]   ;;  %v1600_v2 = vld [vmem:[%s1936_s1 + $0x180] sm:$0xff]  }
  0x19   : > { %1351 = vmatpush3.bf16.msra.mxu0 %v1540_v18  ;;  %v1586_v56 = vld [vmem:[%s1777_s6 + $0xb4] ss:$28 sps:$4 sm:$0xff]   ;;  %v1583_v57 = vld [vmem:[%s1936_s1 + $0x128] sm:$0xff]   ;;  %v1592_v62 = vld [vmem:[%s1936_s1 + $0x178] sm:$0xff]   ;;  %208 = vst [vmem:[#allocation3] sm:$0x1] %v1638_v14 }
  0x1a   : > { %1391 = vmatpush3.bf16.msra.mxu1 %v1541_v19  ;;  %1352 = vmatprep.subr.bf16.mxu0 %v1542_v20  ;;  %v1590_v58 = vld [vmem:[%s1936_s1 + $0x170] sm:$0xff]   ;;  %v1588_v59 = vld [vmem:[%s1777_s6 + $0xa8] ss:$28 sps:$4 sm:$0xff]   ;;  %v1599_v0 = vld [vmem:[%s1777_s6 + $0xbc] ss:$28 sps:$4 sm:$0xff]  }
  0x1b   : > { %1392 = vmatprep.subr.bf16.mxu1 %v1543_v21  ;;  %v1589_v60 = vld [vmem:[%s1777_s6 + $0xb0] ss:$28 sps:$4 sm:$0xff]   ;;  %v1593_v1 = vld [vmem:[%s1936_s1 + $0x138] sm:$0xff]   ;;  %v1605_v8 = vld [vmem:[%s1777_s6 + $0x48] ss:$28 sps:$4 sm:$0xff]  }
  0x1c   : > { %v1591_v61 = vld [vmem:[%s1936_s1 + $0x130] sm:$0xff]   ;;  %v1602_v5 = vld [vmem:[%s1777_s6 + $0x4c] ss:$28 sps:$4 sm:$0xff]   ;;  %v1607_v10 = vld [vmem:[%s1777_s6 + $0x84] ss:$28 sps:$4 sm:$0xff]  }
  0x1d   : > { %1353 = vmatpush3.bf16.msra.mxu0 %v1544_v22  ;;  %v1596_v63 = vld [vmem:[%s1777_s6 + $0x14] ss:$28 sps:$4 sm:$0xff]   ;;  %v1601_v7 = vld [vmem:[%s1936_s1 + $0x188] sm:$0xff]   ;;  %v1610_v12 = vld [vmem:[%s1777_s6 + $0x80] ss:$28 sps:$4 sm:$0xff]  }
  0x1e   : > { %1393 = vmatpush3.bf16.msra.mxu1 %v1545_v23  ;;  %1354 = vmatprep.subr.bf16.mxu0 %v1546_v24  ;;  %v1594_v3 = vld [vmem:[%s1777_s6 + $0x10] ss:$28 sps:$4 sm:$0xff]   ;;  %v1597_v4 = vld [vmem:[%s1777_s6 + $0xb8] ss:$28 sps:$4 sm:$0xff]   ;;  %v1609_v11 = vld [vmem:[%s1777_s6 + $0x88] ss:$28 sps:$4 sm:$0xff]  }
  0x1f   : > { %1394 = vmatprep.subr.bf16.mxu1 %v1547_v25  ;;  %v1604_v6 = vld [vmem:[%s1777_s6 + $0x18] ss:$28 sps:$4 sm:$0xff]   ;;  %v1606_v9 = vld [vmem:[%s1777_s6 + $0x50] ss:$28 sps:$4 sm:$0xff]   ;;  %v1611_v13 = vld [vmem:[%s1777_s6 + $0xc0] ss:$28 sps:$4 sm:$0xff]  }
  0x20   : > { %v1256_v16 = vld [vmem:[%s1937_s2] ss:$0 sm:$0xff]  ;;  %s1341_s6 = sshll.u32 %s1944_s12, 6 }
  0x21   : > { %1355 = vmatpush3.bf16.msra.mxu0 %v1548_v26  ;;  %s201_s12 = scalar_lea.vmem %s1938_s3, %s1341_s6 }
  0x22   : > { %1395 = vmatpush3.bf16.msra.mxu1 %v1549_v27  ;;  %1356 = vmatprep.subr.bf16.mxu0 %v1550_v28 }
  0x23   : > { %1396 = vmatprep.subr.bf16.mxu1 %v1551_v29 }
  0x25   : > { %1357 = vmatpush3.bf16.msra.mxu0 %v1552_v30 }
  0x26   : > { %1397 = vmatpush3.bf16.msra.mxu1 %v1553_v31  ;;  %1422 = vmatprep.subr.bf16.mxu0 %v1560_v36 }
  0x27   : > { %1480 = vmatprep.subr.bf16.mxu1 %v1560_v36 }
  0x28   : > { %834 = vmatmul.mubr.bf16.vlgmr.msra.gmra.mrb[0].mxu0 %v1554_v32 }
  0x29   : > { %899 = vmatmul.mubr.bf16.vlgmr.msra.gmra.mrb[0].mxu1 %v1557_v34  ;;  %1423 = vmatpush3.bf16.msra.mxu0 %v1561_v37 }
  0x2a   : > { %1488 = vmatpush3.bf16.msra.mxu1 %v1561_v37  ;;  %1424 = vmatprep.subr.bf16.mxu0 %v1562_v38 }
  0x2b   : > { %1481 = vmatprep.subr.bf16.mxu1 %v1562_v38  ;;  %841 = vmatprep.mubr.bf16.mxu0 %v1564_v40 }
  0x2c   : > { %906 = vmatprep.mubr.bf16.mxu1 %v1566_v41 }
  0x2d   : > { %1425 = vmatpush3.bf16.msra.mxu0 %v1563_v39 }
  0x2e   : > { %1489 = vmatpush3.bf16.msra.mxu1 %v1563_v39  ;;  %1426 = vmatprep.subr.bf16.mxu0 %v1570_v44 }
  0x2f   : > { %1482 = vmatprep.subr.bf16.mxu1 %v1570_v44 }
  0x30   : > { %842 = vmatmul.mubr.bf16.gmra.mrb[4].mxu0 %v1568_v42 }
  0x31   : > { %907 = vmatmul.mubr.bf16.gmra.mrb[4].mxu1 %v1569_v43  ;;  %1427 = vmatpush3.bf16.msra.mxu0 %v1571_v45 }
  0x32   : > { %1490 = vmatpush3.bf16.msra.mxu1 %v1571_v45  ;;  %1428 = vmatprep.subr.bf16.mxu0 %v1572_v46 }
  0x33   : > { %1483 = vmatprep.subr.bf16.mxu1 %v1572_v46  ;;  %849 = vmatprep.mubr.bf16.mxu0 %v1574_v48 }
  0x34   : > { %914 = vmatprep.mubr.bf16.mxu1 %v1576_v49 }
  0x35   : > { %1429 = vmatpush3.bf16.msra.mxu0 %v1573_v47 }
  0x36   : > { %1491 = vmatpush3.bf16.msra.mxu1 %v1573_v47  ;;  %1430 = vmatprep.subr.bf16.mxu0 %v1580_v51 }
  0x37   : > { %1484 = vmatprep.subr.bf16.mxu1 %v1580_v51 }
  0x38   : > { %850 = vmatmul.mubr.bf16.gmra.mrb[8].mxu0 %v1578_v50 }
  0x39   : > { %915 = vmatmul.mubr.bf16.gmra.mrb[8].mxu1 %v1579_v52  ;;  %1431 = vmatpush3.bf16.msra.mxu0 %v1581_v53 }
  0x3a   : > { %857 = vmatprep.mubr.bf16.mxu0 %v1584_v55  ;;  %1492 = vmatpush3.bf16.msra.mxu1 %v1581_v53 }
  0x3b   : > { %1432 = vmatprep.subr.bf16.mxu0 %v1582_v54  ;;  %1485 = vmatprep.subr.bf16.mxu1 %v1582_v54 }
  0x3c   : > { %922 = vmatprep.mubr.bf16.mxu1 %v1586_v56 }
  0x3d   : > { %1433 = vmatpush3.bf16.msra.mxu0 %v1583_v57 }
  0x3e   : > { %1493 = vmatpush3.bf16.msra.mxu1 %v1583_v57  ;;  %1434 = vmatprep.subr.bf16.mxu0 %v1590_v58 }
  0x3f   : > { %1486 = vmatprep.subr.bf16.mxu1 %v1590_v58 }
  0x40   : > { %858 = vmatmul.mubr.bf16.gmra.mrb[12].mxu0 %v1588_v59 }
  0x41   : > { %923 = vmatmul.mubr.bf16.gmra.mrb[12].mxu1 %v1589_v60  ;;  %963 = vmatprep.mubr.bf16.mxu0 %v1596_v63 }
  0x42   : > { %1435 = vmatpush3.bf16.msra.mxu0 %v1591_v61  ;;  %1494 = vmatpush3.bf16.msra.mxu1 %v1591_v61 }
  0x43   : > { %1436 = vmatprep.subr.bf16.mxu0 %v1592_v62  ;;  %1487 = vmatprep.subr.bf16.mxu1 %v1592_v62 }
  0x44   : > { %987 = vmatprep.mubr.bf16.mxu1 %v1599_v0 }
  0x46   : > { %1437 = vmatpush3.bf16.msra.mxu0 %v1593_v1  ;;  %1495 = vmatpush3.bf16.msra.mxu1 %v1593_v1 }
  0x47   : > { %1468 = vmatprep.subr.bf16.mxu1 %v1600_v2 }
  0x49   : > { %964 = vmatmul.mubr.bf16.vlgmr.msra.gmra.mrb[16].mxu0 %v1594_v3  ;;  %988 = vmatmul.mubr.bf16.vlgmr.msra.gmra.mrb[16].mxu1 %v1597_v4 }
  0x4a   : > { %971 = vmatprep.mubr.bf16.mxu0 %v1602_v5  ;;  %1469 = vmatpush3.bf16.msra.mxu1 %v1600_v2 }
  0x4b   : > { %1472 = vmatprep.mubr.msk.bf16.mxu1 %vm788_vm0, %v1604_v6  ;;  %1470 = vmatprep.subr.bf16.mxu1 %v1601_v7 }
  0x4e   : > { %1471 = vmatpush3.bf16.msra.mxu1 %v1601_v7 }
  0x51   : > { %972 = vmatmul.mubr.bf16.gmra.mrb[20].mxu0 %v1605_v8  ;;  %1473 = vmatmul.mubr.msk.bf16.vlgmr.msra.gmra.mrb[20].mxu1 %vm788_vm0, %v1606_v9 }
  0x52   : > { %979 = vmatprep.mubr.bf16.mxu0 %v1607_v10  ;;  %1476 = vmatprep.mubr.msk.bf16.mxu1 %vm788_vm0, %v1609_v11 }
  0x59   : > { %980 = vmatmul.mubr.bf16.gmra.mrb[24].mxu0 %v1610_v12  ;;  %1477 = vmatmul.mubr.msk.bf16.gmra.mrb[24].mxu1 %vm788_vm0, %v1611_v13 }
  0xfb   : > { %v1358_v15 = vpop.f32.mrb[0].mxu0 }
  0xfc   : > { %v1359_v17 = vpop.f32.mrb[1].mxu0  ;;  %v1398_v18 = vpop.f32.mrb[0].mxu1 }
  0xfd   : > { %v1360_v19 = vadd.f32 %v1359_v17, %v1358_v15  ;;  %v1361_v20 = vpop.f32.mrb[2].mxu0  ;;  %v1399_v21 = vpop.f32.mrb[1].mxu1 }
  0xfe   : > { %v1362_v22 = vpop.f32.mrb[3].mxu0  ;;  %v1400_v23 = vadd.f32 %v1399_v21, %v1398_v18  ;;  %v1401_v24 = vpop.f32.mrb[2].mxu1 }
  0xff   : > { %v836_v25 = vadd.f32 %v1360_v19, %v1256_v16  ;;  %v1363_v26 = vadd.f32 %v1362_v22, %v1361_v20  ;;  %v1402_v27 = vpop.f32.mrb[3].mxu1 }
 0x100   : > { %v1403_v28 = vadd.f32 %v1402_v27, %v1401_v24 }
 0x101   : > { %v839_v29 = vadd.f32 %v1363_v26, %v1256_v16  ;;  %v901_v30 = vadd.f32 %v1400_v23, %v836_v25 }
 0x103   : > { %v1874_v31 = vadd.f32 %v1403_v28, %v839_v29  ;;  %v1364_v32 = vpop.f32.mrb[4].mxu0 }
 0x104   : > { %v1365_v33 = vpop.f32.mrb[5].mxu0  ;;  %v1404_v34 = vpop.f32.mrb[4].mxu1 }
 0x105   : > { %v1366_v35 = vadd.f32 %v1365_v33, %v1364_v32  ;;  %v1367_v36 = vpop.f32.mrb[6].mxu0  ;;  %v1405_v37 = vpop.f32.mrb[5].mxu1 }
 0x106   : > { %v1368_v38 = vpop.f32.mrb[7].mxu0  ;;  %v1406_v39 = vadd.f32 %v1405_v37, %v1404_v34  ;;  %v1407_v40 = vpop.f32.mrb[6].mxu1 }
 0x107   : > { %v844_v41 = vadd.f32 %v1366_v35, %v1256_v16  ;;  %v1369_v42 = vadd.f32 %v1368_v38, %v1367_v36  ;;  %v1408_v43 = vpop.f32.mrb[7].mxu1 }
 0x108   : > { %v1409_v44 = vadd.f32 %v1408_v43, %v1407_v40 }
 0x109   : > { %v847_v45 = vadd.f32 %v1369_v42, %v1256_v16  ;;  %v909_v46 = vadd.f32 %v1406_v39, %v844_v41 }
 0x10b   : > { %v1876_v47 = vadd.f32 %v1409_v44, %v847_v45  ;;  %v1370_v48 = vpop.f32.mrb[8].mxu0 }
 0x10c   : > { %v1371_v49 = vpop.f32.mrb[9].mxu0  ;;  %v1410_v50 = vpop.f32.mrb[8].mxu1 }
 0x10d   : > { %v1372_v51 = vadd.f32 %v1371_v49, %v1370_v48  ;;  %v1373_v52 = vpop.f32.mrb[10].mxu0  ;;  %v1411_v53 = vpop.f32.mrb[9].mxu1 }
 0x10e   : > { %v1374_v54 = vpop.f32.mrb[11].mxu0  ;;  %v1412_v55 = vadd.f32 %v1411_v53, %v1410_v50  ;;  %v1413_v56 = vpop.f32.mrb[10].mxu1 }
 0x10f   : > { %v852_v57 = vadd.f32 %v1372_v51, %v1256_v16  ;;  %v1375_v58 = vadd.f32 %v1374_v54, %v1373_v52  ;;  %v1414_v59 = vpop.f32.mrb[11].mxu1 }
 0x110   : > { %v1415_v60 = vadd.f32 %v1414_v59, %v1413_v56 }
 0x111   : > { %v855_v61 = vadd.f32 %v1375_v58, %v1256_v16  ;;  %v1878_v62 = vadd.f32 %v1412_v55, %v852_v57 }
 0x113   : > { %v1880_v63 = vadd.f32 %v1415_v60, %v855_v61  ;;  %v1376_v0 = vpop.f32.mrb[12].mxu0 }
 0x114   : > { %v1377_v1 = vpop.f32.mrb[13].mxu0  ;;  %v1416_v2 = vpop.f32.mrb[12].mxu1 }
 0x115   : > { %v1378_v3 = vadd.f32 %v1377_v1, %v1376_v0  ;;  %v1379_v4 = vpop.f32.mrb[14].mxu0  ;;  %v1417_v5 = vpop.f32.mrb[13].mxu1 }
 0x116   : > { %v1380_v6 = vpop.f32.mrb[15].mxu0  ;;  %v1418_v7 = vadd.f32 %v1417_v5, %v1416_v2  ;;  %v1419_v8 = vpop.f32.mrb[14].mxu1 }
 0x117   : > { %v860_v9 = vadd.f32 %v1378_v3, %v1256_v16  ;;  %v1381_v10 = vadd.f32 %v1380_v6, %v1379_v4  ;;  %v1420_v11 = vpop.f32.mrb[15].mxu1 }
 0x118   : > { %v1421_v12 = vadd.f32 %v1420_v11, %v1419_v8 }
 0x119   : > { %v863_v13 = vadd.f32 %v1381_v10, %v1256_v16  ;;  %v925_v14 = vadd.f32 %v1418_v7, %v860_v9 }
 0x11b   : > { %v928_v15 = vadd.f32 %v1421_v12, %v863_v13 }
 0x11c   : > { %v1438_v17 = vpop.f32.mrb[16].mxu0  ;;  %v1456_v18 = vpop.f32.mrb[16].mxu1 }
 0x11d   : > { %v1439_v19 = vpop.f32.mrb[17].mxu0  ;;  %v1457_v21 = vpop.f32.mrb[17].mxu1 }
 0x11e   : > { %v1440_v20 = vadd.f32 %v1439_v19, %v1438_v17  ;;  %v1441_v22 = vpop.f32.mrb[18].mxu0  ;;  %v1458_v23 = vadd.f32 %v1457_v21, %v1456_v18  ;;  %v1459_v24 = vpop.f32.mrb[18].mxu1 }
 0x11f   : > { %v1442_v25 = vpop.f32.mrb[19].mxu0  ;;  %v1460_v27 = vpop.f32.mrb[19].mxu1 }
 0x120   : > { %v1443_v26 = vadd.f32 %v1442_v25, %v1441_v22  ;;  %v966_v28 = vadd.f32 %v1440_v20, %v901_v30  ;;  %v1461_v29 = vadd.f32 %v1460_v27, %v1459_v24  ;;  %v990_v32 = vadd.f32 %v1458_v23, %v925_v14 }
 0x122   : > { %v969_v33 = vadd.f32 %v1443_v26, %v1874_v31  ;;  %v993_v34 = vadd.f32 %v1461_v29, %v928_v15 }
 0x124   : > { %v1444_v16 = vpop.f32.mrb[20].mxu0  ;;  %v1474_v35 = vpop.f32.mrb[20].mxu1 }
 0x125   : > { %v1445_v36 = vpop.f32.mrb[21].mxu0  ;;  %v1030_v38 = vpop.f32.mrb[21].mxu1 }
 0x126   : > { %v1446_v37 = vadd.f32 %v1445_v36, %v1444_v16  ;;  %v1447_v39 = vpop.f32.mrb[22].mxu0  ;;  %v1883_v40 = vadd.f32 %v1030_v38, %v966_v28  ;;  %v1475_v41 = vpop.f32.mrb[22].mxu1  ;;  %v1077_v36 = vld [vmem:[#allocation3] sm:$0x1] }
 0x127   : > { %v1448_v42 = vpop.f32.mrb[23].mxu0  ;;  %v1033_v45 = vpop.f32.mrb[23].mxu1 }
 0x128   : > { %v974_v43 = vadd.f32 %v1446_v37, %v909_v46  ;;  %v1449_v44 = vadd.f32 %v1448_v42, %v1447_v39  ;;  %v1885_v48 = vadd.f32 %v1033_v45, %v969_v33  ;;  %v1078_v49 = vmul.f32 %v1883_v40, %v1883_v40 }
 0x12a   : > { %v1887_v30 = vadd.f32 %v1474_v35, %v974_v43  ;;  %v977_v31 = vadd.f32 %v1449_v44, %v1876_v47  ;;  %v1062_v50 = vadd.f32 %v1885_v48, %v1883_v40  ;;  %v1079_v51 = vmul.f32 %v1885_v48, %v1885_v48 }
 0x12c   : > { %v1080_v46 = vmul.f32 %v1887_v30, %v1887_v30  ;;  %v1898_v52 = vadd.f32 %v1475_v41, %v977_v31  ;;  %v1450_v53 = vpop.f32.mrb[24].mxu0  ;;  %v1063_v54 = vadd.f32 %v1062_v50, %v1887_v30  ;;  %v1086_v55 = vadd.f32 %v1079_v51, %v1078_v49  ;;  %v1478_v56 = vpop.f32.mrb[24].mxu1 }
 0x12d   : > { %v1451_v47 = vpop.f32.mrb[25].mxu0  ;;  %v1903_v58 = vadd.f32 %v1478_v56, %v990_v32  ;;  %v1046_v60 = vpop.f32.mrb[25].mxu1  ;;  %v1131_v31 = vlaneseq }
 0x12e   : > { %v1081_v57 = vmul.f32 %v1898_v52, %v1898_v52  ;;  %v1452_v59 = vadd.f32 %v1451_v47, %v1450_v53  ;;  %v1453_v61 = vpop.f32.mrb[26].mxu0  ;;  %v1087_v0 = vadd.f32 %v1086_v55, %v1080_v46  ;;  %v1064_v1 = vadd.f32 %v1063_v54, %v1898_v52  ;;  %v1479_v2 = vpop.f32.mrb[26].mxu1 }
 0x12f   : > { %v1454_v3 = vpop.f32.mrb[27].mxu0  ;;  %v1907_v5 = vadd.f32 %v1479_v2, %v993_v34  ;;  %v1049_v7 = vpop.f32.mrb[27].mxu1  ;;  %v1084_v18 = vmul.f32 %v1903_v58, %v1903_v58  ;;  %v1061_v34 = vld [vmem:[#allocation2] sm:$0x1]  ;;  %v1132_v51 = vshrl.u32 %v1131_v31, 7 }
 0x130   : > { %v982_v4 = vadd.f32 %v1452_v59, %v1878_v62  ;;  %v1455_v6 = vadd.f32 %v1454_v3, %v1453_v61  ;;  %v1088_v8 = vadd.f32 %v1087_v0, %v1081_v57 }
 0x131   : > { %v1085_v20 = vmul.f32 %v1907_v5, %v1907_v5  ;;  %v1133_v46 = vsub.s32 0, %v1132_v51 }
 0x132   : > { %v1047_v9 = vadd.f32 %v1046_v60, %v982_v4  ;;  %v985_v10 = vadd.f32 %v1455_v6, %v1880_v63 }
 0x134   : > { %v1065_v11 = vadd.f32 %v1064_v1, %v1047_v9  ;;  %v1082_v12 = vmul.f32 %v1047_v9, %v1047_v9  ;;  %v1050_v13 = vadd.f32 %v1049_v7, %v985_v10 }
 0x136   : > { %v1089_v14 = vadd.f32 %v1088_v8, %v1082_v12  ;;  %v1066_v15 = vadd.f32 %v1065_v11, %v1050_v13  ;;  %v1083_v17 = vmul.f32 %v1050_v13, %v1050_v13 }
 0x138   : > { %v1067_v19 = vadd.f32 %v1066_v15, %v1903_v58  ;;  %v1090_v62 = vadd.f32 %v1089_v14, %v1083_v17 }
 0x13a   : > { %v1068_v21 = vadd.f32 %v1067_v19, %v1907_v5  ;;  %v1091_v22 = vadd.f32 %v1090_v62, %v1084_v18 }
 0x13c   : > { %v1069_v23 = vrot.slane %v1068_v21, 4  ;;  %v1092_v63 = vadd.f32 %v1091_v22, %v1085_v20 }
 0x13e   : > { %v1070_v24 = vadd.f32 %v1069_v23, %v1068_v21  ;;  %v1093_v25 = vrot.slane %v1092_v63, 4 }
 0x140   : > { %v1071_v26 = vrot.slane %v1070_v24, 2  ;;  %v1094_v27 = vadd.f32 %v1093_v25, %v1092_v63 }
 0x142   : > { %v1072_v28 = vadd.f32 %v1071_v26, %v1070_v24  ;;  %v1095_v29 = vrot.slane %v1094_v27, 2 }
 0x144   : > { %v1073_v32 = vrot.slane %v1072_v28, 1  ;;  %v1096_v33 = vadd.f32 %v1095_v29, %v1094_v27 }
 0x146   : > { %v1074_v16 = vadd.f32 %v1073_v32, %v1072_v28  ;;  %v1097_v35 = vrot.slane %v1096_v33, 1 }
 0x148   : > { %v1075_v37 = vadd.f32 %v1074_v16, %v1061_v34  ;;  %v1098_v38 = vadd.f32 %v1097_v35, %v1096_v33 }
 0x14a   : > { %1076 = vst [vmem:[#allocation2] sm:$0x1] %v1075_v37  ;;  %v1099_v39 = vadd.f32 %v1098_v38, %v1077_v36 }
 0x14c   : > { %1100 = vst [vmem:[#allocation3] sm:$0x1] %v1099_v39 }
 0x151   : > { %v1114_v41 = vld [vmem:[#allocation2] sm:$0x1] }
 0x152   : > { %v1115_v42 = vmul.f32 0.015625, %v1114_v41 }
 0x153   : > { %v1116_v43 = vld [vmem:[#allocation3] sm:$0x1] }
 0x154   : > { %v1117_v44 = vmul.f32 0.015625, %v1116_v43  ;;  %v1118_v45 = vmul.f32 %v1115_v42, %v1115_v42  ;;  %v1134_v53 = vrot.slane %v1115_v42, %v1133_v46 }
 0x156   : > { %v1119_v49 = vsub.f32 %v1117_v44, %v1118_v45  ;;  %v1136_v55 = vsub.f32 %v1883_v40, %v1134_v53  ;;  %v1137_v56 = vsub.f32 %v1885_v48, %v1134_v53  ;;  %v1138_v47 = vsub.f32 %v1887_v30, %v1134_v53 }
 0x157   : > { %v1139_v57 = vsub.f32 %v1898_v52, %v1134_v53  ;;  %v1140_v60 = vsub.f32 %v1047_v9, %v1134_v53  ;;  %v1141_v61 = vsub.f32 %v1050_v13, %v1134_v53  ;;  %v1142_v0 = vsub.f32 %v1903_v58, %v1134_v53 }
 0x158   : > { %v1120_v50 = vadd.f32 1e-05, %v1119_v49  ;;  %v1143_v1 = vsub.f32 %v1907_v5, %v1134_v53 }
 0x15a   : > { %1612 = vrsqrt.f32 %v1120_v50 }
 0x164   : > { %v1613_v54 = vpop.eup %1612 }
 0x165   : > { %v1148_v59 = vrot.slane %v1613_v54, %v1133_v46 }
 0x167   : > { %v1150_v2 = vmul.f32 %v1148_v59, %v1136_v55  ;;  %v1151_v3 = vmul.f32 %v1148_v59, %v1137_v56  ;;  %v1152_v4 = vmul.f32 %v1148_v59, %v1138_v47  ;;  %v1153_v6 = vmul.f32 %v1148_v59, %v1139_v57 }
 0x168   : > { %v1154_v40 = vmul.f32 %v1148_v59, %v1140_v60  ;;  %v1155_v48 = vmul.f32 %v1148_v59, %v1141_v61  ;;  %v1156_v30 = vmul.f32 %v1148_v59, %v1142_v0  ;;  %v1157_v7 = vmul.f32 %v1148_v59, %v1143_v1 }
 0x169   : > { %v1158_v52 = vmax.f32 %v1150_v2, 0.0  ;;  %v1159_v8 = vmax.f32 %v1151_v3, 0.0  ;;  %v1160_v9 = vmax.f32 %v1152_v4, 0.0  ;;  %v1161_v10 = vmax.f32 %v1153_v6, 0.0 }
 0x16a   : > { %v1162_v11 = vmax.f32 %v1154_v40, 0.0  ;;  %v1163_v58 = vmax.f32 %v1155_v48, 0.0  ;;  %v1164_v12 = vmax.f32 %v1156_v30, 0.0  ;;  %v1165_v5 = vmax.f32 %v1157_v7, 0.0 }
 0x16b   : > { %1166 = vst [vmem:[%s201_s12] sm:$0xff] %v1158_v52  ;;  %1167 = vst [vmem:[%s201_s12 + $0x8] sm:$0xff] %v1159_v8 }
 0x16c   : > { %1168 = vst [vmem:[%s201_s12 + $0x10] sm:$0xff] %v1160_v9  ;;  %1169 = vst [vmem:[%s201_s12 + $0x18] sm:$0xff] %v1161_v10 }
 0x16d   : > { %1170 = vst [vmem:[%s201_s12 + $0x20] sm:$0xff] %v1162_v11  ;;  %1171 = vst [vmem:[%s201_s12 + $0x28] sm:$0xff] %v1163_v58 }
 0x16e   : > { %1172 = vst [vmem:[%s201_s12 + $0x30] sm:$0xff] %v1164_v12  ;;  %1173 = vst [vmem:[%s201_s12 + $0x38] sm:$0xff] %v1165_v5 }
 0x16f PF: > { %s13_s14 = sadd.s32 1, %s1636_s14   ;;  %s1939_s12 = smov %s1632_s13 }
 0x170   : > { %p10_p5 = scmp.ge.s32.totalorder %s13_s14, 4   ;;  %s1940_s13 = smov %s1942_s15 }
 0x172   :  { %12 = sbr.rel (!%p10_p5) target bundleno = 2 (0x2), region = 71 }

// kernel: inr_cls_wide4_forward.7
= control target key start
LH: loop header
LB: loop body
LE: loop exit
PB: predicated region body
PF: predicated region fallthrough
CT: control target
= control target key end

     0   :  { %v406_v3 = vmov 0.0|0.0   ;;  %vm407_vm0 = vmmov 0   ;;  %v408_v6 = vmov 0.0   ;;  %s573_s0 = inlined_call_operand.vmem [shape: f32[2,128], index: 0, kind: input, shape index: {}]   ;;  %s574_s1 = inlined_call_operand.vmem [shape: f32[128,128], index: 1, kind: input, shape index: {}]   ;;  %s575_s2 = inlined_call_operand.vmem [shape: f32[1,128], index: 2, kind: input, shape index: {}]   ;;  %s576_s3 = inlined_call_operand.vmem [shape: f32[128,128], index: 3, kind: input, shape index: {}]   ;;  %s577_s4 = inlined_call_operand.vmem [shape: f32[1,128], index: 4, kind: input, shape index: {}]   ;;  %s578_s5 = inlined_call_operand.hbm [shape: f32[2,128], index: 5, kind: output, shape index: {}]  }
   0x1   :  { %v22_v0 = vld [vmem:[%s574_s1] sm:$0xff]  ;;  %v23_v1 = vld [vmem:[%s574_s1 + $0x8] sm:$0xff]  ;;  %v24_v2 = vld [vmem:[%s574_s1 + $0x10] sm:$0xff]  ;;  %330 = vmatprep.subr.bf16.mxu0 %v406_v3  ;;  %292 = vmatprep.mubr.msk.f32.mxu0 %vm407_vm0, %v408_v6 }
   0x2   :  { %v331_v4 = vpack.c.bf16 %v23_v1, %v22_v0  ;;  %v25_v5 = vld [vmem:[%s574_s1 + $0x18] sm:$0xff]  ;;  %354 = vmatprep.subr.bf16.mxu1 %v406_v3  ;;  %327 = vmatprep.mubr.msk.f32.mxu1 %vm407_vm0, %v408_v6  ;;  %v26_v8 = vld [vmem:[%s574_s1 + $0x20] sm:$0xff]  ;;  %v27_v9 = vld [vmem:[%s574_s1 + $0x28] sm:$0xff] }
   0x3   :  { %v334_v7 = vpack.c.bf16 %v25_v5, %v24_v2  ;;  %v116_v10 = vld [vmem:[%s576_s3] sm:$0xff]  ;;  %v117_v11 = vld [vmem:[%s576_s3 + $0x8] sm:$0xff]  ;;  %v118_v12 = vld [vmem:[%s576_s3 + $0x10] sm:$0xff]  ;;  %v337_v14 = vpack.c.bf16 %v27_v9, %v26_v8 }
   0x4   :  { %332 = vmatpush3.bf16.msra.mxu0 %v331_v4  ;;  %v119_v13 = vld [vmem:[%s576_s3 + $0x18] sm:$0xff]  ;;  %v355_v15 = vpack.c.bf16 %v117_v11, %v116_v10  ;;  %v28_v16 = vld [vmem:[%s574_s1 + $0x30] sm:$0xff]  ;;  %v120_v19 = vld [vmem:[%s576_s3 + $0x20] sm:$0xff] }
   0x5   :  { %333 = vmatprep.subr.bf16.mxu0 %v406_v3  ;;  %v29_v17 = vld [vmem:[%s574_s1 + $0x38] sm:$0xff]  ;;  %v358_v18 = vpack.c.bf16 %v119_v13, %v118_v12  ;;  %v121_v20 = vld [vmem:[%s576_s3 + $0x28] sm:$0xff] }
   0x6   :  { %356 = vmatpush3.bf16.msra.mxu1 %v355_v15 }
   0x7   :  { %357 = vmatprep.subr.bf16.mxu1 %v406_v3 }
   0x8   :  { %335 = vmatpush3.bf16.msra.mxu0 %v334_v7 }
   0x9   :  { %336 = vmatprep.subr.bf16.mxu0 %v406_v3 }
   0xa   :  { %10 = vsyncpa [#allocation3], 0  ;;  %v340_v21 = vpack.c.bf16 %v29_v17, %v28_v16  ;;  %v30_v22 = vld [vmem:[%s574_s1 + $0x40] sm:$0xff]  ;;  %v31_v23 = vld [vmem:[%s574_s1 + $0x48] sm:$0xff]  ;;  %359 = vmatpush3.bf16.msra.mxu1 %v358_v18  ;;  %v361_v24 = vpack.c.bf16 %v121_v20, %v120_v19  ;;  %s409_s11 = smov [#allocation2]  }
   0xb   :  { %360 = vmatprep.subr.bf16.mxu1 %v406_v3  ;;  %v122_v25 = vld [vmem:[%s576_s3 + $0x30] sm:$0xff]  ;;  %v123_v26 = vld [vmem:[%s576_s3 + $0x38] sm:$0xff]  ;;  %v343_v27 = vpack.c.bf16 %v31_v23, %v30_v22  ;;  %v124_v31 = vld [vmem:[%s576_s3 + $0x40] sm:$0xff]  ;;  %s216_s12 = sshll.u32 %s409_s11, 4  ;;  %s217_s12 = int_to_ptr.vmem [resolvable:$true] %s216_s12 }
   0xc   :  { %338 = vmatpush3.bf16.msra.mxu0 %v337_v14  ;;  %v32_v28 = vld [vmem:[%s574_s1 + $0x50] sm:$0xff]  ;;  %v33_v29 = vld [vmem:[%s574_s1 + $0x58] sm:$0xff]  ;;  %v364_v30 = vpack.c.bf16 %v123_v26, %v122_v25  ;;  %v125_v32 = vld [vmem:[%s576_s3 + $0x48] sm:$0xff]  ;;  %p387_p1 = scmp.lt.s32.totalorder %s217_s12, %s217_s12 }
   0xd   :  { %339 = vmatprep.subr.bf16.mxu0 %v406_v3  ;;  %v346_v33 = vpack.c.bf16 %v33_v29, %v32_v28  ;;  %v34_v34 = vld [vmem:[%s574_s1 + $0x60] sm:$0xff]  ;;  %v35_v35 = vld [vmem:[%s574_s1 + $0x68] sm:$0xff]  ;;  %v367_v36 = vpack.c.bf16 %v125_v32, %v124_v31  ;;  %v126_v37 = vld [vmem:[%s576_s3 + $0x50] sm:$0xff] }
   0xe   :  { %362 = vmatpush3.bf16.msra.mxu1 %v361_v24  ;;  %v127_v38 = vld [vmem:[%s576_s3 + $0x58] sm:$0xff]  ;;  %v349_v39 = vpack.c.bf16 %v35_v35, %v34_v34  ;;  %v36_v40 = vld [vmem:[%s574_s1 + $0x70] sm:$0xff]  ;;  %v128_v43 = vld [vmem:[%s576_s3 + $0x60] sm:$0xff] }
   0xf   :  { %363 = vmatprep.subr.bf16.mxu1 %v406_v3  ;;  %v37_v41 = vld [vmem:[%s574_s1 + $0x78] sm:$0xff]  ;;  %v370_v42 = vpack.c.bf16 %v127_v38, %v126_v37  ;;  %v129_v44 = vld [vmem:[%s576_s3 + $0x68] sm:$0xff]  ;;  %v21_v47 = vld [vmem:[%s573_s0] sm:$0x3] }
  0x10   :  { %341 = vmatpush3.bf16.msra.mxu0 %v340_v21  ;;  %v352_v45 = vpack.c.bf16 %v37_v41, %v36_v40  ;;  %v373_v46 = vpack.c.bf16 %v129_v44, %v128_v43  ;;  %v130_v48 = vld [vmem:[%s576_s3 + $0x70] sm:$0xff]  ;;  %v131_v49 = vld [vmem:[%s576_s3 + $0x78] sm:$0xff]  ;;  %v224_v51 = vld [vmem:[%s575_s2] ss:$0 sm:$0xff]  ;;  %s382_s3 = scalar_lea.vmem %s217_s12, 32 }
  0x11   :  { %342 = vmatprep.subr.bf16.mxu0 %v406_v3  ;;  %v376_v50 = vpack.c.bf16 %v131_v49, %v130_v48  ;;  %v225_v56 = vld [vmem:[%s577_s4] ss:$0 sm:$0xff]  ;;  %p383_p0 = scmp.ne.s32.totalorder %s217_s12, %s382_s3  ;;  %p388_p2 = scmp.lt.s32.totalorder %s382_s3, %s382_s3 }
  0x12   :  { %365 = vmatpush3.bf16.msra.mxu1 %v364_v30 }
  0x13   :  { %366 = vmatprep.subr.bf16.mxu1 %v406_v3  ;;  %p389_p3 = por %p388_p2, %p387_p1 }
  0x14   :  { %344 = vmatpush3.bf16.msra.mxu0 %v343_v27 }
  0x15   :  { %345 = vmatprep.subr.bf16.mxu0 %v406_v3  ;;  %p390_p4 = pnand %p389_p3, %p383_p0 }
  0x16   :  { %368 = vmatpush3.bf16.msra.mxu1 %v367_v36 }
  0x17   :  { %369 = vmatprep.subr.bf16.mxu1 %v406_v3 }
  0x18   :  { %347 = vmatpush3.bf16.msra.mxu0 %v346_v33 }
  0x19   :  { %348 = vmatprep.subr.bf16.mxu0 %v406_v3 }
  0x1a   :  { %371 = vmatpush3.bf16.msra.mxu1 %v370_v42 }
  0x1b   :  { %372 = vmatprep.subr.bf16.mxu1 %v406_v3 }
  0x1c   :  { %350 = vmatpush3.bf16.msra.mxu0 %v349_v39 }
  0x1d   :  { %351 = vmatprep.subr.bf16.mxu0 %v406_v3 }
  0x1e   :  { %374 = vmatpush3.bf16.msra.mxu1 %v373_v46 }
  0x1f   :  { %375 = vmatprep.subr.bf16.mxu1 %v406_v3 }
  0x20   :  { %353 = vmatpush3.bf16.msra.mxu0 %v352_v45 }
  0x22   :  { %377 = vmatpush3.bf16.msra.mxu1 %v376_v50 }
  0x23   :  { %293 = vmatmul.mubr.f32.vlgmr.msra.gmra.mrb[0].mxu0 %v21_v47 }
  0xf6   :  { %v111_v52 = vpop.f32.mrb[0].mxu0 }
  0xf7   :  { %v112_v53 = vadd.f32 %v224_v51, %v111_v52  ;;  %v294_v54 = vpop.f32.mrb[1].mxu0 }
  0xf9   :  { %v115_v55 = vmax.f32 %v112_v53, 0.0 }
  0xfb   :  { %328 = vmatmul.mubr.f32.vlgmr.msra.gmra.mrb[0].mxu1 %v115_v55 }
 0x1ce   :  { %v205_v57 = vpop.f32.mrb[0].mxu1 }
 0x1cf   :  { %v206_v58 = vadd.f32 %v225_v56, %v205_v57  ;;  %v329_v59 = vpop.f32.mrb[1].mxu1 }
 0x1d1   :  { %209 = vst [vmem:[#allocation2] sm:$0x3] %v206_v58 }
 0x1d2   :  { %393 = shalt.err (!%p390_p4)
}
 0x1d3   :  { %s394_s14 = scalar_lea.hbm %s578_s5, 32 }
 0x1d4   :  { %p395_p5 = scmp.ne.s32.totalorder %s578_s5, %s394_s14  ;;  %p398_p6 = scmp.lt.u32.totalorder %s394_s14, %s578_s5 }
 0x1d6   :  { %p400_p7 = pnand %p398_p6, %p395_p5 }
 0x1d8   :  { %403 = shalt.err (!%p400_p7)
}
 0x1d9   :  { %219 = dma.vmem_to_hbm [thread:$0]  %s217_s12, 32, %s578_s5, [#allocation3]  }
 0x1da   :  { %404 = dma.done.wait [#allocation3], 32  }
 0x1db   :  { %405 = vsyncadd [#allocation3], 4294967264 }
 0x1dc   :  { %223 = vsyncpa [#allocation3], 1 }

// kernel: inr_cls_wide4_forward.6
= control target key start
LH: loop header
LB: loop body
LE: loop exit
PB: predicated region body
PF: predicated region fallthrough
CT: control target
= control target key end

     0   :  { %s2752_s15 = smov 0   ;;  %s2754_s16 = smov 0   ;;  %s3212_s0 = inlined_call_operand.vmem [shape: bf16[2,64,1600], index: 0, kind: input, shape index: {}]   ;;  %s3213_s1 = inlined_call_operand.vmem [shape: bf16[1600,128], index: 1, kind: input, shape index: {}]   ;;  %s3214_s2 = inlined_call_operand.vmem [shape: f32[1,128], index: 2, kind: input, shape index: {}]   ;;  %s3215_s3 = inlined_call_operand.vmem [shape: f32[2,64,128], index: 3, kind: input, shape index: {}]   ;;  %s3216_s4 = inlined_call_operand.vmem [shape: f32[2,1,128], index: 4, kind: output, shape index: {}]  }
   0x1   :  { %s2756_s17 = smov 0  }
   0x2 LB: > { %s26_s18 = sadd.s32 1, %s2720_s16  ;;  %p2062_p0 = scmp.ge.s32.totalorder %s2724_s17, 1  ;;  %s2724_s17 = sphi %s2756_s17, %s14_s17   ;;  %s2720_s16 = sphi %s2754_s16, %s3218_s16   ;;  %s2716_s15 = sphi %s2752_s15, %s3217_s15  }
   0x3   : > { %p28_p1 = scmp.ge.s32.totalorder %s26_s18, 2  ;;  %p192_p2 = scmp.lt.s32.totalorder %s2724_s17, 3 }
   0x5   : > { %s3220_s18 = smov (%p28_p1, %s26_s18), 0  ;;  %p193_p3 = pnand %p2062_p0, %p192_p2 }
   0x6   : > { %v2524_v0 = vld [vmem:[%s3213_s1 + $0x40] sm:$0xff] (!%p193_p3)   ;;  %v2528_v4 = vld [vmem:[%s3213_s1 + $0x48] sm:$0xff] (!%p193_p3)   ;;  %v2532_v8 = vld [vmem:[%s3213_s1 + $0x50] sm:$0xff] (!%p193_p3)   ;;  %p227_p4 = scmp.lt.s32.totalorder (!%p193_p3), %s2716_s15, 1  ;;  %vm1375_vm0 = vcmask (!%p193_p3), 523264  }
   0x7   : > { %196 = sbr.rel (%p193_p3) target bundleno = 445 (0x1bd), region = 36  ;;  %v2525_v1 = vld [vmem:[%s3213_s1 + $0xc0] sm:$0xff] (!%p193_p3)   ;;  %2226 = vmatprep.subr.bf16.mxu0 (!%p193_p3), %v2524_v0  ;;  %v2529_v5 = vld [vmem:[%s3213_s1 + $0xc8] sm:$0xff] (!%p193_p3)   ;;  %v2533_v9 = vld [vmem:[%s3213_s1 + $0xd0] sm:$0xff] (!%p193_p3)  }
   0x8   : > { %v2526_v2 = vld [vmem:[%s3213_s1] sm:$0xff] (!%p193_p3)   ;;  %2266 = vmatprep.subr.bf16.mxu1 (!%p193_p3), %v2525_v1  ;;  %v2530_v6 = vld [vmem:[%s3213_s1 + $0x8] sm:$0xff] (!%p193_p3)   ;;  %v2534_v10 = vld [vmem:[%s3213_s1 + $0x10] sm:$0xff] (!%p193_p3)  }
   0x9   : > { %v2527_v3 = vld [vmem:[%s3213_s1 + $0x80] sm:$0xff] (!%p193_p3)   ;;  %2227 = vmatpush3.bf16.msra.mxu0 (!%p193_p3), %v2526_v2  ;;  %v2531_v7 = vld [vmem:[%s3213_s1 + $0x88] sm:$0xff] (!%p193_p3)   ;;  %v2535_v11 = vld [vmem:[%s3213_s1 + $0x90] sm:$0xff] (!%p193_p3)  }
   0xa   : > { %2267 = vmatpush3.bf16.msra.mxu1 (!%p193_p3), %v2527_v3  ;;  %2228 = vmatprep.subr.bf16.mxu0 (!%p193_p3), %v2528_v4  ;;  %v2536_v12 = vld [vmem:[%s3213_s1 + $0x58] sm:$0xff] (!%p193_p3)   ;;  %v2540_v16 = vld [vmem:[%s3213_s1 + $0x60] sm:$0xff] (!%p193_p3)   ;;  %v2544_v20 = vld [vmem:[%s3213_s1 + $0x68] sm:$0xff] (!%p193_p3)  }
   0xb   : > { %2268 = vmatprep.subr.bf16.mxu1 (!%p193_p3), %v2529_v5  ;;  %v2537_v13 = vld [vmem:[%s3213_s1 + $0xd8] sm:$0xff] (!%p193_p3)   ;;  %v2541_v17 = vld [vmem:[%s3213_s1 + $0xe0] sm:$0xff] (!%p193_p3)   ;;  %v2545_v21 = vld [vmem:[%s3213_s1 + $0xe8] sm:$0xff] (!%p193_p3)  }
   0xc   : > { %v2538_v14 = vld [vmem:[%s3213_s1 + $0x18] sm:$0xff] (!%p193_p3)   ;;  %v2542_v18 = vld [vmem:[%s3213_s1 + $0x20] sm:$0xff] (!%p193_p3)   ;;  %v2546_v22 = vld [vmem:[%s3213_s1 + $0x28] sm:$0xff] (!%p193_p3)  }
   0xd   : > { %2229 = vmatpush3.bf16.msra.mxu0 (!%p193_p3), %v2530_v6  ;;  %v2539_v15 = vld [vmem:[%s3213_s1 + $0x98] sm:$0xff] (!%p193_p3)   ;;  %v2543_v19 = vld [vmem:[%s3213_s1 + $0xa0] sm:$0xff] (!%p193_p3)   ;;  %v2547_v23 = vld [vmem:[%s3213_s1 + $0xa8] sm:$0xff] (!%p193_p3)  }
   0xe   : > { %2269 = vmatpush3.bf16.msra.mxu1 %v2531_v7  ;;  %2230 = vmatprep.subr.bf16.mxu0 %v2532_v8  ;;  %s3222_s15 = smov (!%p227_p4, %s2716_s15), 1  ;;  %v2548_v24 = vld [vmem:[%s3213_s1 + $0x70] sm:$0xff]   ;;  %v2552_v28 = vld [vmem:[%s3213_s1 + $0x78] sm:$0xff]   ;;  %v2562_v36 = vld [vmem:[%s3213_s1 + $0x140] sm:$0xff]  }
   0xf   : > { %2270 = vmatprep.subr.bf16.mxu1 %v2533_v9  ;;  %v2549_v25 = vld [vmem:[%s3213_s1 + $0xf0] sm:$0xff]   ;;  %s2498_s27 = smul.u32 416, %s3222_s15  ;;  %v2553_v29 = vld [vmem:[%s3213_s1 + $0xf8] sm:$0xff]   ;;  %v2563_v37 = vld [vmem:[%s3213_s1 + $0x1c0] sm:$0xff]   ;;  %s244_s13 = scalar_lea.vmem %s3216_s4, %s3222_s15 }
  0x10   : > { %v2550_v26 = vld [vmem:[%s3213_s1 + $0x30] sm:$0xff]   ;;  %v2554_v30 = vld [vmem:[%s3213_s1 + $0x38] sm:$0xff]   ;;  %v2564_v38 = vld [vmem:[%s3213_s1 + $0x100] sm:$0xff]  }
  0x11   : > { %2231 = vmatpush3.bf16.msra.mxu0 %v2534_v10  ;;  %v2551_v27 = vld [vmem:[%s3213_s1 + $0xb0] sm:$0xff]   ;;  %s2870_s12 = scalar_lea.vmem %s3212_s0, %s2498_s27  ;;  %v2555_v31 = vld [vmem:[%s3213_s1 + $0xb8] sm:$0xff]   ;;  %v2565_v39 = vld [vmem:[%s3213_s1 + $0x180] sm:$0xff]  }
  0x12   : > { %2271 = vmatpush3.bf16.msra.mxu1 %v2535_v11  ;;  %2232 = vmatprep.subr.bf16.mxu0 %v2536_v12  ;;  %v2556_v32 = vld [vmem:[%s2870_s12] ss:$52 sps:$4 sm:$0xff]   ;;  %v2558_v33 = vld [vmem:[%s2870_s12 + $0x4] ss:$52 sps:$4 sm:$0xff]   ;;  %v2559_v34 = vld [vmem:[%s2870_s12 + $0x8] ss:$52 sps:$4 sm:$0xff]  }
  0x13   : > { %2272 = vmatprep.subr.bf16.mxu1 %v2537_v13  ;;  %v2561_v35 = vld [vmem:[%s2870_s12 + $0xc] ss:$52 sps:$4 sm:$0xff]   ;;  %1420 = vmatprep.mubr.bf16.mxu0 %v2558_v33  ;;  %v2572_v45 = vld [vmem:[%s2870_s12 + $0x74] ss:$52 sps:$4 sm:$0xff]   ;;  %v2575_v47 = vld [vmem:[%s2870_s12 + $0x70] ss:$52 sps:$4 sm:$0xff]  }
  0x14   : > { %1485 = vmatprep.mubr.bf16.mxu1 %v2561_v35  ;;  %v2566_v40 = vld [vmem:[%s3213_s1 + $0x148] sm:$0xff]   ;;  %v2576_v48 = vld [vmem:[%s3213_s1 + $0x150] sm:$0xff]   ;;  %v2580_v52 = vld [vmem:[%s3213_s1 + $0x158] sm:$0xff]  }
  0x15   : > { %2233 = vmatpush3.bf16.msra.mxu0 %v2538_v14  ;;  %v2567_v41 = vld [vmem:[%s3213_s1 + $0x1c8] sm:$0xff]   ;;  %v2577_v49 = vld [vmem:[%s3213_s1 + $0x1d0] sm:$0xff]   ;;  %v2581_v53 = vld [vmem:[%s3213_s1 + $0x1d8] sm:$0xff]  }
  0x16   : > { %2273 = vmatpush3.bf16.msra.mxu1 %v2539_v15  ;;  %2234 = vmatprep.subr.bf16.mxu0 %v2540_v16  ;;  %v2568_v42 = vld [vmem:[%s3213_s1 + $0x108] sm:$0xff]   ;;  %v2578_v50 = vld [vmem:[%s3213_s1 + $0x110] sm:$0xff]   ;;  %v2582_v54 = vld [vmem:[%s3213_s1 + $0x118] sm:$0xff]  }
  0x17   : > { %2274 = vmatprep.subr.bf16.mxu1 %v2541_v17  ;;  %v2569_v43 = vld [vmem:[%s3213_s1 + $0x188] sm:$0xff]   ;;  %v2579_v51 = vld [vmem:[%s3213_s1 + $0x190] sm:$0xff]   ;;  %v2583_v55 = vld [vmem:[%s3213_s1 + $0x198] sm:$0xff]  }
  0x18   : > { %v2570_v44 = vld [vmem:[%s2870_s12 + $0x6c] ss:$52 sps:$4 sm:$0xff]   ;;  %v2574_v46 = vld [vmem:[%s2870_s12 + $0x68] ss:$52 sps:$4 sm:$0xff]   ;;  %v2588_v58 = vld [vmem:[%s2870_s12 + $0xd0] ss:$52 sps:$4 sm:$0xff]  }
  0x19   : > { %2235 = vmatpush3.bf16.msra.mxu0 %v2542_v18  ;;  %v2584_v56 = vld [vmem:[%s2870_s12 + $0xd4] ss:$52 sps:$4 sm:$0xff]   ;;  %v2586_v57 = vld [vmem:[%s2870_s12 + $0xdc] ss:$52 sps:$4 sm:$0xff]   ;;  %v2589_v59 = vld [vmem:[%s2870_s12 + $0xd8] ss:$52 sps:$4 sm:$0xff]  }
  0x1a   : > { %2275 = vmatpush3.bf16.msra.mxu1 %v2543_v19  ;;  %2236 = vmatprep.subr.bf16.mxu0 %v2544_v20  ;;  %v2590_v60 = vld [vmem:[%s3213_s1 + $0x160] sm:$0xff]   ;;  %v2594_v0 = vld [vmem:[%s3213_s1 + $0x168] sm:$0xff]   ;;  %v2598_v4 = vld [vmem:[%s2870_s12 + $0x13c] ss:$52 sps:$4 sm:$0xff]  }
  0x1b   : > { %2276 = vmatprep.subr.bf16.mxu1 %v2545_v21  ;;  %v2591_v61 = vld [vmem:[%s3213_s1 + $0x1e0] sm:$0xff]   ;;  %v2595_v1 = vld [vmem:[%s3213_s1 + $0x1e8] sm:$0xff]   ;;  %v2604_v8 = vld [vmem:[%s3213_s1 + $0x170] sm:$0xff]  }
  0x1c   : > { %v2592_v62 = vld [vmem:[%s3213_s1 + $0x120] sm:$0xff]   ;;  %v2596_v2 = vld [vmem:[%s3213_s1 + $0x128] sm:$0xff]   ;;  %v2605_v9 = vld [vmem:[%s3213_s1 + $0x1f0] sm:$0xff]  }
  0x1d   : > { %2237 = vmatpush3.bf16.msra.mxu0 %v2546_v22  ;;  %v2593_v63 = vld [vmem:[%s3213_s1 + $0x1a0] sm:$0xff]   ;;  %v2597_v3 = vld [vmem:[%s3213_s1 + $0x1a8] sm:$0xff]   ;;  %v2606_v10 = vld [vmem:[%s3213_s1 + $0x130] sm:$0xff]  }
  0x1e   : > { %2277 = vmatpush3.bf16.msra.mxu1 %v2547_v23  ;;  %2238 = vmatprep.subr.bf16.mxu0 %v2548_v24  ;;  %v2600_v5 = vld [vmem:[%s2870_s12 + $0x144] ss:$52 sps:$4 sm:$0xff]   ;;  %v2603_v7 = vld [vmem:[%s2870_s12 + $0x140] ss:$52 sps:$4 sm:$0xff]   ;;  %v2617_v19 = vld [vmem:[%s2870_s12 + $0x1c] ss:$52 sps:$4 sm:$0xff]  }
  0x1f   : > { %2278 = vmatprep.subr.bf16.mxu1 %v2549_v25  ;;  %v2602_v6 = vld [vmem:[%s2870_s12 + $0x138] ss:$52 sps:$4 sm:$0xff]   ;;  %v2607_v11 = vld [vmem:[%s3213_s1 + $0x1b0] sm:$0xff]   ;;  %v2618_v20 = vld [vmem:[%s3213_s1 + $0x240] sm:$0xff]  }
  0x20   : > { %v2608_v12 = vld [vmem:[%s3213_s1 + $0x178] sm:$0xff]   ;;  %v2612_v16 = vld [vmem:[%s2870_s12 + $0x10] ss:$52 sps:$4 sm:$0xff]   ;;  %v2614_v17 = vld [vmem:[%s2870_s12 + $0x14] ss:$52 sps:$4 sm:$0xff]  }
  0x21   : > { %2239 = vmatpush3.bf16.msra.mxu0 %v2550_v26  ;;  %v2609_v13 = vld [vmem:[%s3213_s1 + $0x1f8] sm:$0xff]   ;;  %v2619_v21 = vld [vmem:[%s3213_s1 + $0x2c0] sm:$0xff]   ;;  %v2622_v24 = vld [vmem:[%s3213_s1 + $0x248] sm:$0xff]  }
  0x22   : > { %2279 = vmatpush3.bf16.msra.mxu1 %v2551_v27  ;;  %2240 = vmatprep.subr.bf16.mxu0 %v2552_v28  ;;  %v2610_v14 = vld [vmem:[%s3213_s1 + $0x138] sm:$0xff]   ;;  %v2620_v22 = vld [vmem:[%s3213_s1 + $0x200] sm:$0xff]   ;;  %v2623_v25 = vld [vmem:[%s3213_s1 + $0x2c8] sm:$0xff]  }
  0x23   : > { %2280 = vmatprep.subr.bf16.mxu1 %v2553_v29  ;;  %v2611_v15 = vld [vmem:[%s3213_s1 + $0x1b8] sm:$0xff]   ;;  %v2621_v23 = vld [vmem:[%s3213_s1 + $0x280] sm:$0xff]   ;;  %v2624_v26 = vld [vmem:[%s3213_s1 + $0x208] sm:$0xff]  }
  0x24   : > { %v2615_v18 = vld [vmem:[%s2870_s12 + $0x18] ss:$52 sps:$4 sm:$0xff]   ;;  %v2626_v28 = vld [vmem:[%s2870_s12 + $0x7c] ss:$52 sps:$4 sm:$0xff]  }
  0x25   : > { %2241 = vmatpush3.bf16.msra.mxu0 %v2554_v30  ;;  %v2625_v27 = vld [vmem:[%s3213_s1 + $0x288] sm:$0xff]   ;;  %v2628_v29 = vld [vmem:[%s2870_s12 + $0x84] ss:$52 sps:$4 sm:$0xff]   ;;  %v2633_v33 = vld [vmem:[%s3213_s1 + $0x2d0] sm:$0xff]  }
  0x26   : > { %2281 = vmatpush3.bf16.msra.mxu1 %v2555_v31  ;;  %2306 = vmatprep.subr.bf16.mxu0 %v2562_v36  ;;  %v2630_v30 = vld [vmem:[%s2870_s12 + $0x78] ss:$52 sps:$4 sm:$0xff]   ;;  %v2631_v31 = vld [vmem:[%s2870_s12 + $0x80] ss:$52 sps:$4 sm:$0xff]  }
  0x27   : > { %2346 = vmatprep.subr.bf16.mxu1 %v2563_v37  ;;  %v2635_v35 = vld [vmem:[%s3213_s1 + $0x290] sm:$0xff]   ;;  %v2636_v36 = vld [vmem:[%s3213_s1 + $0x258] sm:$0xff]  }
  0x28   : > { %1421 = vmatmul.mubr.bf16.vlgmr.msra.gmra.mrb[0].mxu0 %v2556_v32  ;;  %v2632_v32 = vld [vmem:[%s3213_s1 + $0x250] sm:$0xff]   ;;  %v2637_v37 = vld [vmem:[%s3213_s1 + $0x2d8] sm:$0xff]  }
  0x29   : > { %1486 = vmatmul.mubr.bf16.vlgmr.msra.gmra.mrb[0].mxu1 %v2559_v34  ;;  %2307 = vmatpush3.bf16.msra.mxu0 %v2564_v38  ;;  %v2634_v34 = vld [vmem:[%s3213_s1 + $0x210] sm:$0xff]   ;;  %v2638_v38 = vld [vmem:[%s3213_s1 + $0x218] sm:$0xff]  }
  0x2a   : > { %2347 = vmatpush3.bf16.msra.mxu1 %v2565_v39  ;;  %2308 = vmatprep.subr.bf16.mxu0 %v2566_v40  ;;  %v2639_v39 = vld [vmem:[%s3213_s1 + $0x298] sm:$0xff]  }
  0x2b   : > { %2348 = vmatprep.subr.bf16.mxu1 %v2567_v41  ;;  %1428 = vmatprep.mubr.bf16.mxu0 %v2570_v44  ;;  %v2640_v40 = vld [vmem:[%s2870_s12 + $0xe4] ss:$52 sps:$4 sm:$0xff]   ;;  %v2642_v41 = vld [vmem:[%s2870_s12 + $0xec] ss:$52 sps:$4 sm:$0xff]  }
  0x2c   : > { %1493 = vmatprep.mubr.bf16.mxu1 %v2572_v45  ;;  %v2646_v44 = vld [vmem:[%s3213_s1 + $0x260] sm:$0xff]  }
  0x2d   : > { %2309 = vmatpush3.bf16.msra.mxu0 %v2568_v42  ;;  %v2644_v42 = vld [vmem:[%s2870_s12 + $0xe0] ss:$52 sps:$4 sm:$0xff]  }
  0x2e   : > { %2349 = vmatpush3.bf16.msra.mxu1 %v2569_v43  ;;  %2310 = vmatprep.subr.bf16.mxu0 %v2576_v48  ;;  %v2645_v43 = vld [vmem:[%s2870_s12 + $0xe8] ss:$52 sps:$4 sm:$0xff]   ;;  %v2647_v45 = vld [vmem:[%s3213_s1 + $0x2e0] sm:$0xff]  }
  0x2f   : > { %2350 = vmatprep.subr.bf16.mxu1 %v2577_v49  ;;  %v2650_v48 = vld [vmem:[%s3213_s1 + $0x268] sm:$0xff]  }
  0x30   : > { %1429 = vmatmul.mubr.bf16.gmra.mrb[4].mxu0 %v2574_v46  ;;  %v2648_v46 = vld [vmem:[%s3213_s1 + $0x220] sm:$0xff]   ;;  %v2651_v49 = vld [vmem:[%s3213_s1 + $0x2e8] sm:$0xff]  }
  0x31   : > { %1494 = vmatmul.mubr.bf16.gmra.mrb[4].mxu1 %v2575_v47  ;;  %2311 = vmatpush3.bf16.msra.mxu0 %v2578_v50  ;;  %v2649_v47 = vld [vmem:[%s3213_s1 + $0x2a0] sm:$0xff]   ;;  %v2652_v50 = vld [vmem:[%s3213_s1 + $0x228] sm:$0xff]  }
  0x32   : > { %2351 = vmatpush3.bf16.msra.mxu1 %v2579_v51  ;;  %2312 = vmatprep.subr.bf16.mxu0 %v2580_v52  ;;  %v2653_v51 = vld [vmem:[%s3213_s1 + $0x2a8] sm:$0xff]  }
  0x33   : > { %2352 = vmatprep.subr.bf16.mxu1 %v2581_v53  ;;  %1436 = vmatprep.mubr.bf16.mxu0 %v2584_v56  ;;  %v2654_v52 = vld [vmem:[%s2870_s12 + $0x14c] ss:$52 sps:$4 sm:$0xff]   ;;  %v2656_v53 = vld [vmem:[%s2870_s12 + $0x154] ss:$52 sps:$4 sm:$0xff]  }
  0x34   : > { %1501 = vmatprep.mubr.bf16.mxu1 %v2586_v57  ;;  %v2660_v56 = vld [vmem:[%s3213_s1 + $0x270] sm:$0xff]  }
  0x35   : > { %2313 = vmatpush3.bf16.msra.mxu0 %v2582_v54  ;;  %v2658_v54 = vld [vmem:[%s2870_s12 + $0x148] ss:$52 sps:$4 sm:$0xff]   ;;  %v2661_v57 = vld [vmem:[%s3213_s1 + $0x2f0] sm:$0xff]  }
  0x36   : > { %2353 = vmatpush3.bf16.msra.mxu1 %v2583_v55  ;;  %2314 = vmatprep.subr.bf16.mxu0 %v2590_v60  ;;  %v2659_v55 = vld [vmem:[%s2870_s12 + $0x150] ss:$52 sps:$4 sm:$0xff]   ;;  %v2664_v60 = vld [vmem:[%s3213_s1 + $0x278] sm:$0xff]  }
  0x37   : > { %2354 = vmatprep.subr.bf16.mxu1 %v2591_v61  ;;  %v2665_v61 = vld [vmem:[%s3213_s1 + $0x2f8] sm:$0xff]  }
  0x38   : > { %1437 = vmatmul.mubr.bf16.gmra.mrb[8].mxu0 %v2588_v58  ;;  %v2662_v58 = vld [vmem:[%s3213_s1 + $0x230] sm:$0xff]  }
  0x39   : > { %1502 = vmatmul.mubr.bf16.gmra.mrb[8].mxu1 %v2589_v59  ;;  %2315 = vmatpush3.bf16.msra.mxu0 %v2592_v62  ;;  %v2663_v59 = vld [vmem:[%s3213_s1 + $0x2b0] sm:$0xff]   ;;  %v2666_v62 = vld [vmem:[%s3213_s1 + $0x238] sm:$0xff]  }
  0x3a   : > { %2355 = vmatpush3.bf16.msra.mxu1 %v2593_v63  ;;  %2316 = vmatprep.subr.bf16.mxu0 %v2594_v0  ;;  %v2667_v63 = vld [vmem:[%s3213_s1 + $0x2b8] sm:$0xff]   ;;  %v2668_v0 = vld [vmem:[%s2870_s12 + $0x20] ss:$52 sps:$4 sm:$0xff]  }
  0x3b   : > { %2356 = vmatprep.subr.bf16.mxu1 %v2595_v1  ;;  %1444 = vmatprep.mubr.bf16.mxu0 %v2598_v4  ;;  %v2670_v1 = vld [vmem:[%s2870_s12 + $0x24] ss:$52 sps:$4 sm:$0xff]  }
  0x3c   : > { %1509 = vmatprep.mubr.bf16.mxu1 %v2600_v5  ;;  %v2674_v4 = vld [vmem:[%s3213_s1 + $0x300] sm:$0xff]  }
  0x3d   : > { %2317 = vmatpush3.bf16.msra.mxu0 %v2596_v2  ;;  %v2671_v2 = vld [vmem:[%s2870_s12 + $0x28] ss:$52 sps:$4 sm:$0xff]   ;;  %v2675_v5 = vld [vmem:[%s2870_s12 + $0x8c] ss:$52 sps:$4 sm:$0xff]  }
  0x3e   : > { %2357 = vmatpush3.bf16.msra.mxu1 %v2597_v3  ;;  %2318 = vmatprep.subr.bf16.mxu0 %v2604_v8  ;;  %v2673_v3 = vld [vmem:[%s2870_s12 + $0x2c] ss:$52 sps:$4 sm:$0xff]   ;;  %v2679_v8 = vld [vmem:[%s2870_s12 + $0x88] ss:$52 sps:$4 sm:$0xff]  }
  0x3f   : > { %2358 = vmatprep.subr.bf16.mxu1 %v2605_v9  ;;  %v2680_v9 = vld [vmem:[%s2870_s12 + $0x90] ss:$52 sps:$4 sm:$0xff]  }
  0x40   : > { %1445 = vmatmul.mubr.bf16.gmra.mrb[12].mxu0 %v2602_v6  ;;  %v2677_v6 = vld [vmem:[%s2870_s12 + $0x94] ss:$52 sps:$4 sm:$0xff]  }
  0x41   : > { %1510 = vmatmul.mubr.bf16.gmra.mrb[12].mxu1 %v2603_v7  ;;  %2319 = vmatpush3.bf16.msra.mxu0 %v2606_v10  ;;  %v2681_v7 = vld [vmem:[%s3213_s1 + $0x308] sm:$0xff]  }
  0x42   : > { %2359 = vmatpush3.bf16.msra.mxu1 %v2607_v11  ;;  %2320 = vmatprep.subr.bf16.mxu0 %v2608_v12  ;;  %v2682_v10 = vld [vmem:[%s2870_s12 + $0xf4] ss:$52 sps:$4 sm:$0xff]   ;;  %v2684_v11 = vld [vmem:[%s2870_s12 + $0xfc] ss:$52 sps:$4 sm:$0xff]  }
  0x43   : > { %2360 = vmatprep.subr.bf16.mxu1 %v2609_v13  ;;  %1550 = vmatprep.mubr.bf16.mxu0 %v2614_v17  ;;  %v2688_v12 = vld [vmem:[%s3213_s1 + $0x310] sm:$0xff]   ;;  %v2695_v13 = vld [vmem:[%s3213_s1 + $0x318] sm:$0xff]  }
  0x44   : > { %1615 = vmatprep.mubr.bf16.mxu1 %v2617_v19  ;;  %v2691_v17 = vld [vmem:[%s2870_s12 + $0x164] ss:$52 sps:$4 sm:$0xff]   ;;  %v2694_v19 = vld [vmem:[%s2870_s12 + $0x160] ss:$52 sps:$4 sm:$0xff]  }
  0x45   : > { %2321 = vmatpush3.bf16.msra.mxu0 %v2610_v14  ;;  %v2686_v14 = vld [vmem:[%s2870_s12 + $0xf0] ss:$52 sps:$4 sm:$0xff]  }
  0x46   : > { %2361 = vmatpush3.bf16.msra.mxu1 %v2611_v15  ;;  %2386 = vmatprep.subr.bf16.mxu0 %v2618_v20  ;;  %v2687_v15 = vld [vmem:[%s2870_s12 + $0xf8] ss:$52 sps:$4 sm:$0xff]   ;;  %v2696_v20 = vld [vmem:[%s2870_s12 + $0x30] ss:$52 sps:$4 sm:$0xff]  }
  0x47   : > { %2426 = vmatprep.subr.bf16.mxu1 %v2619_v21  ;;  %v2697_v21 = vld [vmem:[%s2870_s12 + $0x100] ss:$52 sps:$4 sm:$0xff]  }
  0x48   : > { %1551 = vmatmul.mubr.bf16.vlgmr.msra.gmra.mrb[16].mxu0 %v2612_v16  ;;  %v2689_v16 = vld [vmem:[%s2870_s12 + $0x15c] ss:$52 sps:$4 sm:$0xff]  }
  0x49   : > { %1616 = vmatmul.mubr.bf16.vlgmr.msra.gmra.mrb[16].mxu1 %v2615_v18  ;;  %2387 = vmatpush3.bf16.msra.mxu0 %v2620_v22  ;;  %v2693_v18 = vld [vmem:[%s2870_s12 + $0x158] ss:$52 sps:$4 sm:$0xff]  }
  0x4a   : > { %2427 = vmatpush3.bf16.msra.mxu1 %v2621_v23  ;;  %2388 = vmatprep.subr.bf16.mxu0 %v2622_v24  ;;  %v2698_v22 = vld [vmem:[%s2870_s12 + $0x98] ss:$52 sps:$4 sm:$0xff]   ;;  %v2699_v23 = vld [vmem:[%s2870_s12 + $0x168] ss:$52 sps:$4 sm:$0xff]   ;;  %s2225_s12 = sshll.u32 %s3222_s15, 6 }
  0x4b   : > { %2428 = vmatprep.subr.bf16.mxu1 %v2623_v25  ;;  %1558 = vmatprep.mubr.bf16.mxu0 %v2626_v28  ;;  %v2726_v25 = vmov 0.0   ;;  %s3182_s9 = scalar_lea.vmem %s3215_s3, %s2225_s12 }
  0x4c   : > { %1623 = vmatprep.mubr.bf16.mxu1 %v2628_v29  ;;  %250 = vst [vmem:[#allocation3] sm:$0x1] %v2726_v25  ;;  %251 = vst [vmem:[#allocation4] sm:$0x1] %v2726_v25 }
  0x4d   : > { %2389 = vmatpush3.bf16.msra.mxu0 %v2624_v26  ;;  %v2066_v26 = vld [vmem:[%s3214_s2] ss:$0 sm:$0xff] }
  0x4e   : > { %2429 = vmatpush3.bf16.msra.mxu1 %v2625_v27  ;;  %2390 = vmatprep.subr.bf16.mxu0 %v2632_v32 }
  0x4f   : > { %2430 = vmatprep.subr.bf16.mxu1 %v2633_v33 }
  0x50   : > { %1559 = vmatmul.mubr.bf16.gmra.mrb[20].mxu0 %v2630_v30 }
  0x51   : > { %1624 = vmatmul.mubr.bf16.gmra.mrb[20].mxu1 %v2631_v31  ;;  %2391 = vmatpush3.bf16.msra.mxu0 %v2634_v34 }
  0x52   : > { %2431 = vmatpush3.bf16.msra.mxu1 %v2635_v35  ;;  %2392 = vmatprep.subr.bf16.mxu0 %v2636_v36 }
  0x53   : > { %2432 = vmatprep.subr.bf16.mxu1 %v2637_v37  ;;  %1566 = vmatprep.mubr.bf16.mxu0 %v2640_v40 }
  0x54   : > { %1631 = vmatprep.mubr.bf16.mxu1 %v2642_v41 }
  0x55   : > { %2393 = vmatpush3.bf16.msra.mxu0 %v2638_v38 }
  0x56   : > { %2433 = vmatpush3.bf16.msra.mxu1 %v2639_v39  ;;  %2394 = vmatprep.subr.bf16.mxu0 %v2646_v44 }
  0x57   : > { %2434 = vmatprep.subr.bf16.mxu1 %v2647_v45 }
  0x58   : > { %1567 = vmatmul.mubr.bf16.gmra.mrb[24].mxu0 %v2644_v42 }
  0x59   : > { %1632 = vmatmul.mubr.bf16.gmra.mrb[24].mxu1 %v2645_v43  ;;  %2395 = vmatpush3.bf16.msra.mxu0 %v2648_v46 }
  0x5a   : > { %2435 = vmatpush3.bf16.msra.mxu1 %v2649_v47  ;;  %2396 = vmatprep.subr.bf16.mxu0 %v2650_v48 }
  0x5b   : > { %2436 = vmatprep.subr.bf16.mxu1 %v2651_v49  ;;  %1574 = vmatprep.mubr.bf16.mxu0 %v2654_v52 }
  0x5c   : > { %1639 = vmatprep.mubr.bf16.mxu1 %v2656_v53 }
  0x5d   : > { %2397 = vmatpush3.bf16.msra.mxu0 %v2652_v50 }
  0x5e   : > { %2437 = vmatpush3.bf16.msra.mxu1 %v2653_v51  ;;  %2398 = vmatprep.subr.bf16.mxu0 %v2660_v56 }
  0x5f   : > { %2438 = vmatprep.subr.bf16.mxu1 %v2661_v57 }
  0x60   : > { %1575 = vmatmul.mubr.bf16.gmra.mrb[28].mxu0 %v2658_v54 }
  0x61   : > { %1640 = vmatmul.mubr.bf16.gmra.mrb[28].mxu1 %v2659_v55  ;;  %2399 = vmatpush3.bf16.msra.mxu0 %v2662_v58 }
  0x62   : > { %2439 = vmatpush3.bf16.msra.mxu1 %v2663_v59  ;;  %2400 = vmatprep.subr.bf16.mxu0 %v2664_v60 }
  0x63   : > { %2440 = vmatprep.subr.bf16.mxu1 %v2665_v61  ;;  %1680 = vmatprep.mubr.bf16.mxu0 %v2670_v1 }
  0x64   : > { %1745 = vmatprep.mubr.bf16.mxu1 %v2673_v3 }
  0x65   : > { %2401 = vmatpush3.bf16.msra.mxu0 %v2666_v62 }
  0x66   : > { %2441 = vmatpush3.bf16.msra.mxu1 %v2667_v63  ;;  %2474 = vmatprep.subr.bf16.mxu0 %v2674_v4 }
  0x67   : > { %2490 = vmatprep.subr.bf16.mxu1 %v2674_v4 }
  0x68   : > { %1681 = vmatmul.mubr.bf16.vlgmr.msra.gmra.mrb[32].mxu0 %v2668_v0 }
  0x69   : > { %1746 = vmatmul.mubr.bf16.vlgmr.msra.gmra.mrb[32].mxu1 %v2671_v2  ;;  %2475 = vmatpush3.bf16.msra.mxu0 %v2674_v4 }
  0x6a   : > { %1688 = vmatprep.mubr.bf16.mxu0 %v2675_v5  ;;  %1753 = vmatprep.mubr.bf16.mxu1 %v2677_v6 }
  0x6b   : > { %2494 = vmatpush3.bf16.msra.mxu1 %v2674_v4  ;;  %2476 = vmatprep.subr.bf16.mxu0 %v2681_v7 }
  0x6c   : > { %2491 = vmatprep.subr.bf16.mxu1 %v2681_v7 }
  0x6d   : > { %2477 = vmatpush3.bf16.msra.mxu0 %v2681_v7 }
  0x6e   : > { %2478 = vmatprep.subr.bf16.mxu0 %v2688_v12 }
  0x6f   : > { %2495 = vmatpush3.bf16.msra.mxu1 %v2681_v7 }
  0x70   : > { %1689 = vmatmul.mubr.bf16.gmra.mrb[36].mxu0 %v2679_v8  ;;  %2492 = vmatprep.subr.bf16.mxu1 %v2688_v12 }
  0x71   : > { %1754 = vmatmul.mubr.bf16.gmra.mrb[36].mxu1 %v2680_v9  ;;  %1696 = vmatprep.mubr.bf16.mxu0 %v2682_v10 }
  0x72   : > { %1761 = vmatprep.mubr.bf16.mxu1 %v2684_v11  ;;  %2479 = vmatpush3.bf16.msra.mxu0 %v2688_v12 }
  0x73   : > { %2480 = vmatprep.subr.bf16.mxu0 %v2695_v13  ;;  %2496 = vmatpush3.bf16.msra.mxu1 %v2688_v12 }
  0x74   : > { %2493 = vmatprep.subr.bf16.mxu1 %v2695_v13 }
  0x76   : > { %2481 = vmatpush3.bf16.msra.mxu0 %v2695_v13 }
  0x77   : > { %2497 = vmatpush3.bf16.msra.mxu1 %v2695_v13 }
  0x78   : > { %1697 = vmatmul.mubr.bf16.gmra.mrb[40].mxu0 %v2686_v14 }
  0x79   : > { %1762 = vmatmul.mubr.bf16.gmra.mrb[40].mxu1 %v2687_v15  ;;  %1704 = vmatprep.mubr.bf16.mxu0 %v2689_v16 }
  0x7a   : > { %1769 = vmatprep.mubr.bf16.mxu1 %v2691_v17 }
  0x80   : > { %1705 = vmatmul.mubr.bf16.gmra.mrb[44].mxu0 %v2693_v18 }
  0x81   : > { %1770 = vmatmul.mubr.bf16.gmra.mrb[44].mxu1 %v2694_v19  ;;  %2482 = vmatprep.mubr.msk.bf16.mxu0 %vm1375_vm0, %v2696_v20 }
  0x82   : > { %2486 = vmatprep.mubr.msk.bf16.mxu1 %vm1375_vm0, %v2697_v21 }
  0x88   : > { %2483 = vmatmul.mubr.msk.bf16.vlgmr.msra.gmra.mrb[48].mxu0 %vm1375_vm0, %v2698_v22 }
  0x89   : > { %2487 = vmatmul.mubr.msk.bf16.vlgmr.msra.gmra.mrb[48].mxu1 %vm1375_vm0, %v2699_v23 }
  0xfb   : > { %v2242_v24 = vpop.f32.mrb[0].mxu0 }
  0xfc   : > { %v2243_v27 = vpop.f32.mrb[1].mxu0  ;;  %v2282_v28 = vpop.f32.mrb[0].mxu1 }
  0xfd   : > { %v2244_v29 = vadd.f32 %v2243_v27, %v2242_v24  ;;  %v2245_v30 = vpop.f32.mrb[2].mxu0  ;;  %v2283_v31 = vpop.f32.mrb[1].mxu1 }
  0xfe   : > { %v2246_v32 = vpop.f32.mrb[3].mxu0  ;;  %v2284_v33 = vadd.f32 %v2283_v31, %v2282_v28  ;;  %v2285_v34 = vpop.f32.mrb[2].mxu1 }
  0xff   : > { %v1423_v35 = vadd.f32 %v2244_v29, %v2066_v26  ;;  %v2247_v36 = vadd.f32 %v2246_v32, %v2245_v30  ;;  %v2286_v37 = vpop.f32.mrb[3].mxu1 }
 0x100   : > { %v2287_v38 = vadd.f32 %v2286_v37, %v2285_v34 }
 0x101   : > { %v1426_v39 = vadd.f32 %v2247_v36, %v2066_v26  ;;  %v1488_v40 = vadd.f32 %v2284_v33, %v1423_v35 }
 0x103   : > { %v1491_v41 = vadd.f32 %v2287_v38, %v1426_v39  ;;  %v2248_v42 = vpop.f32.mrb[4].mxu0 }
 0x104   : > { %v2249_v43 = vpop.f32.mrb[5].mxu0  ;;  %v2288_v44 = vpop.f32.mrb[4].mxu1 }
 0x105   : > { %v2250_v45 = vadd.f32 %v2249_v43, %v2248_v42  ;;  %v2251_v46 = vpop.f32.mrb[6].mxu0  ;;  %v2289_v47 = vpop.f32.mrb[5].mxu1 }
 0x106   : > { %v2252_v48 = vpop.f32.mrb[7].mxu0  ;;  %v2290_v49 = vadd.f32 %v2289_v47, %v2288_v44  ;;  %v2291_v50 = vpop.f32.mrb[6].mxu1 }
 0x107   : > { %v1431_v51 = vadd.f32 %v2250_v45, %v2066_v26  ;;  %v2253_v52 = vadd.f32 %v2252_v48, %v2251_v46  ;;  %v2292_v53 = vpop.f32.mrb[7].mxu1 }
 0x108   : > { %v2293_v54 = vadd.f32 %v2292_v53, %v2291_v50 }
 0x109   : > { %v1434_v55 = vadd.f32 %v2253_v52, %v2066_v26  ;;  %v1496_v56 = vadd.f32 %v2290_v49, %v1431_v51 }
 0x10b   : > { %v1499_v57 = vadd.f32 %v2293_v54, %v1434_v55  ;;  %v2254_v58 = vpop.f32.mrb[8].mxu0 }
 0x10c   : > { %v2255_v59 = vpop.f32.mrb[9].mxu0  ;;  %v2294_v60 = vpop.f32.mrb[8].mxu1 }
 0x10d   : > { %v2256_v61 = vadd.f32 %v2255_v59, %v2254_v58  ;;  %v2257_v62 = vpop.f32.mrb[10].mxu0  ;;  %v2295_v63 = vpop.f32.mrb[9].mxu1 }
 0x10e   : > { %v2258_v0 = vpop.f32.mrb[11].mxu0  ;;  %v2296_v1 = vadd.f32 %v2295_v63, %v2294_v60  ;;  %v2297_v2 = vpop.f32.mrb[10].mxu1 }
 0x10f   : > { %v1439_v3 = vadd.f32 %v2256_v61, %v2066_v26  ;;  %v2259_v4 = vadd.f32 %v2258_v0, %v2257_v62  ;;  %v2298_v5 = vpop.f32.mrb[11].mxu1 }
 0x110   : > { %v2299_v6 = vadd.f32 %v2298_v5, %v2297_v2 }
 0x111   : > { %v1442_v7 = vadd.f32 %v2259_v4, %v2066_v26  ;;  %v1504_v8 = vadd.f32 %v2296_v1, %v1439_v3 }
 0x113   : > { %v1507_v9 = vadd.f32 %v2299_v6, %v1442_v7  ;;  %v2260_v10 = vpop.f32.mrb[12].mxu0 }
 0x114   : > { %v2300_v11 = vpop.f32.mrb[12].mxu1  ;;  %v2261_v12 = vpop.f32.mrb[13].mxu0 }
 0x115   : > { %v2301_v13 = vpop.f32.mrb[13].mxu1  ;;  %v2262_v14 = vadd.f32 %v2261_v12, %v2260_v10  ;;  %v2263_v15 = vpop.f32.mrb[14].mxu0 }
 0x116   : > { %v2302_v16 = vadd.f32 %v2301_v13, %v2300_v11  ;;  %v2303_v17 = vpop.f32.mrb[14].mxu1  ;;  %v2264_v18 = vpop.f32.mrb[15].mxu0 }
 0x117   : > { %v2304_v19 = vpop.f32.mrb[15].mxu1  ;;  %v1447_v20 = vadd.f32 %v2262_v14, %v2066_v26  ;;  %v2265_v21 = vadd.f32 %v2264_v18, %v2263_v15 }
 0x118   : > { %v2305_v22 = vadd.f32 %v2304_v19, %v2303_v17 }
 0x119   : > { %v1450_v23 = vadd.f32 %v2265_v21, %v2066_v26  ;;  %v1512_v24 = vadd.f32 %v2302_v16, %v1447_v20 }
 0x11b   : > { %v1515_v25 = vadd.f32 %v2305_v22, %v1450_v23  ;;  %v2322_v27 = vpop.f32.mrb[16].mxu0 }
 0x11c   : > { %v2323_v28 = vpop.f32.mrb[17].mxu0  ;;  %v2362_v31 = vpop.f32.mrb[16].mxu1 }
 0x11d   : > { %v2324_v29 = vadd.f32 %v2323_v28, %v2322_v27  ;;  %v2325_v30 = vpop.f32.mrb[18].mxu0  ;;  %v2363_v33 = vpop.f32.mrb[17].mxu1 }
 0x11e   : > { %v2326_v32 = vpop.f32.mrb[19].mxu0  ;;  %v2364_v36 = vadd.f32 %v2363_v33, %v2362_v31  ;;  %v2365_v37 = vpop.f32.mrb[18].mxu1 }
 0x11f   : > { %v1553_v34 = vadd.f32 %v2324_v29, %v1488_v40  ;;  %v2327_v35 = vadd.f32 %v2326_v32, %v2325_v30  ;;  %v2366_v38 = vpop.f32.mrb[19].mxu1 }
 0x120   : > { %v2367_v43 = vadd.f32 %v2366_v38, %v2365_v37 }
 0x121   : > { %v1556_v39 = vadd.f32 %v2327_v35, %v1491_v41  ;;  %v1618_v42 = vadd.f32 %v2364_v36, %v1553_v34 }
 0x123   : > { %v1621_v44 = vadd.f32 %v2367_v43, %v1556_v39  ;;  %v2328_v45 = vpop.f32.mrb[20].mxu0 }
 0x124   : > { %v2329_v26 = vpop.f32.mrb[21].mxu0  ;;  %v2368_v46 = vpop.f32.mrb[20].mxu1 }
 0x125   : > { %v2330_v47 = vadd.f32 %v2329_v26, %v2328_v45  ;;  %v2331_v48 = vpop.f32.mrb[22].mxu0  ;;  %v2369_v49 = vpop.f32.mrb[21].mxu1 }
 0x126   : > { %v2332_v50 = vpop.f32.mrb[23].mxu0  ;;  %v2370_v51 = vadd.f32 %v2369_v49, %v2368_v46  ;;  %v2371_v52 = vpop.f32.mrb[22].mxu1 }
 0x127   : > { %v1561_v53 = vadd.f32 %v2330_v47, %v1496_v56  ;;  %v2333_v54 = vadd.f32 %v2332_v50, %v2331_v48  ;;  %v2372_v40 = vpop.f32.mrb[23].mxu1 }
 0x128   : > { %v2373_v55 = vadd.f32 %v2372_v40, %v2371_v52 }
 0x129   : > { %v1564_v58 = vadd.f32 %v2333_v54, %v1499_v57  ;;  %v1626_v59 = vadd.f32 %v2370_v51, %v1561_v53 }
 0x12b   : > { %v1629_v60 = vadd.f32 %v2373_v55, %v1564_v58  ;;  %v2334_v41 = vpop.f32.mrb[24].mxu0 }
 0x12c   : > { %v2374_v61 = vpop.f32.mrb[24].mxu1  ;;  %v2335_v62 = vpop.f32.mrb[25].mxu0 }
 0x12d   : > { %v2375_v63 = vpop.f32.mrb[25].mxu1  ;;  %v2336_v0 = vadd.f32 %v2335_v62, %v2334_v41  ;;  %v2337_v1 = vpop.f32.mrb[26].mxu0 }
 0x12e   : > { %v2376_v2 = vadd.f32 %v2375_v63, %v2374_v61  ;;  %v2377_v3 = vpop.f32.mrb[26].mxu1  ;;  %v2338_v4 = vpop.f32.mrb[27].mxu0 }
 0x12f   : > { %v2378_v5 = vpop.f32.mrb[27].mxu1  ;;  %v1569_v6 = vadd.f32 %v2336_v0, %v1504_v8  ;;  %v2339_v7 = vadd.f32 %v2338_v4, %v2337_v1 }
 0x130   : > { %v2379_v10 = vadd.f32 %v2378_v5, %v2377_v3 }
 0x131   : > { %v1572_v56 = vadd.f32 %v2339_v7, %v1507_v9  ;;  %v1634_v11 = vadd.f32 %v2376_v2, %v1569_v6 }
 0x133   : > { %v1637_v12 = vadd.f32 %v2379_v10, %v1572_v56  ;;  %v2340_v13 = vpop.f32.mrb[28].mxu0 }
 0x134   : > { %v2341_v57 = vpop.f32.mrb[29].mxu0  ;;  %v2380_v14 = vpop.f32.mrb[28].mxu1 }
 0x135   : > { %v2342_v15 = vadd.f32 %v2341_v57, %v2340_v13  ;;  %v2343_v16 = vpop.f32.mrb[30].mxu0  ;;  %v2381_v17 = vpop.f32.mrb[29].mxu1 }
 0x136   : > { %v2344_v18 = vpop.f32.mrb[31].mxu0  ;;  %v2382_v19 = vadd.f32 %v2381_v17, %v2380_v14  ;;  %v2383_v20 = vpop.f32.mrb[30].mxu1 }
 0x137   : > { %v1577_v21 = vadd.f32 %v2342_v15, %v1512_v24  ;;  %v2345_v22 = vadd.f32 %v2344_v18, %v2343_v16  ;;  %v2384_v23 = vpop.f32.mrb[31].mxu1 }
 0x138   : > { %v2385_v27 = vadd.f32 %v2384_v23, %v2383_v20 }
 0x139   : > { %v1580_v28 = vadd.f32 %v2345_v22, %v1515_v25  ;;  %v1642_v8 = vadd.f32 %v2382_v19, %v1577_v21 }
 0x13b   : > { %v1645_v29 = vadd.f32 %v2385_v27, %v1580_v28  ;;  %v2402_v30 = vpop.f32.mrb[32].mxu0 }
 0x13c   : > { %v2403_v9 = vpop.f32.mrb[33].mxu0  ;;  %v2442_v31 = vpop.f32.mrb[32].mxu1 }
 0x13d   : > { %v2404_v32 = vadd.f32 %v2403_v9, %v2402_v30  ;;  %v2405_v33 = vpop.f32.mrb[34].mxu0  ;;  %v2443_v34 = vpop.f32.mrb[33].mxu1 }
 0x13e   : > { %v2406_v35 = vpop.f32.mrb[35].mxu0  ;;  %v2444_v36 = vadd.f32 %v2443_v34, %v2442_v31  ;;  %v2445_v37 = vpop.f32.mrb[34].mxu1 }
 0x13f   : > { %v1683_v38 = vadd.f32 %v2404_v32, %v1618_v42  ;;  %v2407_v39 = vadd.f32 %v2406_v35, %v2405_v33  ;;  %v2446_v43 = vpop.f32.mrb[35].mxu1 }
 0x140   : > { %v2447_v45 = vadd.f32 %v2446_v43, %v2445_v37 }
 0x141   : > { %v1686_v24 = vadd.f32 %v2407_v39, %v1621_v44  ;;  %v1748_v26 = vadd.f32 %v2444_v36, %v1683_v38 }
 0x143   : > { %v2408_v46 = vpop.f32.mrb[36].mxu0  ;;  %v1751_v47 = vadd.f32 %v2447_v45, %v1686_v24 }
 0x144   : > { %v2409_v25 = vpop.f32.mrb[37].mxu0  ;;  %v2448_v48 = vpop.f32.mrb[36].mxu1 }
 0x145   : > { %v2410_v49 = vadd.f32 %v2409_v25, %v2408_v46  ;;  %v2411_v50 = vpop.f32.mrb[38].mxu0  ;;  %v2449_v51 = vpop.f32.mrb[37].mxu1 }
 0x146   : > { %v2412_v52 = vpop.f32.mrb[39].mxu0  ;;  %v2450_v53 = vadd.f32 %v2449_v51, %v2448_v48  ;;  %v2451_v54 = vpop.f32.mrb[38].mxu1 }
 0x147   : > { %v1691_v40 = vadd.f32 %v2410_v49, %v1626_v59  ;;  %v2413_v55 = vadd.f32 %v2412_v52, %v2411_v50  ;;  %v2452_v58 = vpop.f32.mrb[39].mxu1 }
 0x148   : > { %v2453_v41 = vadd.f32 %v2452_v58, %v2451_v54 }
 0x149   : > { %v1694_v42 = vadd.f32 %v2413_v55, %v1629_v60  ;;  %v1756_v61 = vadd.f32 %v2450_v53, %v1691_v40 }
 0x14b   : > { %v2414_v62 = vpop.f32.mrb[40].mxu0  ;;  %v1759_v63 = vadd.f32 %v2453_v41, %v1694_v42 }
 0x14c   : > { %v2415_v44 = vpop.f32.mrb[41].mxu0  ;;  %v2454_v0 = vpop.f32.mrb[40].mxu1 }
 0x14d   : > { %v2416_v1 = vadd.f32 %v2415_v44, %v2414_v62  ;;  %v2417_v2 = vpop.f32.mrb[42].mxu0  ;;  %v2455_v3 = vpop.f32.mrb[41].mxu1 }
 0x14e   : > { %v2418_v4 = vpop.f32.mrb[43].mxu0  ;;  %v2456_v5 = vadd.f32 %v2455_v3, %v2454_v0  ;;  %v2457_v6 = vpop.f32.mrb[42].mxu1 }
 0x14f   : > { %v1699_v7 = vadd.f32 %v2416_v1, %v1634_v11  ;;  %v2419_v10 = vadd.f32 %v2418_v4, %v2417_v2  ;;  %v2458_v56 = vpop.f32.mrb[43].mxu1 }
 0x150   : > { %v2459_v13 = vadd.f32 %v2458_v56, %v2457_v6 }
 0x151   : > { %v1702_v59 = vadd.f32 %v2419_v10, %v1637_v12  ;;  %v1764_v57 = vadd.f32 %v2456_v5, %v1699_v7 }
 0x153   : > { %v2420_v14 = vpop.f32.mrb[44].mxu0  ;;  %v1767_v15 = vadd.f32 %v2459_v13, %v1702_v59 }
 0x154   : > { %v2421_v60 = vpop.f32.mrb[45].mxu0  ;;  %v2460_v16 = vpop.f32.mrb[44].mxu1 }
 0x155   : > { %v2422_v17 = vadd.f32 %v2421_v60, %v2420_v14  ;;  %v2423_v18 = vpop.f32.mrb[46].mxu0  ;;  %v2461_v19 = vpop.f32.mrb[45].mxu1  ;;  %v1843_v14 = vld [vmem:[#allocation3] sm:$0x1] }
 0x156   : > { %v2424_v20 = vpop.f32.mrb[47].mxu0  ;;  %v2462_v21 = vadd.f32 %v2461_v19, %v2460_v16  ;;  %v2463_v22 = vpop.f32.mrb[46].mxu1  ;;  %v1859_v16 = vld [vmem:[#allocation4] sm:$0x1] }
 0x157   : > { %v1707_v23 = vadd.f32 %v2422_v17, %v1642_v8  ;;  %v2425_v27 = vadd.f32 %v2424_v20, %v2423_v18  ;;  %v2464_v28 = vpop.f32.mrb[47].mxu1 }
 0x158   : > { %v2465_v30 = vadd.f32 %v2464_v28, %v2463_v22  ;;  %v1913_v28 = vlaneseq }
 0x159   : > { %v1710_v11 = vadd.f32 %v2425_v27, %v1645_v29  ;;  %v1772_v9 = vadd.f32 %v2462_v21, %v1707_v23 }
 0x15b   : > { %v2484_v31 = vpop.f32.mrb[48].mxu0  ;;  %v1775_v32 = vadd.f32 %v2465_v30, %v1710_v11 }
 0x15c   : > { %v3137_v12 = vadd.f32 %v2484_v31, %v1756_v61  ;;  %v2488_v33 = vpop.f32.mrb[48].mxu1  ;;  %v1812_v34 = vpop.f32.mrb[49].mxu0 }
 0x15d   : > { %v3139_v35 = vadd.f32 %v2488_v33, %v1772_v9  ;;  %v3141_v36 = vadd.f32 %v1812_v34, %v1748_v26  ;;  %v1828_v37 = vpop.f32.mrb[49].mxu1  ;;  %v2485_v38 = vpop.f32.mrb[50].mxu0  ;;  %v1914_v9 = vshrl.u32 %v1913_v28, 7 }
 0x15e   : > { %v3143_v39 = vadd.f32 %v1828_v37, %v1764_v57  ;;  %v3145_v8 = vadd.f32 %v2485_v38, %v1759_v63  ;;  %v2489_v43 = vpop.f32.mrb[50].mxu1  ;;  %v1815_v45 = vpop.f32.mrb[51].mxu0  ;;  %v1862_v50 = vmul.f32 %v3137_v12, %v3137_v12 }
 0x15f   : > { %v3147_v29 = vadd.f32 %v2489_v43, %v1775_v32  ;;  %v3149_v24 = vadd.f32 %v1815_v45, %v1751_v47  ;;  %v1831_v46 = vpop.f32.mrb[51].mxu1  ;;  %v1860_v48 = vmul.f32 %v3141_v36, %v3141_v36  ;;  %v1866_v62 = vmul.f32 %v3139_v35, %v3139_v35 }
 0x160   : > { %v3151_v25 = vadd.f32 %v1831_v46, %v1767_v15  ;;  %v1863_v47 = vmul.f32 %v3145_v8, %v3145_v8  ;;  %v1864_v40 = vmul.f32 %v3143_v39, %v3143_v39  ;;  %v1915_v31 = vsub.s32 0, %v1914_v9 }
 0x161   : > { %v1844_v26 = vadd.f32 %v3149_v24, %v3141_v36  ;;  %v1861_v49 = vmul.f32 %v3149_v24, %v3149_v24  ;;  %v1867_v0 = vmul.f32 %v3147_v29, %v3147_v29 }
 0x162   : > { %v1865_v42 = vmul.f32 %v3151_v25, %v3151_v25 }
 0x163   : > { %v1845_v51 = vadd.f32 %v1844_v26, %v3137_v12  ;;  %v1868_v52 = vadd.f32 %v1861_v49, %v1860_v48 }
 0x165   : > { %v1869_v53 = vadd.f32 %v1868_v52, %v1862_v50  ;;  %v1846_v54 = vadd.f32 %v1845_v51, %v3145_v8  ;;  %v1948_v51 = vld [vmem:[%s3182_s9] sm:$0xff]  ;;  %v1949_v52 = vld [vmem:[%s3182_s9 + $0x8] sm:$0xff] }
 0x167   : > { %v1847_v55 = vadd.f32 %v1846_v54, %v3143_v39  ;;  %v1870_v58 = vadd.f32 %v1869_v53, %v1863_v47 }
 0x169   : > { %v1848_v41 = vadd.f32 %v1847_v55, %v3151_v25  ;;  %v1871_v61 = vadd.f32 %v1870_v58, %v1864_v40 }
 0x16b   : > { %v1849_v63 = vadd.f32 %v1848_v41, %v3139_v35  ;;  %v1872_v44 = vadd.f32 %v1871_v61, %v1865_v42  ;;  %v1951_v42 = vld [vmem:[%s3182_s9 + $0x18] sm:$0xff] }
 0x16d   : > { %v1850_v1 = vadd.f32 %v1849_v63, %v3147_v29  ;;  %v1873_v2 = vadd.f32 %v1872_v44, %v1866_v62  ;;  %v1952_v44 = vld [vmem:[%s3182_s9 + $0x20] sm:$0xff] }
 0x16f   : > { %v1851_v3 = vrot.slane %v1850_v1, 4  ;;  %v1874_v4 = vadd.f32 %v1873_v2, %v1867_v0 }
 0x171   : > { %v1852_v5 = vadd.f32 %v1851_v3, %v1850_v1  ;;  %v1875_v6 = vrot.slane %v1874_v4, 4  ;;  %v1953_v3 = vld [vmem:[%s3182_s9 + $0x28] sm:$0xff] }
 0x173   : > { %v1853_v7 = vrot.slane %v1852_v5, 2  ;;  %v1876_v10 = vadd.f32 %v1875_v6, %v1874_v4 }
 0x175   : > { %v1854_v56 = vadd.f32 %v1853_v7, %v1852_v5  ;;  %v1877_v13 = vrot.slane %v1876_v10, 2  ;;  %v1954_v7 = vld [vmem:[%s3182_s9 + $0x30] sm:$0xff] }
 0x177   : > { %v1855_v59 = vrot.slane %v1854_v56, 1  ;;  %v1878_v57 = vadd.f32 %v1877_v13, %v1876_v10  ;;  %v1955_v13 = vld [vmem:[%s3182_s9 + $0x38] sm:$0xff] }
 0x179   : > { %v1856_v15 = vadd.f32 %v1855_v59, %v1854_v56  ;;  %v1879_v60 = vrot.slane %v1878_v57, 1 }
 0x17b   : > { %v1857_v17 = vadd.f32 %v1856_v15, %v1843_v14  ;;  %v1880_v18 = vadd.f32 %v1879_v60, %v1878_v57 }
 0x17d   : > { %1858 = vst [vmem:[#allocation3] sm:$0x1] %v1857_v17  ;;  %v1881_v19 = vadd.f32 %v1880_v18, %v1859_v16 }
 0x17f   : > { %1882 = vst [vmem:[#allocation4] sm:$0x1] %v1881_v19 }
 0x184   : > { %v1896_v20 = vld [vmem:[#allocation3] sm:$0x1] }
 0x185   : > { %v1897_v21 = vmul.f32 0.015625, %v1896_v20 }
 0x186   : > { %v1898_v22 = vld [vmem:[#allocation4] sm:$0x1] }
 0x187   : > { %v1899_v23 = vmul.f32 0.015625, %v1898_v22  ;;  %v1900_v27 = vmul.f32 %v1897_v21, %v1897_v21  ;;  %v1916_v32 = vrot.slane %v1897_v21, %v1915_v31 }
 0x189   : > { %v1901_v30 = vsub.f32 %v1899_v23, %v1900_v27  ;;  %v1918_v34 = vsub.f32 %v3141_v36, %v1916_v32  ;;  %v1919_v37 = vsub.f32 %v3149_v24, %v1916_v32  ;;  %v1920_v38 = vsub.f32 %v3137_v12, %v1916_v32 }
 0x18a   : > { %v1921_v43 = vsub.f32 %v3145_v8, %v1916_v32  ;;  %v1922_v46 = vsub.f32 %v3143_v39, %v1916_v32  ;;  %v1923_v50 = vsub.f32 %v3151_v25, %v1916_v32  ;;  %v1924_v54 = vsub.f32 %v3139_v35, %v1916_v32  ;;  %v1950_v8 = vld [vmem:[%s3182_s9 + $0x10] sm:$0xff] }
 0x18b   : > { %v1902_v11 = vadd.f32 1e-05, %v1901_v30  ;;  %v1925_v41 = vsub.f32 %v3147_v29, %v1916_v32 }
 0x18d   : > { %2700 = vrsqrt.f32 %v1902_v11 }
 0x197   : > { %v2701_v33 = vpop.eup %2700 }
 0x198   : > { %v1930_v45 = vrot.slane %v2701_v33, %v1915_v31 }
 0x19a   : > { %v1932_v48 = vmul.f32 %v1930_v45, %v1918_v34  ;;  %v1933_v26 = vmul.f32 %v1930_v45, %v1919_v37  ;;  %v1934_v36 = vmul.f32 %v1930_v45, %v1920_v38  ;;  %v1935_v49 = vmul.f32 %v1930_v45, %v1921_v43 }
 0x19b   : > { %v1936_v47 = vmul.f32 %v1930_v45, %v1922_v46  ;;  %v1937_v40 = vmul.f32 %v1930_v45, %v1923_v50  ;;  %v1938_v25 = vmul.f32 %v1930_v45, %v1924_v54  ;;  %v1939_v0 = vmul.f32 %v1930_v45, %v1925_v41 }
 0x19c   : > { %v1940_v24 = vmax.f32 %v1932_v48, 0.0  ;;  %v1941_v53 = vmax.f32 %v1933_v26, 0.0  ;;  %v1942_v12 = vmax.f32 %v1934_v36, 0.0  ;;  %v1943_v39 = vmax.f32 %v1935_v49, 0.0 }
 0x19d   : > { %v1944_v61 = vmax.f32 %v1936_v47, 0.0  ;;  %v1945_v1 = vmax.f32 %v1937_v40, 0.0  ;;  %v1946_v4 = vmax.f32 %v1938_v25, 0.0  ;;  %v1947_v10 = vmax.f32 %v1939_v0, 0.0 }
 0x19e   : > { %v1956_v55 = vadd.f32 %v1948_v51, %v1940_v24  ;;  %v1957_v58 = vadd.f32 %v1949_v52, %v1941_v53  ;;  %v1958_v62 = vadd.f32 %v1950_v8, %v1942_v12  ;;  %v1959_v2 = vadd.f32 %v1951_v42, %v1943_v39 }
 0x19f   : > { %v1960_v5 = vadd.f32 %v1952_v44, %v1944_v61  ;;  %v1961_v56 = vadd.f32 %v1953_v3, %v1945_v1  ;;  %v1962_v59 = vadd.f32 %v1954_v7, %v1946_v4  ;;  %v1963_v14 = vadd.f32 %v1955_v13, %v1947_v10 }
 0x1a0   : > { %v1964_v63 = vadd.f32 %v1957_v58, %v1956_v55 }
 0x1a2   : > { %v1965_v35 = vadd.f32 %v1964_v63, %v1958_v62 }
 0x1a4   : > { %v1966_v6 = vadd.f32 %v1965_v35, %v1959_v2 }
 0x1a6   : > { %v1967_v29 = vadd.f32 %v1966_v6, %v1960_v5 }
 0x1a8   : > { %v1968_v57 = vadd.f32 %v1967_v29, %v1961_v56 }
 0x1aa   : > { %v1969_v15 = vadd.f32 %v1968_v57, %v1962_v59 }
 0x1ac   : > { %v1970_v60 = vadd.f32 %v1969_v15, %v1963_v14 }
 0x1ae   : > { %v1971_v16 = vrot.slane %v1970_v60, 4 }
 0x1b0   : > { %v1972_v17 = vadd.f32 %v1971_v16, %v1970_v60 }
 0x1b2   : > { %v1973_v18 = vrot.slane %v1972_v17, 2 }
 0x1b4   : > { %v1974_v19 = vadd.f32 %v1973_v18, %v1972_v17 }
 0x1b6   : > { %v1975_v20 = vrot.slane %v1974_v19, 1 }
 0x1b8   : > { %v1976_v21 = vadd.f32 %v1975_v20, %v1974_v19 }
 0x1ba   : > { %v1978_v22 = vmul.f32 0.015625, %v1976_v21 }
 0x1bc   : > { %1979 = vst [vmem:[%s244_s13] sm:$0x1] %v1978_v22 }
 0x1bd PF: > { %s14_s17 = sadd.s32 1, %s2724_s17   ;;  %s3217_s15 = smov %s2720_s16 }
 0x1be   : > { %p11_p5 = scmp.ge.s32.totalorder %s14_s17, 4   ;;  %s3218_s16 = smov %s3220_s18 }
 0x1c0   :  { %13 = sbr.rel (!%p11_p5) target bundleno = 2 (0x2), region = 78 }

</bundles_post_ra>
